<compile_context>
chip_gen: v7x
topology: tpu7x:2x2x1
jax: 0.10.0
libtpu: 0.0.40
codegen_flags: <defaults>
</compile_context>

<pallas_src>
import functools

import jax
import jax.numpy as jnp
from jax.experimental import pallas as pl
from jax.experimental.pallas import tpu as pltpu


# ----------------------------- tiling helpers --------------------------------

def _pick_tile(dim, target, mult):
    """Largest multiple-of-`mult` divisor of `dim` that is <= target, else dim."""
    if dim <= target:
        return dim
    t = (target // mult) * mult
    while t >= mult:
        if dim % t == 0:
            return t
        t -= mult
    return dim


def _pick_tile_parallel(dim, target, mult):
    """Like _pick_tile, but prefer >=2 blocks along this (parallel) axis so
    both v7x TensorCores receive work even when the axis is small."""
    t = _pick_tile(dim, target, mult)
    if dim // t < 2 and dim >= 2 * mult:
        t = _pick_tile(dim, dim // 2, mult)
    return t


# ----------------------------- Pallas kernels ------------------------------

def _layernorm_kernel(x_ref, g_ref, b_ref, o_ref):
    x = x_ref[...].astype(jnp.float32)
    mean = jnp.mean(x, axis=-1, keepdims=True)
    var = jnp.mean(jnp.square(x - mean), axis=-1, keepdims=True)
    y = (x - mean) * jax.lax.rsqrt(var + 1e-12) * g_ref[...] + b_ref[...]
    o_ref[...] = y.astype(o_ref.dtype)        # store bf16, math stays f32


def _matmul_bias_kernel(x_ref, w_ref, b_ref, o_ref, acc_ref, *, activation):
    """Tiled matmul with K-reduction accumulator; epilogue: +bias (+GELU)."""
    @pl.when(pl.program_id(2) == 0)
    def _():
        acc_ref[...] = jnp.zeros_like(acc_ref)

    acc_ref[...] += jnp.dot(x_ref[...].astype(jnp.bfloat16), w_ref[...],
                            preferred_element_type=jnp.float32)

    @pl.when(pl.program_id(2) == pl.num_programs(2) - 1)
    def _():
        y = acc_ref[...] + b_ref[...]
        if activation == "gelu":
            # tanh-approx GELU (BERT "gelu_new")
            c = 0.7978845608028654  # sqrt(2/pi)
            y = 0.5 * y * (1.0 + jnp.tanh(c * (y + 0.044715 * y * y * y)))
        o_ref[...] = y.astype(o_ref.dtype)


def _matmul_res_ln_kernel(x_ref, w_ref, b_ref, r_ref, g_ref, be_ref, o_ref,
                          acc_ref):
    """Tiled matmul; epilogue fuses bias + residual add + LayerNorm (f32 math,
    bf16 store)."""
    @pl.when(pl.program_id(1) == 0)
    def _():
        acc_ref[...] = jnp.zeros_like(acc_ref)

    acc_ref[...] += jnp.dot(x_ref[...].astype(jnp.bfloat16), w_ref[...],
                            preferred_element_type=jnp.float32)

    @pl.when(pl.program_id(1) == pl.num_programs(1) - 1)
    def _():
        y = acc_ref[...] + b_ref[...] + r_ref[...].astype(jnp.float32)
        mean = jnp.mean(y, axis=-1, keepdims=True)
        var = jnp.mean(jnp.square(y - mean), axis=-1, keepdims=True)
        o_ref[...] = ((y - mean) * jax.lax.rsqrt(var + 1e-12) * g_ref[...]
                      + be_ref[...]).astype(o_ref.dtype)


def _flash_attention_kernel(q_ref, k_ref, v_ref, bias_ref, o_ref,
                            m_sc, l_sc, acc_sc, *, scale, heads, head_dim):
    """Per-(batch, head-group) flash attention over a KV grid axis.

    q_ref: (S, heads*Dh) bf16 (resident across kv steps)
    k_ref/v_ref: (tkv, heads*Dh) bf16; bias_ref: (1, tkv) f32 additive mask.
    """
    kv = pl.program_id(2)

    @pl.when(kv == 0)
    def _():
        m_sc[...] = jnp.full_like(m_sc, -jnp.inf)
        l_sc[...] = jnp.zeros_like(l_sc)
        acc_sc[...] = jnp.zeros_like(acc_sc)

    q_rows = q_ref.shape[0]
    kv_rows = k_ref.shape[0]
    # Hoist the (1, tkv) -> (S, tkv) mask broadcast out of the per-head loop.
    bias2d = jnp.broadcast_to(bias_ref[...], (q_rows, kv_rows))

    for h in range(heads):                    # static unroll over packed heads
        sl = slice(h * head_dim, (h + 1) * head_dim)
        q = q_ref[:, sl] * scale              # fold softmax scale into Q (S*Dh)
        k = k_ref[:, sl]
        v = v_ref[:, sl]
        # q @ k^T without an explicit transpose (contract on head_dim)
        s = jax.lax.dot_general(q, k, (((1,), (1,)), ((), ())),
                                preferred_element_type=jnp.float32)
        s = s + bias2d
        m_prev = m_sc[h]
        m_new = jnp.maximum(m_prev, jnp.max(s, axis=-1, keepdims=True))
        alpha = jnp.exp(m_prev - m_new)
        p = jnp.exp(s - m_new)
        l_sc[h] = alpha * l_sc[h] + jnp.sum(p, axis=-1, keepdims=True)
        acc_sc[h] = alpha * acc_sc[h] + jnp.dot(p.astype(jnp.bfloat16), v,
                                                preferred_element_type=jnp.float32)
        m_sc[h] = m_new

    @pl.when(kv == pl.num_programs(2) - 1)
    def _():
        for h in range(heads):
            sl = slice(h * head_dim, (h + 1) * head_dim)
            # exact division for parity with the reference softmax
            o_ref[:, sl] = (acc_sc[h] / l_sc[h]).astype(o_ref.dtype)


def _mlp_head_kernel(x_ref, w1_ref, b1_ref, w2_ref, b2_ref, o_ref):
    # nn.Sequential(Linear(d,d), Tanh(), Dropout(p), Linear(d, num_classes))
    h = jnp.tanh(jnp.dot(x_ref[...].astype(jnp.bfloat16), w1_ref[...],
                         preferred_element_type=jnp.float32) + b1_ref[...])
    # TODO(synk): nn.Dropout is identity in eval mode; no dropout applied here.
    o_ref[...] = jnp.dot(h.astype(jnp.bfloat16), w2_ref[...],
                         preferred_element_type=jnp.float32) + b2_ref[...]


# ----------------------------- wrappers -------------------------------------

def pallas_layernorm(x, gamma, beta, *, block_rows=512):
    n, d = x.shape
    tm = _pick_tile_parallel(n, block_rows, 8)
    return pl.pallas_call(
        _layernorm_kernel,
        out_shape=jax.ShapeDtypeStruct((n, d), jnp.bfloat16),
        grid=(n // tm,),
        in_specs=[pl.BlockSpec((tm, d), lambda i: (i, 0)),
                  pl.BlockSpec((1, d), lambda i: (0, 0)),
                  pl.BlockSpec((1, d), lambda i: (0, 0))],
        out_specs=pl.BlockSpec((tm, d), lambda i: (i, 0)),
        compiler_params=pltpu.CompilerParams(
            dimension_semantics=("parallel",)),
    )(x, gamma.reshape(1, d), beta.reshape(1, d))


def pallas_matmul_bias(x, w, b, *, activation=None, out_dtype=jnp.bfloat16,
                       bm=512, bn=1024, bk=512):
    # Per-step VMEM with bf16 operands at (512, 1024, 512) tiles is ~9 MiB with
    # double-buffering — comfortably under the 32 MiB scoped default and the
    # v7x 64 MiB physical VMEM.
    m, k = x.shape
    k2, n = w.shape
    assert k == k2
    tm = _pick_tile_parallel(m, bm, 8)
    tn = _pick_tile(n, bn, 128)
    tk = _pick_tile(k, bk, 128)
    kern = functools.partial(_matmul_bias_kernel, activation=activation)
    # TODO(synk): sweep pipeline_mode=pl.Buffered(3) on the weight operand when
    # M (=B*S) is small to hide the exposed weight DMA.
    return pl.pallas_call(
        kern,
        out_shape=jax.ShapeDtypeStruct((m, n), out_dtype),
        grid=(m // tm, n // tn, k // tk),
        in_specs=[pl.BlockSpec((tm, tk), lambda i, j, kk: (i, kk)),
                  pl.BlockSpec((tk, tn), lambda i, j, kk: (kk, j)),
                  pl.BlockSpec((1, tn), lambda i, j, kk: (0, j))],
        out_specs=pl.BlockSpec((tm, tn), lambda i, j, kk: (i, j)),
        scratch_shapes=[pltpu.VMEM((tm, tn), jnp.float32)],
        compiler_params=pltpu.CompilerParams(
            dimension_semantics=("parallel", "parallel", "arbitrary")),
    )(x, w, b.reshape(1, n))


def pallas_matmul_res_ln(x, w, b, residual, gamma, beta, *, bm=512, bk=512):
    # Note: the acc / residual / out blocks are (tm, d) (LayerNorm needs the
    # full row) — with bf16 residual/out and tm<=512 this stays well inside the
    # v7x 64 MiB VMEM budget even at d=1024.
    m, k = x.shape
    _, d = w.shape
    tm = _pick_tile_parallel(m, bm, 8)
    tk = _pick_tile(k, bk, 128)
    return pl.pallas_call(
        _matmul_res_ln_kernel,
        out_shape=jax.ShapeDtypeStruct((m, d), jnp.bfloat16),
        grid=(m // tm, k // tk),
        in_specs=[pl.BlockSpec((tm, tk), lambda i, kk: (i, kk)),
                  pl.BlockSpec((tk, d), lambda i, kk: (kk, 0)),
                  pl.BlockSpec((1, d), lambda i, kk: (0, 0)),
                  pl.BlockSpec((tm, d), lambda i, kk: (i, 0)),
                  pl.BlockSpec((1, d), lambda i, kk: (0, 0)),
                  pl.BlockSpec((1, d), lambda i, kk: (0, 0))],
        out_specs=pl.BlockSpec((tm, d), lambda i, kk: (i, 0)),
        scratch_shapes=[pltpu.VMEM((tm, d), jnp.float32)],
        compiler_params=pltpu.CompilerParams(
            dimension_semantics=("parallel", "arbitrary")),
    )(x, w, b.reshape(1, d), residual, gamma.reshape(1, d), beta.reshape(1, d))


def pallas_attention(qkv, mask_bias, *, batch, seq, heads, head_dim, scale,
                     kv_block=512):
    """qkv: [B*S, 3*D] fused projection output (bf16).  Returns [B*S, D] bf16."""
    d = heads * head_dim
    # Pack heads per grid step until the block width is lane-dense (>=128).
    g = 1
    while g < heads and g * head_dim < 128 and heads % (2 * g) == 0:
        g *= 2
    n_hb = heads // g
    bw = g * head_dim
    # Flash-style KV tiling: KV tile is a multiple of 128 dividing seq (or the
    # full sequence when it is short), so the live score block is (seq, tkv).
    tkv = seq if seq <= kv_block else _pick_tile(seq, kv_block, 128)
    if seq % tkv:
        tkv = seq
    n_kv = seq // tkv
    kern = functools.partial(_flash_attention_kernel, scale=scale, heads=g,
                             head_dim=head_dim)
    return pl.pallas_call(
        kern,
        out_shape=jax.ShapeDtypeStruct((batch * seq, d), jnp.bfloat16),
        grid=(batch, n_hb, n_kv),
        in_specs=[
            # Q: resident across kv steps.
            pl.BlockSpec((seq, bw), lambda bi, hi, ki: (bi, hi)),
            # K / V: row-blocks walk the current batch element's rows.
            pl.BlockSpec((tkv, bw),
                         lambda bi, hi, ki: (bi * n_kv + ki, n_hb + hi)),
            pl.BlockSpec((tkv, bw),
                         lambda bi, hi, ki: (bi * n_kv + ki, 2 * n_hb + hi)),
            # additive key mask (B, 1, S)
            pl.BlockSpec((None, 1, tkv), lambda bi, hi, ki: (bi, 0, ki)),
        ],
        out_specs=pl.BlockSpec((seq, bw), lambda bi, hi, ki: (bi, hi)),
        scratch_shapes=[pltpu.VMEM((g, seq, 1), jnp.float32),        # m
                        pltpu.VMEM((g, seq, 1), jnp.float32),        # l
                        pltpu.VMEM((g, seq, head_dim), jnp.float32)],# acc
        compiler_params=pltpu.CompilerParams(
            dimension_semantics=("parallel", "parallel", "arbitrary")),
    )(qkv, qkv, qkv, mask_bias)


def pallas_mlp_head(x, w1, b1, w2, b2):
    # Negligible FLOPs (CLS rows only) — single full-block kernel is fine.
    b, d = x.shape
    c = w2.shape[1]
    return pl.pallas_call(
        _mlp_head_kernel,
        out_shape=jax.ShapeDtypeStruct((b, c), jnp.float32),
        grid=(1,),
        in_specs=[pl.BlockSpec((b, d), lambda i: (0, 0)),
                  pl.BlockSpec((d, d), lambda i: (0, 0)),
                  pl.BlockSpec((1, d), lambda i: (0, 0)),
                  pl.BlockSpec((d, c), lambda i: (0, 0)),
                  pl.BlockSpec((1, c), lambda i: (0, 0))],
        out_specs=pl.BlockSpec((b, c), lambda i: (0, 0)),
    )(x, w1, b1.reshape(1, d), w2, b2.reshape(1, c))


# ----------------------------- parameters -----------------------------------

def init_params(key, *, vocab, max_pos, d_model, n_heads, n_layers, d_ff,
                n_classes):
    del n_heads  # head count only affects reshapes, not parameter shapes
    keys = iter(jax.random.split(key, 8 + 6 * n_layers))

    def w(shape, dtype=jnp.bfloat16, scale=0.02):
        v = scale * jax.random.normal(next(keys), shape, jnp.float32)
        return v.astype(dtype)   # matmul weights stored bf16 (MXU operands)

    zeros = lambda n: jnp.zeros((n,), jnp.float32)
    ones = lambda n: jnp.ones((n,), jnp.float32)

    params = dict(
        word_emb=w((vocab, d_model), jnp.float32),
        pos_emb=w((max_pos, d_model), jnp.float32),
        type_emb=w((2, d_model), jnp.float32),
        emb_ln_g=ones(d_model), emb_ln_b=zeros(d_model),
        mlp_w1=w((d_model, d_model)), mlp_b1=zeros(d_model),
        mlp_w2=w((d_model, n_classes)), mlp_b2=zeros(n_classes),
        layers=[],
    )
    for _ in range(n_layers):
        params["layers"].append(dict(
            wqkv=w((d_model, 3 * d_model)), bqkv=zeros(3 * d_model),  # fused QKV
            wo=w((d_model, d_model)), bo=zeros(d_model),
            ln1_g=ones(d_model), ln1_b=zeros(d_model),
            w1=w((d_model, d_ff)), b1=zeros(d_ff),
            w2=w((d_ff, d_model)), b2=zeros(d_model),
            ln2_g=ones(d_model), ln2_b=zeros(d_model),
        ))
    return params


# ----------------------------- forward pass ---------------------------------

def bert4classify_forward(params, input_ids, att_mask, cfg):
    B, S = input_ids.shape
    D = cfg["d_model"]
    H = cfg["n_heads"]
    Dh = D // H
    scale = 1.0 / (Dh ** 0.5)

    # Embeddings (gathers are XLA glue), then tiled Pallas LayerNorm (bf16 out).
    x = (params["word_emb"][input_ids]
         + params["pos_emb"][:S][None, :, :]
         + params["type_emb"][0][None, None, :])
    x = x.reshape(B * S, D).astype(jnp.float32)
    x = pallas_layernorm(x, params["emb_ln_g"], params["emb_ln_b"])

    # Additive attention mask bias: 0 for valid tokens, -1e9 for padding.
    mask_bias = ((1.0 - att_mask.astype(jnp.float32)) * -1e9).reshape(B, 1, S)

    for layer in params["layers"]:
        # Fused Q|K|V projection (one matmul, bf16 output for the attn kernel).
        # TODO(synk): optional further fusion — keep the per-(batch,head) qkv
        # tile in VMEM and run attention in the same kernel to skip the HBM
        # round trip of the [B*S, 3D] slab.
        qkv = pallas_matmul_bias(x, layer["wqkv"], layer["bqkv"],
                                 out_dtype=jnp.bfloat16)
        # Flash attention reads head slices of the [B*S, 3D] slab via BlockSpec
        # index maps — no head-split / merge transposes in HBM.
        ctx = pallas_attention(qkv, mask_bias, batch=B, seq=S, heads=H,
                               head_dim=Dh, scale=scale)
        # Output projection with fused bias + residual + LayerNorm epilogue.
        x = pallas_matmul_res_ln(ctx, layer["wo"], layer["bo"], x,
                                 layer["ln1_g"], layer["ln1_b"])
        # FFN: up-projection with fused GELU, down-projection with fused
        # bias + residual + LayerNorm.
        ff = pallas_matmul_bias(x, layer["w1"], layer["b1"],
                                activation="gelu", out_dtype=jnp.bfloat16)
        x = pallas_matmul_res_ln(ff, layer["w2"], layer["b2"], x,
                                 layer["ln2_g"], layer["ln2_b"])

    # sentence_emb = all_hidden[0][:, 0]  (CLS hidden state, no pooler)
    cls = x.reshape(B, S, D)[:, 0]
    logits = pallas_mlp_head(cls, params["mlp_w1"], params["mlp_b1"],
                             params["mlp_w2"], params["mlp_b2"])
    return logits


# ----------------------------- main ------------------------------------------

if __name__ == "__main__":
    # Small but TPU-layout-friendly config: head_dim = 128 (lane-dense blocks).
    cfg = dict(vocab=64, max_pos=32, d_model=256, n_heads=2, n_layers=2,
               d_ff=512, n_classes=4)
    params = init_params(jax.random.PRNGKey(0), **cfg)

    B, S = 2, 8
    kid, _ = jax.random.split(jax.random.PRNGKey(0))
    input_ids = jax.random.randint(kid, (B, S), 0, cfg["vocab"], dtype=jnp.int32)
    lens = jnp.array([8, 5], dtype=jnp.int32)
    att_mask = (jnp.arange(S)[None, :] < lens[:, None]).astype(jnp.int32)

    fwd = jax.jit(functools.partial(bert4classify_forward, cfg=cfg))
    logits = fwd(params, input_ids, att_mask)
    jax.block_until_ready(logits)
    assert logits.shape == (B, cfg["n_classes"])
    print("KERNEL_OK")
</pallas_src>

<mosaic_0001>
module attributes {stable_mosaic.version = 11 : i64} {
  func.func @_matmul_bias_kernel(%arg0: i32, %arg1: i32, %arg2: i32, %arg3: memref<8x256xbf16, #tpu.memory_space<vmem>>, %arg4: memref<256x768xbf16, #tpu.memory_space<vmem>>, %arg5: memref<1x768xf32, #tpu.memory_space<vmem>>, %arg6: memref<8x768xbf16, #tpu.memory_space<vmem>>, %arg7: memref<8x768xf32, #tpu.memory_space<vmem>>) attributes {dimension_semantics = [#tpu.dimension_semantics<parallel>, #tpu.dimension_semantics<parallel>, #tpu.dimension_semantics<arbitrary>], iteration_bounds = array<i64: 2, 1, 1>, scalar_prefetch = 0 : i64, scratch_operands = 1 : i64, tpu.core_type = #tpu.core_type<tc>, window_params = [{transform_indices = @transform_0, window_bounds = array<i64: 8, 256>}, {transform_indices = @transform_1, window_bounds = array<i64: 256, 768>}, {transform_indices = @transform_2, window_bounds = array<i64: 1, 768>}, {transform_indices = @transform_3, window_bounds = array<i64: 8, 768>}]} {
    %c0_i32 = arith.constant 0 : i32
    %0 = arith.cmpi eq, %arg2, %c0_i32 : i32
    %1 = arith.extui %0 : i1 to i32
    %c0_i32_0 = arith.constant 0 : i32
    %2 = arith.cmpi ne, %1, %c0_i32_0 : i32
    scf.if %2 {
      %cst_10 = arith.constant 0.000000e+00 : f32
      %12 = vector.broadcast %cst_10 : f32 to vector<8x768xf32>
      %c0_11 = arith.constant 0 : index
      %c0_12 = arith.constant 0 : index
      %13 = vector.load %arg7[%c0_11, %c0_12] : memref<8x768xf32, #tpu.memory_space<vmem>>, vector<8x768xf32>
      tpu.vector_store %arg7[%c0_11, %c0_12], %12 {strides = array<i32>} : memref<8x768xf32, #tpu.memory_space<vmem>>, vector<8x768xf32>,
    } else {
    }
    %c0 = arith.constant 0 : index
    %c0_1 = arith.constant 0 : index
    %3 = vector.load %arg7[%c0, %c0_1] : memref<8x768xf32, #tpu.memory_space<vmem>>, vector<8x768xf32>
    %c0_2 = arith.constant 0 : index
    %c0_3 = arith.constant 0 : index
    %4 = vector.load %arg3[%c0_2, %c0_3] : memref<8x256xbf16, #tpu.memory_space<vmem>>, vector<8x256xbf16>
    %c0_4 = arith.constant 0 : index
    %c0_5 = arith.constant 0 : index
    %5 = vector.load %arg4[%c0_4, %c0_5] : memref<256x768xbf16, #tpu.memory_space<vmem>>, vector<256x768xbf16>
    %cst = arith.constant dense<0.000000e+00> : vector<8x768xf32>
    %6 = tpu.matmul %4, %5, %cst {dimension_numbers = #tpu.dot_dimension_numbers<[1], [0], [0], [1], [0, 0, 1, 1], [], []>} : vector<8x256xbf16>, vector<256x768xbf16>, vector<8x768xf32> -> vector<8x768xf32>
    %7 = arith.addf %3, %6 : vector<8x768xf32>
    %c0_6 = arith.constant 0 : index
    %c0_7 = arith.constant 0 : index
    %8 = vector.load %arg7[%c0_6, %c0_7] : memref<8x768xf32, #tpu.memory_space<vmem>>, vector<8x768xf32>
    tpu.vector_store %arg7[%c0_6, %c0_7], %7 {strides = array<i32>} : memref<8x768xf32, #tpu.memory_space<vmem>>, vector<8x768xf32>,
    %c0_i32_8 = arith.constant 0 : i32
    %9 = arith.cmpi eq, %arg2, %c0_i32_8 : i32
    %10 = arith.extui %9 : i1 to i32
    %c0_i32_9 = arith.constant 0 : i32
    %11 = arith.cmpi ne, %10, %c0_i32_9 : i32
    scf.if %11 {
      %c0_10 = arith.constant 0 : index
      %c0_11 = arith.constant 0 : index
      %12 = vector.load %arg7[%c0_10, %c0_11] : memref<8x768xf32, #tpu.memory_space<vmem>>, vector<8x768xf32>
      %c0_12 = arith.constant 0 : index
      %c0_13 = arith.constant 0 : index
      %13 = vector.load %arg5[%c0_12, %c0_13] : memref<1x768xf32, #tpu.memory_space<vmem>>, vector<1x768xf32>
      %14 = vector.broadcast %13 : vector<1x768xf32> to vector<8x768xf32>
      %15 = arith.addf %12, %14 : vector<8x768xf32>
      %16 = arith.truncf %15 : vector<8x768xf32> to vector<8x768xbf16>
      %c0_14 = arith.constant 0 : index
      %c0_15 = arith.constant 0 : index
      %17 = vector.load %arg6[%c0_14, %c0_15] : memref<8x768xbf16, #tpu.memory_space<vmem>>, vector<8x768xbf16>
      tpu.vector_store %arg6[%c0_14, %c0_15], %16 {strides = array<i32>} : memref<8x768xbf16, #tpu.memory_space<vmem>>, vector<8x768xbf16>,
    } else {
    }
    return
  }
  func.func @transform_0(%arg0: i32, %arg1: i32, %arg2: i32) -> (i32, i32) {
    %c0_i32 = arith.constant 0 : i32
    return %arg0, %arg2 : i32, i32
  }
  func.func @transform_1(%arg0: i32, %arg1: i32, %arg2: i32) -> (i32, i32) {
    %c0_i32 = arith.constant 0 : i32
    return %arg2, %arg1 : i32, i32
  }
  func.func @transform_2(%arg0: i32, %arg1: i32, %arg2: i32) -> (i32, i32) {
    %c0_i32 = arith.constant 0 : i32
    %c0_i32_0 = arith.constant 0 : i32
    return %c0_i32, %arg1 : i32, i32
  }
  func.func @transform_3(%arg0: i32, %arg1: i32, %arg2: i32) -> (i32, i32) {
    %c0_i32 = arith.constant 0 : i32
    return %arg0, %arg1 : i32, i32
  }
}

module attributes {stable_mosaic.version = 11 : i64} {
  func.func @_layernorm_kernel(%arg0: i32, %arg1: memref<8x256xf32, #tpu.memory_space<vmem>>, %arg2: memref<1x256xf32, #tpu.memory_space<vmem>>, %arg3: memref<1x256xf32, #tpu.memory_space<vmem>>, %arg4: memref<8x256xbf16, #tpu.memory_space<vmem>>) attributes {dimension_semantics = [#tpu.dimension_semantics<parallel>], iteration_bounds = array<i64: 2>, scalar_prefetch = 0 : i64, scratch_operands = 0 : i64, tpu.core_type = #tpu.core_type<tc>, window_params = [{transform_indices = @transform_0, window_bounds = array<i64: 8, 256>}, {pipeline_mode = #tpu.pipeline_mode<synchronous>, transform_indices = @transform_1, window_bounds = array<i64: 1, 256>}, {pipeline_mode = #tpu.pipeline_mode<synchronous>, transform_indices = @transform_2, window_bounds = array<i64: 1, 256>}, {transform_indices = @transform_3, window_bounds = array<i64: 8, 256>}]} {
    %c0 = arith.constant 0 : index
    %c0_0 = arith.constant 0 : index
    %0 = vector.load %arg1[%c0, %c0_0] : memref<8x256xf32, #tpu.memory_space<vmem>>, vector<8x256xf32>
    %cst = arith.constant dense<0.000000e+00> : vector<8xf32>
    %1 = vector.multi_reduction <add>, %0, %cst [1] : vector<8x256xf32> to vector<8xf32>
    %2 = vector.shape_cast %1 : vector<8xf32> to vector<8x1xf32>
    %cst_1 = arith.constant 2.560000e+02 : f32
    %3 = vector.broadcast %cst_1 : f32 to vector<8x1xf32>
    %4 = arith.divf %2, %3 : vector<8x1xf32>
    %5 = vector.broadcast %4 : vector<8x1xf32> to vector<8x256xf32>
    %6 = arith.subf %0, %5 : vector<8x256xf32>
    %7 = arith.mulf %6, %6 : vector<8x256xf32>
    %cst_2 = arith.constant dense<0.000000e+00> : vector<8xf32>
    %8 = vector.multi_reduction <add>, %7, %cst_2 [1] : vector<8x256xf32> to vector<8xf32>
    %9 = vector.shape_cast %8 : vector<8xf32> to vector<8x1xf32>
    %cst_3 = arith.constant 2.560000e+02 : f32
    %10 = vector.broadcast %cst_3 : f32 to vector<8x1xf32>
    %11 = arith.divf %9, %10 : vector<8x1xf32>
    %12 = vector.broadcast %4 : vector<8x1xf32> to vector<8x256xf32>
    %13 = arith.subf %0, %12 : vector<8x256xf32>
    %cst_4 = arith.constant 9.99999996E-13 : f32
    %14 = vector.broadcast %cst_4 : f32 to vector<8x1xf32>
    %15 = arith.addf %11, %14 : vector<8x1xf32>
    %16 = math.rsqrt %15 : vector<8x1xf32>
    %17 = vector.broadcast %16 : vector<8x1xf32> to vector<8x256xf32>
    %18 = arith.mulf %13, %17 : vector<8x256xf32>
    %c0_5 = arith.constant 0 : index
    %c0_6 = arith.constant 0 : index
    %19 = vector.load %arg2[%c0_5, %c0_6] : memref<1x256xf32, #tpu.memory_space<vmem>>, vector<1x256xf32>
    %20 = vector.broadcast %19 : vector<1x256xf32> to vector<8x256xf32>
    %21 = arith.mulf %18, %20 : vector<8x256xf32>
    %c0_7 = arith.constant 0 : index
    %c0_8 = arith.constant 0 : index
    %22 = vector.load %arg3[%c0_7, %c0_8] : memref<1x256xf32, #tpu.memory_space<vmem>>, vector<1x256xf32>
    %23 = vector.broadcast %22 : vector<1x256xf32> to vector<8x256xf32>
    %24 = arith.addf %21, %23 : vector<8x256xf32>
    %25 = arith.truncf %24 : vector<8x256xf32> to vector<8x256xbf16>
    %c0_9 = arith.constant 0 : index
    %c0_10 = arith.constant 0 : index
    %26 = vector.load %arg4[%c0_9, %c0_10] : memref<8x256xbf16, #tpu.memory_space<vmem>>, vector<8x256xbf16>
    tpu.vector_store %arg4[%c0_9, %c0_10], %25 {strides = array<i32>} : memref<8x256xbf16, #tpu.memory_space<vmem>>, vector<8x256xbf16>,
    return
  }
  func.func @transform_0(%arg0: i32) -> (i32, i32) {
    %c0_i32 = arith.constant 0 : i32
    %c0_i32_0 = arith.constant 0 : i32
    return %arg0, %c0_i32 : i32, i32
  }
  func.func @transform_1(%arg0: i32) -> (i32, i32) {
    %c0_i32 = arith.constant 0 : i32
    %c0_i32_0 = arith.constant 0 : i32
    %c0_i32_1 = arith.constant 0 : i32
    return %c0_i32, %c0_i32_0 : i32, i32
  }
  func.func @transform_2(%arg0: i32) -> (i32, i32) {
    %c0_i32 = arith.constant 0 : i32
    %c0_i32_0 = arith.constant 0 : i32
    %c0_i32_1 = arith.constant 0 : i32
    return %c0_i32, %c0_i32_0 : i32, i32
  }
  func.func @transform_3(%arg0: i32) -> (i32, i32) {
    %c0_i32 = arith.constant 0 : i32
    %c0_i32_0 = arith.constant 0 : i32
    return %arg0, %c0_i32 : i32, i32
  }
}

module attributes {stable_mosaic.version = 11 : i64} {
  func.func @_matmul_res_ln_kernel(%arg0: i32, %arg1: i32, %arg2: memref<8x256xbf16, #tpu.memory_space<vmem>>, %arg3: memref<256x256xbf16, #tpu.memory_space<vmem>>, %arg4: memref<1x256xf32, #tpu.memory_space<vmem>>, %arg5: memref<8x256xbf16, #tpu.memory_space<vmem>>, %arg6: memref<1x256xf32, #tpu.memory_space<vmem>>, %arg7: memref<1x256xf32, #tpu.memory_space<vmem>>, %arg8: memref<8x256xbf16, #tpu.memory_space<vmem>>, %arg9: memref<8x256xf32, #tpu.memory_space<vmem>>) attributes {dimension_semantics = [#tpu.dimension_semantics<parallel>, #tpu.dimension_semantics<arbitrary>], iteration_bounds = array<i64: 2, 1>, scalar_prefetch = 0 : i64, scratch_operands = 1 : i64, tpu.core_type = #tpu.core_type<tc>, window_params = [{transform_indices = @transform_0, window_bounds = array<i64: 8, 256>}, {transform_indices = @transform_1, window_bounds = array<i64: 256, 256>}, {pipeline_mode = #tpu.pipeline_mode<synchronous>, transform_indices = @transform_2, window_bounds = array<i64: 1, 256>}, {transform_indices = @transform_3, window_bounds = array<i64: 8, 256>}, {pipeline_mode = #tpu.pipeline_mode<synchronous>, transform_indices = @transform_4, window_bounds = array<i64: 1, 256>}, {pipeline_mode = #tpu.pipeline_mode<synchronous>, transform_indices = @transform_5, window_bounds = array<i64: 1, 256>}, {transform_indices = @transform_6, window_bounds = array<i64: 8, 256>}]} {
    %c0_i32 = arith.constant 0 : i32
    %0 = arith.cmpi eq, %arg1, %c0_i32 : i32
    %1 = arith.extui %0 : i1 to i32
    %c0_i32_0 = arith.constant 0 : i32
    %2 = arith.cmpi ne, %1, %c0_i32_0 : i32
    scf.if %2 {
      %cst_10 = arith.constant 0.000000e+00 : f32
      %12 = vector.broadcast %cst_10 : f32 to vector<8x256xf32>
      %c0_11 = arith.constant 0 : index
      %c0_12 = arith.constant 0 : index
      %13 = vector.load %arg9[%c0_11, %c0_12] : memref<8x256xf32, #tpu.memory_space<vmem>>, vector<8x256xf32>
      tpu.vector_store %arg9[%c0_11, %c0_12], %12 {strides = array<i32>} : memref<8x256xf32, #tpu.memory_space<vmem>>, vector<8x256xf32>,
    } else {
    }
    %c0 = arith.constant 0 : index
    %c0_1 = arith.constant 0 : index
    %3 = vector.load %arg9[%c0, %c0_1] : memref<8x256xf32, #tpu.memory_space<vmem>>, vector<8x256xf32>
    %c0_2 = arith.constant 0 : index
    %c0_3 = arith.constant 0 : index
    %4 = vector.load %arg2[%c0_2, %c0_3] : memref<8x256xbf16, #tpu.memory_space<vmem>>, vector<8x256xbf16>
    %c0_4 = arith.constant 0 : index
    %c0_5 = arith.constant 0 : index
    %5 = vector.load %arg3[%c0_4, %c0_5] : memref<256x256xbf16, #tpu.memory_space<vmem>>, vector<256x256xbf16>
    %cst = arith.constant dense<0.000000e+00> : vector<8x256xf32>
    %6 = tpu.matmul %4, %5, %cst {dimension_numbers = #tpu.dot_dimension_numbers<[1], [0], [0], [1], [0, 0, 1, 1], [], []>} : vector<8x256xbf16>, vector<256x256xbf16>, vector<8x256xf32> -> vector<8x256xf32>
    %7 = arith.addf %3, %6 : vector<8x256xf32>
    %c0_6 = arith.constant 0 : index
    %c0_7 = arith.constant 0 : index
    %8 = vector.load %arg9[%c0_6, %c0_7] : memref<8x256xf32, #tpu.memory_space<vmem>>, vector<8x256xf32>
    tpu.vector_store %arg9[%c0_6, %c0_7], %7 {strides = array<i32>} : memref<8x256xf32, #tpu.memory_space<vmem>>, vector<8x256xf32>,
    %c0_i32_8 = arith.constant 0 : i32
    %9 = arith.cmpi eq, %arg1, %c0_i32_8 : i32
    %10 = arith.extui %9 : i1 to i32
    %c0_i32_9 = arith.constant 0 : i32
    %11 = arith.cmpi ne, %10, %c0_i32_9 : i32
    scf.if %11 {
      %c0_10 = arith.constant 0 : index
      %c0_11 = arith.constant 0 : index
      %12 = vector.load %arg9[%c0_10, %c0_11] : memref<8x256xf32, #tpu.memory_space<vmem>>, vector<8x256xf32>
      %c0_12 = arith.constant 0 : index
      %c0_13 = arith.constant 0 : index
      %13 = vector.load %arg4[%c0_12, %c0_13] : memref<1x256xf32, #tpu.memory_space<vmem>>, vector<1x256xf32>
      %14 = vector.broadcast %13 : vector<1x256xf32> to vector<8x256xf32>
      %15 = arith.addf %12, %14 : vector<8x256xf32>
      %c0_14 = arith.constant 0 : index
      %c0_15 = arith.constant 0 : index
      %16 = vector.load %arg5[%c0_14, %c0_15] : memref<8x256xbf16, #tpu.memory_space<vmem>>, vector<8x256xbf16>
      %17 = arith.extf %16 : vector<8x256xbf16> to vector<8x256xf32>
      %18 = arith.addf %15, %17 : vector<8x256xf32>
      %cst_16 = arith.constant dense<0.000000e+00> : vector<8xf32>
      %19 = vector.multi_reduction <add>, %18, %cst_16 [1] : vector<8x256xf32> to vector<8xf32>
      %20 = vector.shape_cast %19 : vector<8xf32> to vector<8x1xf32>
      %cst_17 = arith.constant 2.560000e+02 : f32
      %21 = vector.broadcast %cst_17 : f32 to vector<8x1xf32>
      %22 = arith.divf %20, %21 : vector<8x1xf32>
      %23 = vector.broadcast %22 : vector<8x1xf32> to vector<8x256xf32>
      %24 = arith.subf %18, %23 : vector<8x256xf32>
      %25 = arith.mulf %24, %24 : vector<8x256xf32>
      %cst_18 = arith.constant dense<0.000000e+00> : vector<8xf32>
      %26 = vector.multi_reduction <add>, %25, %cst_18 [1] : vector<8x256xf32> to vector<8xf32>
      %27 = vector.shape_cast %26 : vector<8xf32> to vector<8x1xf32>
      %cst_19 = arith.constant 2.560000e+02 : f32
      %28 = vector.broadcast %cst_19 : f32 to vector<8x1xf32>
      %29 = arith.divf %27, %28 : vector<8x1xf32>
      %30 = vector.broadcast %22 : vector<8x1xf32> to vector<8x256xf32>
      %31 = arith.subf %18, %30 : vector<8x256xf32>
      %cst_20 = arith.constant 9.99999996E-13 : f32
      %32 = vector.broadcast %cst_20 : f32 to vector<8x1xf32>
      %33 = arith.addf %29, %32 : vector<8x1xf32>
      %34 = math.rsqrt %33 : vector<8x1xf32>
      %35 = vector.broadcast %34 : vector<8x1xf32> to vector<8x256xf32>
      %36 = arith.mulf %31, %35 : vector<8x256xf32>
      %c0_21 = arith.constant 0 : index
      %c0_22 = arith.constant 0 : index
      %37 = vector.load %arg6[%c0_21, %c0_22] : memref<1x256xf32, #tpu.memory_space<vmem>>, vector<1x256xf32>
      %38 = vector.broadcast %37 : vector<1x256xf32> to vector<8x256xf32>
      %39 = arith.mulf %36, %38 : vector<8x256xf32>
      %c0_23 = arith.constant 0 : index
      %c0_24 = arith.constant 0 : index
      %40 = vector.load %arg7[%c0_23, %c0_24] : memref<1x256xf32, #tpu.memory_space<vmem>>, vector<1x256xf32>
      %41 = vector.broadcast %40 : vector<1x256xf32> to vector<8x256xf32>
      %42 = arith.addf %39, %41 : vector<8x256xf32>
      %43 = arith.truncf %42 : vector<8x256xf32> to vector<8x256xbf16>
      %c0_25 = arith.constant 0 : index
      %c0_26 = arith.constant 0 : index
      %44 = vector.load %arg8[%c0_25, %c0_26] : memref<8x256xbf16, #tpu.memory_space<vmem>>, vector<8x256xbf16>
      tpu.vector_store %arg8[%c0_25, %c0_26], %43 {strides = array<i32>} : memref<8x256xbf16, #tpu.memory_space<vmem>>, vector<8x256xbf16>,
    } else {
    }
    return
  }
  func.func @transform_0(%arg0: i32, %arg1: i32) -> (i32, i32) {
    %c0_i32 = arith.constant 0 : i32
    return %arg0, %arg1 : i32, i32
  }
  func.func @transform_1(%arg0: i32, %arg1: i32) -> (i32, i32) {
    %c0_i32 = arith.constant 0 : i32
    %c0_i32_0 = arith.constant 0 : i32
    return %arg1, %c0_i32 : i32, i32
  }
  func.func @transform_2(%arg0: i32, %arg1: i32) -> (i32, i32) {
    %c0_i32 = arith.constant 0 : i32
    %c0_i32_0 = arith.constant 0 : i32
    %c0_i32_1 = arith.constant 0 : i32
    return %c0_i32, %c0_i32_0 : i32, i32
  }
  func.func @transform_3(%arg0: i32, %arg1: i32) -> (i32, i32) {
    %c0_i32 = arith.constant 0 : i32
    %c0_i32_0 = arith.constant 0 : i32
    return %arg0, %c0_i32 : i32, i32
  }
  func.func @transform_4(%arg0: i32, %arg1: i32) -> (i32, i32) {
    %c0_i32 = arith.constant 0 : i32
    %c0_i32_0 = arith.constant 0 : i32
    %c0_i32_1 = arith.constant 0 : i32
    return %c0_i32, %c0_i32_0 : i32, i32
  }
  func.func @transform_5(%arg0: i32, %arg1: i32) -> (i32, i32) {
    %c0_i32 = arith.constant 0 : i32
    %c0_i32_0 = arith.constant 0 : i32
    %c0_i32_1 = arith.constant 0 : i32
    return %c0_i32, %c0_i32_0 : i32, i32
  }
  func.func @transform_6(%arg0: i32, %arg1: i32) -> (i32, i32) {
    %c0_i32 = arith.constant 0 : i32
    %c0_i32_0 = arith.constant 0 : i32
    return %arg0, %c0_i32 : i32, i32
  }
}

module attributes {stable_mosaic.version = 11 : i64} {
  func.func @_flash_attention_kernel(%arg0: i32, %arg1: i32, %arg2: i32, %arg3: memref<8x128xbf16, #tpu.memory_space<vmem>>, %arg4: memref<8x128xbf16, #tpu.memory_space<vmem>>, %arg5: memref<8x128xbf16, #tpu.memory_space<vmem>>, %arg6: memref<1x1x8xf32, #tpu.memory_space<vmem>>, %arg7: memref<8x128xbf16, #tpu.memory_space<vmem>>, %arg8: memref<1x8x1xf32, #tpu.memory_space<vmem>>, %arg9: memref<1x8x1xf32, #tpu.memory_space<vmem>>, %arg10: memref<1x8x128xf32, #tpu.memory_space<vmem>>) attributes {dimension_semantics = [#tpu.dimension_semantics<parallel>, #tpu.dimension_semantics<parallel>, #tpu.dimension_semantics<arbitrary>], iteration_bounds = array<i64: 2, 2, 1>, scalar_prefetch = 0 : i64, scratch_operands = 3 : i64, tpu.core_type = #tpu.core_type<tc>, window_params = [{transform_indices = @transform_0, window_bounds = array<i64: 8, 128>}, {transform_indices = @transform_1, window_bounds = array<i64: 8, 128>}, {transform_indices = @transform_2, window_bounds = array<i64: 8, 128>}, {transform_indices = @transform_3, window_bounds = array<i64: 1, 1, 8>}, {transform_indices = @transform_4, window_bounds = array<i64: 8, 128>}]} {
    %c0_i32 = arith.constant 0 : i32
    %0 = arith.cmpi eq, %arg2, %c0_i32 : i32
    %1 = arith.extui %0 : i1 to i32
    %c0_i32_0 = arith.constant 0 : i32
    %2 = arith.cmpi ne, %1, %c0_i32_0 : i32
    scf.if %2 {
      %cst_33 = arith.constant 0xFF800000 : f32
      %49 = vector.broadcast %cst_33 : f32 to vector<1x8x1xf32>
      %c0_34 = arith.constant 0 : index
      %c0_35 = arith.constant 0 : index
      %c0_36 = arith.constant 0 : index
      %50 = vector.load %arg8[%c0_34, %c0_35, %c0_36] : memref<1x8x1xf32, #tpu.memory_space<vmem>>, vector<1x8x1xf32>
      tpu.vector_store %arg8[%c0_34, %c0_35, %c0_36], %49 {strides = array<i32>} : memref<1x8x1xf32, #tpu.memory_space<vmem>>, vector<1x8x1xf32>,
      %cst_37 = arith.constant 0.000000e+00 : f32
      %51 = vector.broadcast %cst_37 : f32 to vector<1x8x1xf32>
      %c0_38 = arith.constant 0 : index
      %c0_39 = arith.constant 0 : index
      %c0_40 = arith.constant 0 : index
      %52 = vector.load %arg9[%c0_38, %c0_39, %c0_40] : memref<1x8x1xf32, #tpu.memory_space<vmem>>, vector<1x8x1xf32>
      tpu.vector_store %arg9[%c0_38, %c0_39, %c0_40], %51 {strides = array<i32>} : memref<1x8x1xf32, #tpu.memory_space<vmem>>, vector<1x8x1xf32>,
      %cst_41 = arith.constant 0.000000e+00 : f32
      %53 = vector.broadcast %cst_41 : f32 to vector<1x8x128xf32>
      %c0_42 = arith.constant 0 : index
      %c0_43 = arith.constant 0 : index
      %c0_44 = arith.constant 0 : index
      %54 = vector.load %arg10[%c0_42, %c0_43, %c0_44] : memref<1x8x128xf32, #tpu.memory_space<vmem>>, vector<1x8x128xf32>
      tpu.vector_store %arg10[%c0_42, %c0_43, %c0_44], %53 {strides = array<i32>} : memref<1x8x128xf32, #tpu.memory_space<vmem>>, vector<1x8x128xf32>,
    } else {
    }
    %c0 = arith.constant 0 : index
    %c0_1 = arith.constant 0 : index
    %c0_2 = arith.constant 0 : index
    %3 = vector.load %arg6[%c0, %c0_1, %c0_2] : memref<1x1x8xf32, #tpu.memory_space<vmem>>, vector<1x1x8xf32>
    %4 = vector.shape_cast %3 : vector<1x1x8xf32> to vector<1x8xf32>
    %5 = vector.shape_cast %4 : vector<1x8xf32> to vector<1x8xf32>
    %6 = vector.broadcast %5 : vector<1x8xf32> to vector<8x8xf32>
    %c0_3 = arith.constant 0 : index
    %c0_4 = arith.constant 0 : index
    %7 = vector.load %arg3[%c0_3, %c0_4] : memref<8x128xbf16, #tpu.memory_space<vmem>>, vector<8x128xbf16>
    %cst = arith.constant 8.837890e-02 : bf16
    %8 = vector.broadcast %cst : bf16 to vector<8x128xbf16>
    %9 = arith.mulf %7, %8 : vector<8x128xbf16>
    %c0_5 = arith.constant 0 : index
    %c0_6 = arith.constant 0 : index
    %10 = vector.load %arg4[%c0_5, %c0_6] : memref<8x128xbf16, #tpu.memory_space<vmem>>, vector<8x128xbf16>
    %c0_7 = arith.constant 0 : index
    %c0_8 = arith.constant 0 : index
    %11 = vector.load %arg5[%c0_7, %c0_8] : memref<8x128xbf16, #tpu.memory_space<vmem>>, vector<8x128xbf16>
    %cst_9 = arith.constant dense<0.000000e+00> : vector<8x8xf32>
    %12 = tpu.matmul %9, %10, %cst_9 {dimension_numbers = #tpu.dot_dimension_numbers<[1], [1], [0], [0], [0, 0, 1, 0], [], []>} : vector<8x128xbf16>, vector<8x128xbf16>, vector<8x8xf32> -> vector<8x8xf32>
    %13 = arith.addf %12, %6 : vector<8x8xf32>
    %c0_10 = arith.constant 0 : index
    %c0_11 = arith.constant 0 : index
    %c0_12 = arith.constant 0 : index
    %14 = vector.load %arg8[%c0_10, %c0_11, %c0_12] : memref<1x8x1xf32, #tpu.memory_space<vmem>>, vector<1x8x1xf32>
    %15 = vector.shape_cast %14 : vector<1x8x1xf32> to vector<8x1xf32>
    %cst_13 = arith.constant dense<0xFF800000> : vector<8xf32>
    %16 = vector.multi_reduction <maximumf>, %13, %cst_13 [1] : vector<8x8xf32> to vector<8xf32>
    %17 = vector.shape_cast %16 : vector<8xf32> to vector<8x1xf32>
    %18 = arith.maximumf %15, %17 : vector<8x1xf32>
    %19 = arith.subf %15, %18 : vector<8x1xf32>
    %20 = math.exp %19 : vector<8x1xf32>
    %21 = vector.broadcast %18 : vector<8x1xf32> to vector<8x8xf32>
    %22 = arith.subf %13, %21 : vector<8x8xf32>
    %23 = math.exp %22 : vector<8x8xf32>
    %c0_14 = arith.constant 0 : index
    %c0_15 = arith.constant 0 : index
    %c0_16 = arith.constant 0 : index
    %24 = vector.load %arg9[%c0_14, %c0_15, %c0_16] : memref<1x8x1xf32, #tpu.memory_space<vmem>>, vector<1x8x1xf32>
    %25 = vector.shape_cast %24 : vector<1x8x1xf32> to vector<8x1xf32>
    %26 = arith.mulf %20, %25 : vector<8x1xf32>
    %cst_17 = arith.constant dense<0.000000e+00> : vector<8xf32>
    %27 = vector.multi_reduction <add>, %23, %cst_17 [1] : vector<8x8xf32> to vector<8xf32>
    %28 = vector.shape_cast %27 : vector<8xf32> to vector<8x1xf32>
    %29 = arith.addf %26, %28 : vector<8x1xf32>
    %c0_18 = arith.constant 0 : index
    %c0_19 = arith.constant 0 : index
    %c0_20 = arith.constant 0 : index
    %30 = vector.load %arg9[%c0_18, %c0_19, %c0_20] : memref<1x8x1xf32, #tpu.memory_space<vmem>>, vector<1x8x1xf32>
    %31 = vector.shape_cast %30 : vector<1x8x1xf32> to vector<8x1xf32>
    %32 = vector.shape_cast %29 : vector<8x1xf32> to vector<1x8x1xf32>
    tpu.vector_store %arg9[%c0_18, %c0_19, %c0_20], %32 {strides = array<i32>} : memref<1x8x1xf32, #tpu.memory_space<vmem>>, vector<1x8x1xf32>,
    %c0_21 = arith.constant 0 : index
    %c0_22 = arith.constant 0 : index
    %c0_23 = arith.constant 0 : index
    %33 = vector.load %arg10[%c0_21, %c0_22, %c0_23] : memref<1x8x128xf32, #tpu.memory_space<vmem>>, vector<1x8x128xf32>
    %34 = vector.shape_cast %33 : vector<1x8x128xf32> to vector<8x128xf32>
    %35 = vector.broadcast %20 : vector<8x1xf32> to vector<8x128xf32>
    %36 = arith.mulf %35, %34 : vector<8x128xf32>
    %37 = arith.truncf %23 : vector<8x8xf32> to vector<8x8xbf16>
    %cst_24 = arith.constant dense<0.000000e+00> : vector<8x128xf32>
    %38 = tpu.matmul %37, %11, %cst_24 {dimension_numbers = #tpu.dot_dimension_numbers<[1], [0], [0], [1], [0, 0, 1, 1], [], []>} : vector<8x8xbf16>, vector<8x128xbf16>, vector<8x128xf32> -> vector<8x128xf32>
    %39 = arith.addf %36, %38 : vector<8x128xf32>
    %c0_25 = arith.constant 0 : index
    %c0_26 = arith.constant 0 : index
    %c0_27 = arith.constant 0 : index
    %40 = vector.load %arg10[%c0_25, %c0_26, %c0_27] : memref<1x8x128xf32, #tpu.memory_space<vmem>>, vector<1x8x128xf32>
    %41 = vector.shape_cast %40 : vector<1x8x128xf32> to vector<8x128xf32>
    %42 = vector.shape_cast %39 : vector<8x128xf32> to vector<1x8x128xf32>
    tpu.vector_store %arg10[%c0_25, %c0_26, %c0_27], %42 {strides = array<i32>} : memref<1x8x128xf32, #tpu.memory_space<vmem>>, vector<1x8x128xf32>,
    %c0_28 = arith.constant 0 : index
    %c0_29 = arith.constant 0 : index
    %c0_30 = arith.constant 0 : index
    %43 = vector.load %arg8[%c0_28, %c0_29, %c0_30] : memref<1x8x1xf32, #tpu.memory_space<vmem>>, vector<1x8x1xf32>
    %44 = vector.shape_cast %43 : vector<1x8x1xf32> to vector<8x1xf32>
    %45 = vector.shape_cast %18 : vector<8x1xf32> to vector<1x8x1xf32>
    tpu.vector_store %arg8[%c0_28, %c0_29, %c0_30], %45 {strides = array<i32>} : memref<1x8x1xf32, #tpu.memory_space<vmem>>, vector<1x8x1xf32>,
    %c0_i32_31 = arith.constant 0 : i32
    %46 = arith.cmpi eq, %arg2, %c0_i32_31 : i32
    %47 = arith.extui %46 : i1 to i32
    %c0_i32_32 = arith.constant 0 : i32
    %48 = arith.cmpi ne, %47, %c0_i32_32 : i32
    scf.if %48 {
      %c0_33 = arith.constant 0 : index
      %c0_34 = arith.constant 0 : index
      %c0_35 = arith.constant 0 : index
      %49 = vector.load %arg10[%c0_33, %c0_34, %c0_35] : memref<1x8x128xf32, #tpu.memory_space<vmem>>, vector<1x8x128xf32>
      %50 = vector.shape_cast %49 : vector<1x8x128xf32> to vector<8x128xf32>
      %c0_36 = arith.constant 0 : index
      %c0_37 = arith.constant 0 : index
      %c0_38 = arith.constant 0 : index
      %51 = vector.load %arg9[%c0_36, %c0_37, %c0_38] : memref<1x8x1xf32, #tpu.memory_space<vmem>>, vector<1x8x1xf32>
      %52 = vector.shape_cast %51 : vector<1x8x1xf32> to vector<8x1xf32>
      %53 = vector.broadcast %52 : vector<8x1xf32> to vector<8x128xf32>
      %54 = arith.divf %50, %53 : vector<8x128xf32>
      %55 = arith.truncf %54 : vector<8x128xf32> to vector<8x128xbf16>
      %c0_39 = arith.constant 0 : index
      %c0_40 = arith.constant 0 : index
      %56 = vector.load %arg7[%c0_39, %c0_40] : memref<8x128xbf16, #tpu.memory_space<vmem>>, vector<8x128xbf16>
      tpu.vector_store %arg7[%c0_39, %c0_40], %55 {strides = array<i32>} : memref<8x128xbf16, #tpu.memory_space<vmem>>, vector<8x128xbf16>,
    } else {
    }
    return
  }
  func.func @transform_0(%arg0: i32, %arg1: i32, %arg2: i32) -> (i32, i32) {
    %c0_i32 = arith.constant 0 : i32
    return %arg0, %arg1 : i32, i32
  }
  func.func @transform_1(%arg0: i32, %arg1: i32, %arg2: i32) -> (i32, i32) {
    %c1_i32 = arith.constant 1 : i32
    %0 = arith.muli %arg0, %c1_i32 : i32
    %1 = arith.addi %0, %arg2 : i32
    %c2_i32 = arith.constant 2 : i32
    %2 = arith.addi %c2_i32, %arg1 : i32
    %c0_i32 = arith.constant 0 : i32
    return %1, %2 : i32, i32
  }
  func.func @transform_2(%arg0: i32, %arg1: i32, %arg2: i32) -> (i32, i32) {
    %c1_i32 = arith.constant 1 : i32
    %0 = arith.muli %arg0, %c1_i32 : i32
    %1 = arith.addi %0, %arg2 : i32
    %c4_i32 = arith.constant 4 : i32
    %2 = arith.addi %c4_i32, %arg1 : i32
    %c0_i32 = arith.constant 0 : i32
    return %1, %2 : i32, i32
  }
  func.func @transform_3(%arg0: i32, %arg1: i32, %arg2: i32) -> (i32, i32, i32) {
    %c0_i32 = arith.constant 0 : i32
    %c0_i32_0 = arith.constant 0 : i32
    return %arg0, %c0_i32, %arg2 : i32, i32, i32
  }
  func.func @transform_4(%arg0: i32, %arg1: i32, %arg2: i32) -> (i32, i32) {
    %c0_i32 = arith.constant 0 : i32
    return %arg0, %arg1 : i32, i32
  }
}

module attributes {stable_mosaic.version = 11 : i64} {
  func.func @_matmul_bias_kernel(%arg0: i32, %arg1: i32, %arg2: i32, %arg3: memref<8x256xbf16, #tpu.memory_space<vmem>>, %arg4: memref<256x512xbf16, #tpu.memory_space<vmem>>, %arg5: memref<1x512xf32, #tpu.memory_space<vmem>>, %arg6: memref<8x512xbf16, #tpu.memory_space<vmem>>, %arg7: memref<8x512xf32, #tpu.memory_space<vmem>>) attributes {dimension_semantics = [#tpu.dimension_semantics<parallel>, #tpu.dimension_semantics<parallel>, #tpu.dimension_semantics<arbitrary>], iteration_bounds = array<i64: 2, 1, 1>, scalar_prefetch = 0 : i64, scratch_operands = 1 : i64, tpu.core_type = #tpu.core_type<tc>, window_params = [{transform_indices = @transform_0, window_bounds = array<i64: 8, 256>}, {transform_indices = @transform_1, window_bounds = array<i64: 256, 512>}, {transform_indices = @transform_2, window_bounds = array<i64: 1, 512>}, {transform_indices = @transform_3, window_bounds = array<i64: 8, 512>}]} {
    %c0_i32 = arith.constant 0 : i32
    %0 = arith.cmpi eq, %arg2, %c0_i32 : i32
    %1 = arith.extui %0 : i1 to i32
    %c0_i32_0 = arith.constant 0 : i32
    %2 = arith.cmpi ne, %1, %c0_i32_0 : i32
    scf.if %2 {
      %cst_10 = arith.constant 0.000000e+00 : f32
      %12 = vector.broadcast %cst_10 : f32 to vector<8x512xf32>
      %c0_11 = arith.constant 0 : index
      %c0_12 = arith.constant 0 : index
      %13 = vector.load %arg7[%c0_11, %c0_12] : memref<8x512xf32, #tpu.memory_space<vmem>>, vector<8x512xf32>
      tpu.vector_store %arg7[%c0_11, %c0_12], %12 {strides = array<i32>} : memref<8x512xf32, #tpu.memory_space<vmem>>, vector<8x512xf32>,
    } else {
    }
    %c0 = arith.constant 0 : index
    %c0_1 = arith.constant 0 : index
    %3 = vector.load %arg7[%c0, %c0_1] : memref<8x512xf32, #tpu.memory_space<vmem>>, vector<8x512xf32>
    %c0_2 = arith.constant 0 : index
    %c0_3 = arith.constant 0 : index
    %4 = vector.load %arg3[%c0_2, %c0_3] : memref<8x256xbf16, #tpu.memory_space<vmem>>, vector<8x256xbf16>
    %c0_4 = arith.constant 0 : index
    %c0_5 = arith.constant 0 : index
    %5 = vector.load %arg4[%c0_4, %c0_5] : memref<256x512xbf16, #tpu.memory_space<vmem>>, vector<256x512xbf16>
    %cst = arith.constant dense<0.000000e+00> : vector<8x512xf32>
    %6 = tpu.matmul %4, %5, %cst {dimension_numbers = #tpu.dot_dimension_numbers<[1], [0], [0], [1], [0, 0, 1, 1], [], []>} : vector<8x256xbf16>, vector<256x512xbf16>, vector<8x512xf32> -> vector<8x512xf32>
    %7 = arith.addf %3, %6 : vector<8x512xf32>
    %c0_6 = arith.constant 0 : index
    %c0_7 = arith.constant 0 : index
    %8 = vector.load %arg7[%c0_6, %c0_7] : memref<8x512xf32, #tpu.memory_space<vmem>>, vector<8x512xf32>
    tpu.vector_store %arg7[%c0_6, %c0_7], %7 {strides = array<i32>} : memref<8x512xf32, #tpu.memory_space<vmem>>, vector<8x512xf32>,
    %c0_i32_8 = arith.constant 0 : i32
    %9 = arith.cmpi eq, %arg2, %c0_i32_8 : i32
    %10 = arith.extui %9 : i1 to i32
    %c0_i32_9 = arith.constant 0 : i32
    %11 = arith.cmpi ne, %10, %c0_i32_9 : i32
    scf.if %11 {
      %c0_10 = arith.constant 0 : index
      %c0_11 = arith.constant 0 : index
      %12 = vector.load %arg7[%c0_10, %c0_11] : memref<8x512xf32, #tpu.memory_space<vmem>>, vector<8x512xf32>
      %c0_12 = arith.constant 0 : index
      %c0_13 = arith.constant 0 : index
      %13 = vector.load %arg5[%c0_12, %c0_13] : memref<1x512xf32, #tpu.memory_space<vmem>>, vector<1x512xf32>
      %14 = vector.broadcast %13 : vector<1x512xf32> to vector<8x512xf32>
      %15 = arith.addf %12, %14 : vector<8x512xf32>
      %cst_14 = arith.constant 5.000000e-01 : f32
      %16 = vector.broadcast %cst_14 : f32 to vector<8x512xf32>
      %17 = arith.mulf %16, %15 : vector<8x512xf32>
      %cst_15 = arith.constant 4.471500e-02 : f32
      %18 = vector.broadcast %cst_15 : f32 to vector<8x512xf32>
      %19 = arith.mulf %18, %15 : vector<8x512xf32>
      %20 = arith.mulf %19, %15 : vector<8x512xf32>
      %21 = arith.mulf %20, %15 : vector<8x512xf32>
      %22 = arith.addf %15, %21 : vector<8x512xf32>
      %cst_16 = arith.constant 0.797884583 : f32
      %23 = vector.broadcast %cst_16 : f32 to vector<8x512xf32>
      %24 = arith.mulf %23, %22 : vector<8x512xf32>
      %25 = math.tanh %24 : vector<8x512xf32>
      %cst_17 = arith.constant 1.000000e+00 : f32
      %26 = vector.broadcast %cst_17 : f32 to vector<8x512xf32>
      %27 = arith.addf %26, %25 : vector<8x512xf32>
      %28 = arith.mulf %17, %27 : vector<8x512xf32>
      %29 = arith.truncf %28 : vector<8x512xf32> to vector<8x512xbf16>
      %c0_18 = arith.constant 0 : index
      %c0_19 = arith.constant 0 : index
      %30 = vector.load %arg6[%c0_18, %c0_19] : memref<8x512xbf16, #tpu.memory_space<vmem>>, vector<8x512xbf16>
      tpu.vector_store %arg6[%c0_18, %c0_19], %29 {strides = array<i32>} : memref<8x512xbf16, #tpu.memory_space<vmem>>, vector<8x512xbf16>,
    } else {
    }
    return
  }
  func.func @transform_0(%arg0: i32, %arg1: i32, %arg2: i32) -> (i32, i32) {
    %c0_i32 = arith.constant 0 : i32
    return %arg0, %arg2 : i32, i32
  }
  func.func @transform_1(%arg0: i32, %arg1: i32, %arg2: i32) -> (i32, i32) {
    %c0_i32 = arith.constant 0 : i32
    return %arg2, %arg1 : i32, i32
  }
  func.func @transform_2(%arg0: i32, %arg1: i32, %arg2: i32) -> (i32, i32) {
    %c0_i32 = arith.constant 0 : i32
    %c0_i32_0 = arith.constant 0 : i32
    return %c0_i32, %arg1 : i32, i32
  }
  func.func @transform_3(%arg0: i32, %arg1: i32, %arg2: i32) -> (i32, i32) {
    %c0_i32 = arith.constant 0 : i32
    return %arg0, %arg1 : i32, i32
  }
}

module attributes {stable_mosaic.version = 11 : i64} {
  func.func @_matmul_res_ln_kernel(%arg0: i32, %arg1: i32, %arg2: memref<8x512xbf16, #tpu.memory_space<vmem>>, %arg3: memref<512x256xbf16, #tpu.memory_space<vmem>>, %arg4: memref<1x256xf32, #tpu.memory_space<vmem>>, %arg5: memref<8x256xbf16, #tpu.memory_space<vmem>>, %arg6: memref<1x256xf32, #tpu.memory_space<vmem>>, %arg7: memref<1x256xf32, #tpu.memory_space<vmem>>, %arg8: memref<8x256xbf16, #tpu.memory_space<vmem>>, %arg9: memref<8x256xf32, #tpu.memory_space<vmem>>) attributes {dimension_semantics = [#tpu.dimension_semantics<parallel>, #tpu.dimension_semantics<arbitrary>], iteration_bounds = array<i64: 2, 1>, scalar_prefetch = 0 : i64, scratch_operands = 1 : i64, tpu.core_type = #tpu.core_type<tc>, window_params = [{transform_indices = @transform_0, window_bounds = array<i64: 8, 512>}, {transform_indices = @transform_1, window_bounds = array<i64: 512, 256>}, {pipeline_mode = #tpu.pipeline_mode<synchronous>, transform_indices = @transform_2, window_bounds = array<i64: 1, 256>}, {transform_indices = @transform_3, window_bounds = array<i64: 8, 256>}, {pipeline_mode = #tpu.pipeline_mode<synchronous>, transform_indices = @transform_4, window_bounds = array<i64: 1, 256>}, {pipeline_mode = #tpu.pipeline_mode<synchronous>, transform_indices = @transform_5, window_bounds = array<i64: 1, 256>}, {transform_indices = @transform_6, window_bounds = array<i64: 8, 256>}]} {
    %c0_i32 = arith.constant 0 : i32
    %0 = arith.cmpi eq, %arg1, %c0_i32 : i32
    %1 = arith.extui %0 : i1 to i32
    %c0_i32_0 = arith.constant 0 : i32
    %2 = arith.cmpi ne, %1, %c0_i32_0 : i32
    scf.if %2 {
      %cst_10 = arith.constant 0.000000e+00 : f32
      %12 = vector.broadcast %cst_10 : f32 to vector<8x256xf32>
      %c0_11 = arith.constant 0 : index
      %c0_12 = arith.constant 0 : index
      %13 = vector.load %arg9[%c0_11, %c0_12] : memref<8x256xf32, #tpu.memory_space<vmem>>, vector<8x256xf32>
      tpu.vector_store %arg9[%c0_11, %c0_12], %12 {strides = array<i32>} : memref<8x256xf32, #tpu.memory_space<vmem>>, vector<8x256xf32>,
    } else {
    }
    %c0 = arith.constant 0 : index
    %c0_1 = arith.constant 0 : index
    %3 = vector.load %arg9[%c0, %c0_1] : memref<8x256xf32, #tpu.memory_space<vmem>>, vector<8x256xf32>
    %c0_2 = arith.constant 0 : index
    %c0_3 = arith.constant 0 : index
    %4 = vector.load %arg2[%c0_2, %c0_3] : memref<8x512xbf16, #tpu.memory_space<vmem>>, vector<8x512xbf16>
    %c0_4 = arith.constant 0 : index
    %c0_5 = arith.constant 0 : index
    %5 = vector.load %arg3[%c0_4, %c0_5] : memref<512x256xbf16, #tpu.memory_space<vmem>>, vector<512x256xbf16>
    %cst = arith.constant dense<0.000000e+00> : vector<8x256xf32>
    %6 = tpu.matmul %4, %5, %cst {dimension_numbers = #tpu.dot_dimension_numbers<[1], [0], [0], [1], [0, 0, 1, 1], [], []>} : vector<8x512xbf16>, vector<512x256xbf16>, vector<8x256xf32> -> vector<8x256xf32>
    %7 = arith.addf %3, %6 : vector<8x256xf32>
    %c0_6 = arith.constant 0 : index
    %c0_7 = arith.constant 0 : index
    %8 = vector.load %arg9[%c0_6, %c0_7] : memref<8x256xf32, #tpu.memory_space<vmem>>, vector<8x256xf32>
    tpu.vector_store %arg9[%c0_6, %c0_7], %7 {strides = array<i32>} : memref<8x256xf32, #tpu.memory_space<vmem>>, vector<8x256xf32>,
    %c0_i32_8 = arith.constant 0 : i32
    %9 = arith.cmpi eq, %arg1, %c0_i32_8 : i32
    %10 = arith.extui %9 : i1 to i32
    %c0_i32_9 = arith.constant 0 : i32
    %11 = arith.cmpi ne, %10, %c0_i32_9 : i32
    scf.if %11 {
      %c0_10 = arith.constant 0 : index
      %c0_11 = arith.constant 0 : index
      %12 = vector.load %arg9[%c0_10, %c0_11] : memref<8x256xf32, #tpu.memory_space<vmem>>, vector<8x256xf32>
      %c0_12 = arith.constant 0 : index
      %c0_13 = arith.constant 0 : index
      %13 = vector.load %arg4[%c0_12, %c0_13] : memref<1x256xf32, #tpu.memory_space<vmem>>, vector<1x256xf32>
      %14 = vector.broadcast %13 : vector<1x256xf32> to vector<8x256xf32>
      %15 = arith.addf %12, %14 : vector<8x256xf32>
      %c0_14 = arith.constant 0 : index
      %c0_15 = arith.constant 0 : index
      %16 = vector.load %arg5[%c0_14, %c0_15] : memref<8x256xbf16, #tpu.memory_space<vmem>>, vector<8x256xbf16>
      %17 = arith.extf %16 : vector<8x256xbf16> to vector<8x256xf32>
      %18 = arith.addf %15, %17 : vector<8x256xf32>
      %cst_16 = arith.constant dense<0.000000e+00> : vector<8xf32>
      %19 = vector.multi_reduction <add>, %18, %cst_16 [1] : vector<8x256xf32> to vector<8xf32>
      %20 = vector.shape_cast %19 : vector<8xf32> to vector<8x1xf32>
      %cst_17 = arith.constant 2.560000e+02 : f32
      %21 = vector.broadcast %cst_17 : f32 to vector<8x1xf32>
      %22 = arith.divf %20, %21 : vector<8x1xf32>
      %23 = vector.broadcast %22 : vector<8x1xf32> to vector<8x256xf32>
      %24 = arith.subf %18, %23 : vector<8x256xf32>
      %25 = arith.mulf %24, %24 : vector<8x256xf32>
      %cst_18 = arith.constant dense<0.000000e+00> : vector<8xf32>
      %26 = vector.multi_reduction <add>, %25, %cst_18 [1] : vector<8x256xf32> to vector<8xf32>
      %27 = vector.shape_cast %26 : vector<8xf32> to vector<8x1xf32>
      %cst_19 = arith.constant 2.560000e+02 : f32
      %28 = vector.broadcast %cst_19 : f32 to vector<8x1xf32>
      %29 = arith.divf %27, %28 : vector<8x1xf32>
      %30 = vector.broadcast %22 : vector<8x1xf32> to vector<8x256xf32>
      %31 = arith.subf %18, %30 : vector<8x256xf32>
      %cst_20 = arith.constant 9.99999996E-13 : f32
      %32 = vector.broadcast %cst_20 : f32 to vector<8x1xf32>
      %33 = arith.addf %29, %32 : vector<8x1xf32>
      %34 = math.rsqrt %33 : vector<8x1xf32>
      %35 = vector.broadcast %34 : vector<8x1xf32> to vector<8x256xf32>
      %36 = arith.mulf %31, %35 : vector<8x256xf32>
      %c0_21 = arith.constant 0 : index
      %c0_22 = arith.constant 0 : index
      %37 = vector.load %arg6[%c0_21, %c0_22] : memref<1x256xf32, #tpu.memory_space<vmem>>, vector<1x256xf32>
      %38 = vector.broadcast %37 : vector<1x256xf32> to vector<8x256xf32>
      %39 = arith.mulf %36, %38 : vector<8x256xf32>
      %c0_23 = arith.constant 0 : index
      %c0_24 = arith.constant 0 : index
      %40 = vector.load %arg7[%c0_23, %c0_24] : memref<1x256xf32, #tpu.memory_space<vmem>>, vector<1x256xf32>
      %41 = vector.broadcast %40 : vector<1x256xf32> to vector<8x256xf32>
      %42 = arith.addf %39, %41 : vector<8x256xf32>
      %43 = arith.truncf %42 : vector<8x256xf32> to vector<8x256xbf16>
      %c0_25 = arith.constant 0 : index
      %c0_26 = arith.constant 0 : index
      %44 = vector.load %arg8[%c0_25, %c0_26] : memref<8x256xbf16, #tpu.memory_space<vmem>>, vector<8x256xbf16>
      tpu.vector_store %arg8[%c0_25, %c0_26], %43 {strides = array<i32>} : memref<8x256xbf16, #tpu.memory_space<vmem>>, vector<8x256xbf16>,
    } else {
    }
    return
  }
  func.func @transform_0(%arg0: i32, %arg1: i32) -> (i32, i32) {
    %c0_i32 = arith.constant 0 : i32
    return %arg0, %arg1 : i32, i32
  }
  func.func @transform_1(%arg0: i32, %arg1: i32) -> (i32, i32) {
    %c0_i32 = arith.constant 0 : i32
    %c0_i32_0 = arith.constant 0 : i32
    return %arg1, %c0_i32 : i32, i32
  }
  func.func @transform_2(%arg0: i32, %arg1: i32) -> (i32, i32) {
    %c0_i32 = arith.constant 0 : i32
    %c0_i32_0 = arith.constant 0 : i32
    %c0_i32_1 = arith.constant 0 : i32
    return %c0_i32, %c0_i32_0 : i32, i32
  }
  func.func @transform_3(%arg0: i32, %arg1: i32) -> (i32, i32) {
    %c0_i32 = arith.constant 0 : i32
    %c0_i32_0 = arith.constant 0 : i32
    return %arg0, %c0_i32 : i32, i32
  }
  func.func @transform_4(%arg0: i32, %arg1: i32) -> (i32, i32) {
    %c0_i32 = arith.constant 0 : i32
    %c0_i32_0 = arith.constant 0 : i32
    %c0_i32_1 = arith.constant 0 : i32
    return %c0_i32, %c0_i32_0 : i32, i32
  }
  func.func @transform_5(%arg0: i32, %arg1: i32) -> (i32, i32) {
    %c0_i32 = arith.constant 0 : i32
    %c0_i32_0 = arith.constant 0 : i32
    %c0_i32_1 = arith.constant 0 : i32
    return %c0_i32, %c0_i32_0 : i32, i32
  }
  func.func @transform_6(%arg0: i32, %arg1: i32) -> (i32, i32) {
    %c0_i32 = arith.constant 0 : i32
    %c0_i32_0 = arith.constant 0 : i32
    return %arg0, %c0_i32 : i32, i32
  }
}

module attributes {stable_mosaic.version = 11 : i64} {
  func.func @_matmul_bias_kernel(%arg0: i32, %arg1: i32, %arg2: i32, %arg3: memref<8x256xbf16, #tpu.memory_space<vmem>>, %arg4: memref<256x768xbf16, #tpu.memory_space<vmem>>, %arg5: memref<1x768xf32, #tpu.memory_space<vmem>>, %arg6: memref<8x768xbf16, #tpu.memory_space<vmem>>, %arg7: memref<8x768xf32, #tpu.memory_space<vmem>>) attributes {dimension_semantics = [#tpu.dimension_semantics<parallel>, #tpu.dimension_semantics<parallel>, #tpu.dimension_semantics<arbitrary>], iteration_bounds = array<i64: 2, 1, 1>, scalar_prefetch = 0 : i64, scratch_operands = 1 : i64, tpu.core_type = #tpu.core_type<tc>, window_params = [{transform_indices = @transform_0, window_bounds = array<i64: 8, 256>}, {transform_indices = @transform_1, window_bounds = array<i64: 256, 768>}, {transform_indices = @transform_2, window_bounds = array<i64: 1, 768>}, {transform_indices = @transform_3, window_bounds = array<i64: 8, 768>}]} {
    %c0_i32 = arith.constant 0 : i32
    %0 = arith.cmpi eq, %arg2, %c0_i32 : i32
    %1 = arith.extui %0 : i1 to i32
    %c0_i32_0 = arith.constant 0 : i32
    %2 = arith.cmpi ne, %1, %c0_i32_0 : i32
    scf.if %2 {
      %cst_10 = arith.constant 0.000000e+00 : f32
      %12 = vector.broadcast %cst_10 : f32 to vector<8x768xf32>
      %c0_11 = arith.constant 0 : index
      %c0_12 = arith.constant 0 : index
      %13 = vector.load %arg7[%c0_11, %c0_12] : memref<8x768xf32, #tpu.memory_space<vmem>>, vector<8x768xf32>
      tpu.vector_store %arg7[%c0_11, %c0_12], %12 {strides = array<i32>} : memref<8x768xf32, #tpu.memory_space<vmem>>, vector<8x768xf32>,
    } else {
    }
    %c0 = arith.constant 0 : index
    %c0_1 = arith.constant 0 : index
    %3 = vector.load %arg7[%c0, %c0_1] : memref<8x768xf32, #tpu.memory_space<vmem>>, vector<8x768xf32>
    %c0_2 = arith.constant 0 : index
    %c0_3 = arith.constant 0 : index
    %4 = vector.load %arg3[%c0_2, %c0_3] : memref<8x256xbf16, #tpu.memory_space<vmem>>, vector<8x256xbf16>
    %c0_4 = arith.constant 0 : index
    %c0_5 = arith.constant 0 : index
    %5 = vector.load %arg4[%c0_4, %c0_5] : memref<256x768xbf16, #tpu.memory_space<vmem>>, vector<256x768xbf16>
    %cst = arith.constant dense<0.000000e+00> : vector<8x768xf32>
    %6 = tpu.matmul %4, %5, %cst {dimension_numbers = #tpu.dot_dimension_numbers<[1], [0], [0], [1], [0, 0, 1, 1], [], []>} : vector<8x256xbf16>, vector<256x768xbf16>, vector<8x768xf32> -> vector<8x768xf32>
    %7 = arith.addf %3, %6 : vector<8x768xf32>
    %c0_6 = arith.constant 0 : index
    %c0_7 = arith.constant 0 : index
    %8 = vector.load %arg7[%c0_6, %c0_7] : memref<8x768xf32, #tpu.memory_space<vmem>>, vector<8x768xf32>
    tpu.vector_store %arg7[%c0_6, %c0_7], %7 {strides = array<i32>} : memref<8x768xf32, #tpu.memory_space<vmem>>, vector<8x768xf32>,
    %c0_i32_8 = arith.constant 0 : i32
    %9 = arith.cmpi eq, %arg2, %c0_i32_8 : i32
    %10 = arith.extui %9 : i1 to i32
    %c0_i32_9 = arith.constant 0 : i32
    %11 = arith.cmpi ne, %10, %c0_i32_9 : i32
    scf.if %11 {
      %c0_10 = arith.constant 0 : index
      %c0_11 = arith.constant 0 : index
      %12 = vector.load %arg7[%c0_10, %c0_11] : memref<8x768xf32, #tpu.memory_space<vmem>>, vector<8x768xf32>
      %c0_12 = arith.constant 0 : index
      %c0_13 = arith.constant 0 : index
      %13 = vector.load %arg5[%c0_12, %c0_13] : memref<1x768xf32, #tpu.memory_space<vmem>>, vector<1x768xf32>
      %14 = vector.broadcast %13 : vector<1x768xf32> to vector<8x768xf32>
      %15 = arith.addf %12, %14 : vector<8x768xf32>
      %16 = arith.truncf %15 : vector<8x768xf32> to vector<8x768xbf16>
      %c0_14 = arith.constant 0 : index
      %c0_15 = arith.constant 0 : index
      %17 = vector.load %arg6[%c0_14, %c0_15] : memref<8x768xbf16, #tpu.memory_space<vmem>>, vector<8x768xbf16>
      tpu.vector_store %arg6[%c0_14, %c0_15], %16 {strides = array<i32>} : memref<8x768xbf16, #tpu.memory_space<vmem>>, vector<8x768xbf16>,
    } else {
    }
    return
  }
  func.func @transform_0(%arg0: i32, %arg1: i32, %arg2: i32) -> (i32, i32) {
    %c0_i32 = arith.constant 0 : i32
    return %arg0, %arg2 : i32, i32
  }
  func.func @transform_1(%arg0: i32, %arg1: i32, %arg2: i32) -> (i32, i32) {
    %c0_i32 = arith.constant 0 : i32
    return %arg2, %arg1 : i32, i32
  }
  func.func @transform_2(%arg0: i32, %arg1: i32, %arg2: i32) -> (i32, i32) {
    %c0_i32 = arith.constant 0 : i32
    %c0_i32_0 = arith.constant 0 : i32
    return %c0_i32, %arg1 : i32, i32
  }
  func.func @transform_3(%arg0: i32, %arg1: i32, %arg2: i32) -> (i32, i32) {
    %c0_i32 = arith.constant 0 : i32
    return %arg0, %arg1 : i32, i32
  }
}

module attributes {stable_mosaic.version = 11 : i64} {
  func.func @_mlp_head_kernel(%arg0: i32, %arg1: memref<2x256xbf16, #tpu.memory_space<vmem>>, %arg2: memref<256x256xbf16, #tpu.memory_space<vmem>>, %arg3: memref<1x256xf32, #tpu.memory_space<vmem>>, %arg4: memref<256x4xbf16, #tpu.memory_space<vmem>>, %arg5: memref<1x4xf32, #tpu.memory_space<vmem>>, %arg6: memref<2x4xf32, #tpu.memory_space<vmem>>) attributes {dimension_semantics = [#tpu.dimension_semantics<arbitrary>], iteration_bounds = array<i64: 1>, scalar_prefetch = 0 : i64, scratch_operands = 0 : i64, tpu.core_type = #tpu.core_type<tc>, window_params = [{pipeline_mode = #tpu.pipeline_mode<synchronous>, transform_indices = @transform_0, window_bounds = array<i64: 2, 256>}, {pipeline_mode = #tpu.pipeline_mode<synchronous>, transform_indices = @transform_1, window_bounds = array<i64: 256, 256>}, {pipeline_mode = #tpu.pipeline_mode<synchronous>, transform_indices = @transform_2, window_bounds = array<i64: 1, 256>}, {pipeline_mode = #tpu.pipeline_mode<synchronous>, transform_indices = @transform_3, window_bounds = array<i64: 256, 4>}, {pipeline_mode = #tpu.pipeline_mode<synchronous>, transform_indices = @transform_4, window_bounds = array<i64: 1, 4>}, {pipeline_mode = #tpu.pipeline_mode<synchronous>, transform_indices = @transform_5, window_bounds = array<i64: 2, 4>}]} {
    %c0 = arith.constant 0 : index
    %c0_0 = arith.constant 0 : index
    %0 = vector.load %arg1[%c0, %c0_0] : memref<2x256xbf16, #tpu.memory_space<vmem>>, vector<2x256xbf16>
    %c0_1 = arith.constant 0 : index
    %c0_2 = arith.constant 0 : index
    %1 = vector.load %arg2[%c0_1, %c0_2] : memref<256x256xbf16, #tpu.memory_space<vmem>>, vector<256x256xbf16>
    %cst = arith.constant dense<0.000000e+00> : vector<2x256xf32>
    %2 = tpu.matmul %0, %1, %cst {dimension_numbers = #tpu.dot_dimension_numbers<[1], [0], [0], [1], [0, 0, 1, 1], [], []>} : vector<2x256xbf16>, vector<256x256xbf16>, vector<2x256xf32> -> vector<2x256xf32>
    %c0_3 = arith.constant 0 : index
    %c0_4 = arith.constant 0 : index
    %3 = vector.load %arg3[%c0_3, %c0_4] : memref<1x256xf32, #tpu.memory_space<vmem>>, vector<1x256xf32>
    %4 = vector.broadcast %3 : vector<1x256xf32> to vector<2x256xf32>
    %5 = arith.addf %2, %4 : vector<2x256xf32>
    %6 = math.tanh %5 : vector<2x256xf32>
    %7 = arith.truncf %6 : vector<2x256xf32> to vector<2x256xbf16>
    %c0_5 = arith.constant 0 : index
    %c0_6 = arith.constant 0 : index
    %8 = vector.load %arg4[%c0_5, %c0_6] : memref<256x4xbf16, #tpu.memory_space<vmem>>, vector<256x4xbf16>
    %cst_7 = arith.constant dense<0.000000e+00> : vector<2x4xf32>
    %9 = tpu.matmul %7, %8, %cst_7 {dimension_numbers = #tpu.dot_dimension_numbers<[1], [0], [0], [1], [0, 0, 1, 1], [], []>} : vector<2x256xbf16>, vector<256x4xbf16>, vector<2x4xf32> -> vector<2x4xf32>
    %c0_8 = arith.constant 0 : index
    %c0_9 = arith.constant 0 : index
    %10 = vector.load %arg5[%c0_8, %c0_9] : memref<1x4xf32, #tpu.memory_space<vmem>>, vector<1x4xf32>
    %11 = vector.broadcast %10 : vector<1x4xf32> to vector<2x4xf32>
    %12 = arith.addf %9, %11 : vector<2x4xf32>
    %c0_10 = arith.constant 0 : index
    %c0_11 = arith.constant 0 : index
    %13 = vector.load %arg6[%c0_10, %c0_11] : memref<2x4xf32, #tpu.memory_space<vmem>>, vector<2x4xf32>
    tpu.vector_store %arg6[%c0_10, %c0_11], %12 {strides = array<i32>} : memref<2x4xf32, #tpu.memory_space<vmem>>, vector<2x4xf32>,
    return
  }
  func.func @transform_0(%arg0: i32) -> (i32, i32) {
    %c0_i32 = arith.constant 0 : i32
    %c0_i32_0 = arith.constant 0 : i32
    %c0_i32_1 = arith.constant 0 : i32
    return %c0_i32, %c0_i32_0 : i32, i32
  }
  func.func @transform_1(%arg0: i32) -> (i32, i32) {
    %c0_i32 = arith.constant 0 : i32
    %c0_i32_0 = arith.constant 0 : i32
    %c0_i32_1 = arith.constant 0 : i32
    return %c0_i32, %c0_i32_0 : i32, i32
  }
  func.func @transform_2(%arg0: i32) -> (i32, i32) {
    %c0_i32 = arith.constant 0 : i32
    %c0_i32_0 = arith.constant 0 : i32
    %c0_i32_1 = arith.constant 0 : i32
    return %c0_i32, %c0_i32_0 : i32, i32
  }
  func.func @transform_3(%arg0: i32) -> (i32, i32) {
    %c0_i32 = arith.constant 0 : i32
    %c0_i32_0 = arith.constant 0 : i32
    %c0_i32_1 = arith.constant 0 : i32
    return %c0_i32, %c0_i32_0 : i32, i32
  }
  func.func @transform_4(%arg0: i32) -> (i32, i32) {
    %c0_i32 = arith.constant 0 : i32
    %c0_i32_0 = arith.constant 0 : i32
    %c0_i32_1 = arith.constant 0 : i32
    return %c0_i32, %c0_i32_0 : i32, i32
  }
  func.func @transform_5(%arg0: i32) -> (i32, i32) {
    %c0_i32 = arith.constant 0 : i32
    %c0_i32_0 = arith.constant 0 : i32
    %c0_i32_1 = arith.constant 0 : i32
    return %c0_i32, %c0_i32_0 : i32, i32
  }
}

</mosaic_0001>

<bundles_post_ra>
// kernel: bert4classify_forward.12
= control target key start
LH: loop header
LB: loop body
LE: loop exit
PB: predicated region body
PF: predicated region fallthrough
CT: control target
= control target key end

     0   :  { %s335_s12 = smov 0   ;;  %s362_s0 = inlined_call_operand.vmem [shape: f32[16,256], index: 0, kind: input, shape index: {}]   ;;  %s363_s1 = inlined_call_operand.vmem [shape: f32[1,256], index: 1, kind: input, shape index: {}]   ;;  %s364_s2 = inlined_call_operand.vmem [shape: f32[1,256], index: 2, kind: input, shape index: {}]   ;;  %s365_s3 = inlined_call_operand.vmem [shape: bf16[16,256], index: 3, kind: output, shape index: {}]  }
   0x1 LB: > { %s282_s13 = sadd.s32 4294967295, %s313_s12   ;;  %p286_p0 = scmp.ge.s32.totalorder %s313_s12, 1  ;;  %s313_s12 = sphi %s335_s12, %s13_s12  }
   0x2   : > { %p137_p1 = scmp.lt.s32.totalorder %s313_s12, 3 }
   0x4   : > { %p138_p2 = pnand %p286_p0, %p137_p1 }
   0x5   : > { %p161_p3 = scmp.lt.s32.totalorder (!%p138_p2), %s282_s13, 1  ;;  %v192_v12 = vlaneseq (!%p138_p2)  ;;  %v190_v17 = vld [vmem:[%s363_s1] sm:$0x3] (!%p138_p2) }
   0x6   : > { %141 = sbr.rel (%p138_p2) target bundleno = 335 (0x14f), region = 32  ;;  %v204_v18 = vld [vmem:[%s364_s2] sm:$0x3] (!%p138_p2) }
   0x7   : > { %v193_v14 = vshrl.u32 (!%p138_p2), %v192_v12, 7 }
   0x9   : > { %v194_v15 = vsub.s32 (!%p138_p2), 0, %v193_v14  ;;  %v198_v16 = vsub.s32 (!%p138_p2), 1, %v193_v14 }
   0xb   : > { %v195_v19 = vrot.slane (!%p138_p2), %v190_v17, %v194_v15  ;;  %v199_v20 = vrot.slane (!%p138_p2), %v190_v17, %v198_v16  ;;  %v209_v22 = vrot.slane (!%p138_p2), %v204_v18, %v194_v15  ;;  %v213_v23 = vrot.slane (!%p138_p2), %v204_v18, %v198_v16 }
   0xd   : > { %s367_s13 = smov (!%p161_p3, %s282_s13), 1 }
   0xe   : > { %s294_s14 = sshll.u32 %s367_s13, 4  ;;  %s295_s22 = sshll.u32 %s367_s13, 3 }
   0xf   : > { %s165_s17 = scalar_lea.vmem %s362_s0, %s294_s14  ;;  %s170_s25 = scalar_lea.vmem %s365_s3, %s295_s22 }
  0x10   : > { %v171_v0 = vld [vmem:[%s165_s17] sm:$0xff]  ;;  %v172_v1 = vld [vmem:[%s165_s17 + $0x8] sm:$0xff] }
  0x11   : > { %v173_v2 = vadd.f32 %v172_v1, %v171_v0 }
  0x13   : > { %174 = vadd.xlane.f32.xlu0 %v173_v2 }
  0xa0   : > { %v175_v3 = vpop.xlane.xlu0 %174 }
  0xa1   : > { %v177_v4 = vmul.f32 0.00390625, %v175_v3 }
  0xa3   : > { %v178_v5 = vsub.f32 %v171_v0, %v177_v4  ;;  %v179_v6 = vsub.f32 %v172_v1, %v177_v4 }
  0xa5   : > { %v180_v7 = vmul.f32 %v178_v5, %v178_v5  ;;  %v181_v8 = vmul.f32 %v179_v6, %v179_v6 }
  0xa7   : > { %v182_v9 = vadd.f32 %v181_v8, %v180_v7 }
  0xa9   : > { %183 = vadd.xlane.f32.xlu0 %v182_v9 }
 0x136   : > { %v184_v10 = vpop.xlane.xlu0 %183 }
 0x137   : > { %v185_v11 = vmul.f32 0.00390625, %v184_v10 }
 0x139   : > { %v186_v13 = vadd.f32 1e-12, %v185_v11 }
 0x13b   : > { %305 = vrsqrt.f32 %v186_v13 }
 0x145   : > { %v306_v21 = vpop.eup %305 }
 0x146   : > { %v188_v24 = vmul.f32 %v306_v21, %v178_v5  ;;  %v189_v25 = vmul.f32 %v306_v21, %v179_v6 }
 0x148   : > { %v202_v26 = vmul.f32 %v195_v19, %v188_v24  ;;  %v203_v27 = vmul.f32 %v199_v20, %v189_v25 }
 0x14a   : > { %v216_v28 = vadd.f32 %v209_v22, %v202_v26  ;;  %v217_v29 = vadd.f32 %v213_v23, %v203_v27 }
 0x14c   : > { %v296_v30 = vpack.c.bf16 %v217_v29, %v216_v28 }
 0x14e   : > { %226 = vst [vmem:[%s170_s25] sm:$0xff] %v296_v30 }
 0x14f PF: > { %s13_s12 = sadd.s32 1, %s313_s12  }
 0x150   : > { %p10_p4 = scmp.ge.s32.totalorder %s13_s12, 4  }
 0x152   :  { %12 = sbr.rel (!%p10_p4) target bundleno = 1 (0x1), region = 62 }

// kernel: bert4classify_forward.14
= control target key start
LH: loop header
LB: loop body
LE: loop exit
PB: predicated region body
PF: predicated region fallthrough
CT: control target
= control target key end

     0   :  { %s798_s15 = smov 0   ;;  %s800_s16 = smov 0   ;;  %s883_s0 = inlined_call_operand.vmem [shape: bf16[16,768], index: 0, kind: input, shape index: {}, may-alias: {0,1,2}]   ;;  %s884_s1 = inlined_call_operand.vmem [shape: bf16[16,768], index: 1, kind: input, shape index: {}, may-alias: {0,1,2}]   ;;  %s885_s2 = inlined_call_operand.vmem [shape: bf16[16,768], index: 2, kind: input, shape index: {}, may-alias: {0,1,2}]   ;;  %s886_s3 = inlined_call_operand.vmem [shape: f32[2,1,8], index: 3, kind: input, shape index: {}]   ;;  %s887_s4 = inlined_call_operand.vmem [shape: bf16[16,256], index: 4, kind: output, shape index: {}]  }
   0x1   :  { %s802_s17 = smov 0   ;;  %s804_s18 = smov 0  }
   0x2   :  { %s806_s19 = smov 0  }
   0x3 LB: > { %s29_s20 = sadd.s32 1, %s759_s17  ;;  %s33_s21 = sadd.s32 1, %s763_s18  ;;  %s767_s19 = sphi %s806_s19, %s14_s19   ;;  %s763_s18 = sphi %s804_s18, %s891_s18   ;;  %s759_s17 = sphi %s802_s17, %s890_s17   ;;  %s755_s16 = sphi %s800_s16, %s889_s16   ;;  %s751_s15 = sphi %s798_s15, %s888_s15  }
   0x4   : > { %p31_p0 = scmp.ge.s32.totalorder %s29_s20, 2  ;;  %p650_p1 = scmp.ge.s32.totalorder %s767_s19, 1 }
   0x5   : > { %p247_p2 = scmp.lt.s32.totalorder %s767_s19, 5 }
   0x6   : > { %s893_s20 = smov (%p31_p0, %s29_s20), 0  ;;  %s895_s21 = smov (!%p31_p0, %s33_s21), %s763_s18 }
   0x7   : > { %p248_p3 = pnand %p650_p1, %p247_p2  ;;  %p35_p4 = scmp.ge.s32.totalorder %s895_s21, 2 }
   0x8   : > { %p305_p5 = scmp.lt.s32.totalorder (!%p248_p3), %s755_s16, 1  ;;  %s314_s22 = sadd.s32 (!%p248_p3), 2, %s751_s15  ;;  %v769_v0 = vmov (!%p248_p3), 0.0   ;;  %vm770_vm0 = vmmov (!%p248_p3), 0   ;;  %vm357_vm1 = vcmask (!%p248_p3), 7168   ;;  %v771_v4 = vmov (!%p248_p3), -inf  }
   0x9   : > { %s897_s21 = smov (%p35_p4, %s895_s21), 0  ;;  %251 = sbr.rel (%p248_p3) target bundleno = 829 (0x33d), region = 36 }
   0xa   : > { %664 = vmatprep.subr.bf16.mxu0 (!%p248_p3), %v769_v0  ;;  %p317_p6 = scmp.lt.s32.totalorder (!%p248_p3), %s314_s22, 5  ;;  %666 = vmatprep.mubr.msk.bf16.mxu0 (!%p248_p3), %vm770_vm0, %v769_v0  ;;  %p307_p7 = scmp.lt.s32.totalorder (!%p248_p3), %s751_s15, 5  ;;  %358 = vst.msk [vmem:[#allocation2] sm:$0xff] (!%p248_p3), %vm357_vm1, %v771_v4  ;;  %359 = vst.msk [vmem:[#allocation3] sm:$0xff] (!%p248_p3), %vm357_vm1, %v769_v0  ;;  %vm413_vm2 = vcmask (!%p248_p3), 64512   ;;  %v772_v12 = vmov (!%p248_p3), 0  }
   0xb   : > { %670 = vmatprep.subr.bf16.mxu1 (!%p248_p3), %v769_v0  ;;  %672 = vmatprep.mubr.msk.bf16.mxu1 (!%p248_p3), %vm770_vm0, %v769_v0  ;;  %s326_s12 = sadd.s32 (!%p248_p3), 4, %s751_s15  ;;  %vm448_vm3 = vcmask (!%p248_p3), 1043456   ;;  %p345_p9 = scmp.lt.s32.totalorder (!%p248_p3), %s751_s15, 1 }
   0xc   : > { %721 = vset.pattern.permute.xlu0 (!%p248_p3), %v772_v12  ;;  %722 = vset.pattern.permute.xlu1 (!%p248_p3), %v772_v12  ;;  %p329_p8 = scmp.lt.s32.totalorder (!%p248_p3), %s326_s12, 5 }
  0x10   : > { %s899_s16 = smov (!%p305_p5, %s755_s16), 1  ;;  %s901_s22 = smov (!%p317_p6, %s314_s22), 5 }
  0x11   : > { %s835_s23 = smul.u32 6, %s899_s16  ;;  %s342_s11 = scalar_lea.vmem %s886_s3, %s899_s16  ;;  %v412_v13 = vld [vmem:[#allocation2] sm:$0xff]  ;;  %v429_v27 = vld [vmem:[#allocation3] sm:$0xff] }
  0x12   : > { %s308_s24 = scalar_select %p307_p7, %s751_s15, 5  ;;  %v656_v5 = vld [vmem:[%s342_s11] ss:$0 sm:$0xff] }
  0x13   : > { %s320_s25 = sadd.s32 %s835_s23, %s901_s22  ;;  %s903_s12 = smov (!%p329_p8, %s326_s12), 5 }
  0x14   : > { %s652_s26 = sshll.u32 %s320_s25, 2  ;;  %s310_s27 = sadd.s32 %s835_s23, %s308_s24 }
  0x15   : > { %s322_s30 = scalar_lea.vmem %s884_s1, %s652_s26  ;;  %s651_s5 = sshll.u32 %s310_s27, 2 }
  0x16   : > { %v370_v1 = vld [vmem:[%s322_s30] sm:$0xf]  ;;  %s312_s8 = scalar_lea.vmem %s883_s0, %s651_s5  ;;  %s332_s13 = sadd.s32 %s835_s23, %s903_s12 }
  0x17   : > { %665 = vmatpush3.bf16.xpose.msra.mxu0 %v370_v1  ;;  %v368_v2 = vld [vmem:[%s312_s8] sm:$0xf]  ;;  %s653_s14 = sshll.u32 %s332_s13, 2  ;;  %s905_s15 = smov (!%p345_p9, %s751_s15), 1 }
  0x18   : > { %v369_v3 = vmul.bf16 1035287989, %v368_v2  ;;  %s334_s25 = scalar_lea.vmem %s885_s2, %s653_s14  ;;  %s654_s23 = sshll.u32 %s899_s16, 1 }
  0x19   : > { %v371_v17 = vld [vmem:[%s334_s25] sm:$0xf]  ;;  %s348_s26 = sadd.s32 %s654_s23, %s905_s15 }
  0x1a   : > { %v450_v18 = vsel %vm448_vm3, %v371_v17, 0  ;;  %s655_s27 = sshll.u32 %s348_s26, 2 }
  0x1b   : > { %671 = vmatpush3.bf16.msra.mxu1 %v450_v18  ;;  %s350_s30 = scalar_lea.vmem %s887_s4, %s655_s27 }
  0x1e   : > { %667 = vmatmul.mubr.bf16.vlgmr.msra.gmra.mrb[0].mxu0 %v369_v3 }
  0xf1   : > { %v406_v6 = vpop.f32.mrb[0].mxu0 }
  0xf2   : > { %v407_v7 = vadd.f32 %v656_v5, %v406_v6  ;;  %v668_v8 = vpop.f32.mrb[1].mxu0 }
  0xf3   : > { %v409_v9 = vpop.f32.mrb[2].mxu0 }
  0xf4   : > { %v669_v10 = vpop.f32.mrb[3].mxu0  ;;  %v414_v11 = vsel %vm413_vm2, %v407_v7, -inf }
  0xf5   : > { %415 = vmax.xlane.f32.xlu0 %v414_v11 }
 0x182   : > { %v416_v14 = vpop.xlane.xlu0 %415 }
 0x183   : > { %v417_v15 = vmax.f32 %v412_v13, %v416_v14 }
 0x185   : > { %v418_v16 = vsub.f32 %v412_v13, %v417_v15  ;;  %494 = vst.msk [vmem:[#allocation2] sm:$0xff] %vm357_vm1, %v417_v15  ;;  %423 = vperm.xlu0 %721, %v417_v15  }
 0x187   : > { %v419_v25 = vmul.f32 1.442695, %v418_v16 }
 0x204   : > { %v424_v19 = vpop.permute.xlu0 %423 }
 0x205   : > { %v426_v20 = vsub.f32 %v407_v7, %v424_v19 }
 0x207   : > { %v427_v21 = vmul.f32 1.442695, %v426_v20 }
 0x209   : > { %723 = vpow2.f32 %v427_v21 }
 0x20a   : > { %725 = vpow2.f32 %v419_v25 }
 0x213   : > { %v724_v22 = vpop.eup %723 }
 0x214   : > { %v431_v23 = vsel %vm413_vm2, %v724_v22, 0.0  ;;  %v444_v24 = vpack.c.bf16 %v724_v22, %v724_v22  ;;  %v726_v26 = vpop.eup %725 }
 0x215   : > { %432 = vadd.xlane.f32.xlu1 %v431_v23  ;;  %v430_v28 = vmul.f32 %v726_v26, %v429_v27 }
 0x216   : > { %673 = vmatmul.mubr.msk.bf16.vlgmr.msra.gmra.mrb[0].mxu1 %vm413_vm2, %v444_v24 }
 0x2a2   : > { %v433_v29 = vpop.xlane.xlu1 %432 }
 0x2a3   : > { %v434_v30 = vadd.f32 %v433_v29, %v430_v28 }
 0x2a5   : > { %436 = vst.msk [vmem:[#allocation3] sm:$0xff] %vm357_vm1, %v434_v30 }
 0x2ac   : > { %v499_v31 = vld [vmem:[#allocation3] sm:$0xff] }
 0x2ad   : > { %502 = vperm.xlu1 %722, %v499_v31  }
 0x2b1   : > { %440 = vperm.xlu1 %722, %v726_v26  }
 0x2e9   : > { %v486_v32 = vpop.f32.mrb[0].mxu1 }
 0x2ea   : > { %v674_v33 = vpop.f32.mrb[1].mxu1 }
 0x2eb   : > { %v489_v34 = vpop.f32.mrb[2].mxu1 }
 0x2ec   : > { %v675_v35 = vpop.f32.mrb[3].mxu1 }
 0x32c   : > { %v503_v36 = vpop.permute.xlu1 %502 }
 0x32d   : > { %727 = vrcp.f32 %v503_v36 }
 0x330   : > { %v441_v37 = vpop.permute.xlu1 %440 }
 0x331   : > { %v443_v38 = vmul.f32 0.0, %v441_v37 }
 0x333   : > { %v492_v39 = vadd.f32 %v486_v32, %v443_v38 }
 0x337   : > { %v728_v40 = vpop.eup %727 }
 0x338   : > { %v506_v41 = vmul.f32 %v728_v40, %v492_v39 }
 0x33a   : > { %v507_v42 = vpack.c.bf16 %v506_v41, %v506_v41 }
 0x33c   : > { %508 = vst [vmem:[%s350_s30] sm:$0xf] %v507_v42 }
 0x33d PF: > { %s14_s19 = sadd.s32 1, %s767_s19   ;;  %s888_s15 = smov %s759_s17 }
 0x33e   : > { %p11_p10 = scmp.ge.s32.totalorder %s14_s19, 6   ;;  %s889_s16 = smov %s763_s18 }
 0x33f   : > { %s890_s17 = smov %s893_s20  ;;  %s891_s18 = smov %s897_s21 }
 0x340   :  { %13 = sbr.rel (!%p11_p10) target bundleno = 3 (0x3), region = 83 }

// kernel: bert4classify_forward.15
= control target key start
LH: loop header
LB: loop body
LE: loop exit
PB: predicated region body
PF: predicated region fallthrough
CT: control target
= control target key end

     0   :  { %s941_s21 = smov 0   ;;  %s943_s22 = smov 0   ;;  %s1087_s0 = inlined_call_operand.vmem [shape: bf16[16,256], index: 0, kind: input, shape index: {}]   ;;  %s1088_s1 = inlined_call_operand.vmem [shape: bf16[256,256], index: 1, kind: input, shape index: {}]   ;;  %s1089_s2 = inlined_call_operand.vmem [shape: f32[1,256], index: 2, kind: input, shape index: {}]   ;;  %s1090_s3 = inlined_call_operand.vmem [shape: bf16[16,256], index: 3, kind: input, shape index: {}]   ;;  %s1091_s4 = inlined_call_operand.vmem [shape: f32[1,256], index: 4, kind: input, shape index: {}]   ;;  %s1092_s5 = inlined_call_operand.vmem [shape: f32[1,256], index: 5, kind: input, shape index: {}]   ;;  %s1093_s6 = inlined_call_operand.vmem [shape: bf16[16,256], index: 6, kind: output, shape index: {}]  }
   0x1   :  { %s945_s23 = smov 0  }
   0x2 LB: > { %s28_s24 = sadd.s32 1, %s900_s22  ;;  %p758_p0 = scmp.ge.s32.totalorder %s904_s23, 1  ;;  %s904_s23 = sphi %s945_s23, %s16_s23   ;;  %s900_s22 = sphi %s943_s22, %s1095_s22   ;;  %s896_s21 = sphi %s941_s21, %s1094_s21  }
   0x3   : > { %p30_p1 = scmp.ge.s32.totalorder %s28_s24, 2  ;;  %p253_p2 = scmp.lt.s32.totalorder %s904_s23, 3 }
   0x5   : > { %s1097_s24 = smov (%p30_p1, %s28_s24), 0  ;;  %p254_p3 = pnand %p758_p0, %p253_p2 }
   0x6   : > { %v830_v0 = vld [vmem:[%s1088_s1 + $0x4] ss:$8 sps:$4 sm:$0xff] (!%p254_p3)   ;;  %v832_v1 = vld [vmem:[%s1088_s1] ss:$8 sps:$4 sm:$0xff] (!%p254_p3)   ;;  %v833_v2 = vld [vmem:[%s1088_s1 + $0x14] ss:$8 sps:$4 sm:$0xff] (!%p254_p3)   ;;  %v585_v35 = vlaneseq (!%p254_p3) }
   0x7   : > { %257 = sbr.rel (%p254_p3) target bundleno = 606 (0x25e), region = 44  ;;  %533 = vmatprep.subr.bf16.mxu0 (!%p254_p3), %v830_v0  ;;  %v835_v3 = vld [vmem:[%s1088_s1 + $0x10] ss:$8 sps:$4 sm:$0xff] (!%p254_p3)   ;;  %v836_v4 = vld [vmem:[%s1088_s1 + $0x24] ss:$8 sps:$4 sm:$0xff] (!%p254_p3)   ;;  %p299_p4 = scmp.lt.s32.totalorder (!%p254_p3), %s896_s21, 1 }
   0x8   : > { %534 = vmatpush1.bf16.msra.mxu0 (!%p254_p3), %v832_v1  ;;  %v838_v5 = vld [vmem:[%s1088_s1 + $0x20] ss:$8 sps:$4 sm:$0xff] (!%p254_p3)   ;;  %v839_v6 = vld [vmem:[%s1088_s1 + $0x34] ss:$8 sps:$4 sm:$0xff] (!%p254_p3)   ;;  %v841_v7 = vld [vmem:[%s1088_s1 + $0x30] ss:$8 sps:$4 sm:$0xff] (!%p254_p3)  }
   0x9   : > { %535 = vmatprep.subr.bf16.mxu0 (!%p254_p3), %v833_v2  ;;  %v842_v8 = vld [vmem:[%s1088_s1 + $0x44] ss:$8 sps:$4 sm:$0xff] (!%p254_p3)   ;;  %v844_v9 = vld [vmem:[%s1088_s1 + $0x40] ss:$8 sps:$4 sm:$0xff] (!%p254_p3)   ;;  %v845_v10 = vld [vmem:[%s1088_s1 + $0x54] ss:$8 sps:$4 sm:$0xff] (!%p254_p3)  }
   0xa   : > { %v847_v11 = vld [vmem:[%s1088_s1 + $0x50] ss:$8 sps:$4 sm:$0xff] (!%p254_p3)   ;;  %v848_v12 = vld [vmem:[%s1088_s1 + $0x64] ss:$8 sps:$4 sm:$0xff] (!%p254_p3)   ;;  %v850_v15 = vld [vmem:[%s1088_s1 + $0x60] ss:$8 sps:$4 sm:$0xff] (!%p254_p3)  }
   0xb   : > { %v851_v16 = vld [vmem:[%s1088_s1 + $0x74] ss:$8 sps:$4 sm:$0xff] (!%p254_p3)   ;;  %v853_v17 = vld [vmem:[%s1088_s1 + $0x70] ss:$8 sps:$4 sm:$0xff] (!%p254_p3)   ;;  %v854_v18 = vld [vmem:[%s1088_s1 + $0x84] ss:$8 sps:$4 sm:$0xff] (!%p254_p3)  }
   0xc   : > { %536 = vmatpush1.bf16.msra.mxu0 (!%p254_p3), %v835_v3  ;;  %v856_v19 = vld [vmem:[%s1088_s1 + $0x80] ss:$8 sps:$4 sm:$0xff] (!%p254_p3)   ;;  %v857_v20 = vld [vmem:[%s1088_s1 + $0x94] ss:$8 sps:$4 sm:$0xff] (!%p254_p3)   ;;  %v859_v21 = vld [vmem:[%s1088_s1 + $0x90] ss:$8 sps:$4 sm:$0xff] (!%p254_p3)  }
   0xd   : > { %537 = vmatprep.subr.bf16.mxu0 (!%p254_p3), %v836_v4  ;;  %v860_v22 = vld [vmem:[%s1088_s1 + $0xa4] ss:$8 sps:$4 sm:$0xff] (!%p254_p3)   ;;  %v862_v23 = vld [vmem:[%s1088_s1 + $0xa0] ss:$8 sps:$4 sm:$0xff] (!%p254_p3)   ;;  %v863_v24 = vld [vmem:[%s1088_s1 + $0xb4] ss:$8 sps:$4 sm:$0xff] (!%p254_p3)  }
   0xe   : > { %s1099_s21 = smov (!%p299_p4, %s896_s21), 1  ;;  %v865_v25 = vld [vmem:[%s1088_s1 + $0xb0] ss:$8 sps:$4 sm:$0xff]   ;;  %v866_v26 = vld [vmem:[%s1088_s1 + $0xc4] ss:$8 sps:$4 sm:$0xff]   ;;  %v586_v36 = vshrl.u32 %v585_v35, 7 }
   0xf   : > { %s989_s25 = sshll.u32 %s1099_s21, 3  ;;  %v868_v27 = vld [vmem:[%s1088_s1 + $0xc0] ss:$8 sps:$4 sm:$0xff]   ;;  %v869_v28 = vld [vmem:[%s1088_s1 + $0xd4] ss:$8 sps:$4 sm:$0xff]  }
  0x10   : > { %538 = vmatpush1.bf16.msra.mxu0 %v838_v5  ;;  %s306_s30 = scalar_lea.vmem %s1087_s0, %s989_s25  ;;  %v871_v29 = vld [vmem:[%s1088_s1 + $0xd0] ss:$8 sps:$4 sm:$0xff]   ;;  %v872_v30 = vld [vmem:[%s1088_s1 + $0xe4] ss:$8 sps:$4 sm:$0xff]   ;;  %v874_v31 = vld [vmem:[%s1088_s1 + $0xe0] ss:$8 sps:$4 sm:$0xff]   ;;  %s319_s21 = scalar_lea.vmem %s1090_s3, %s989_s25 }
  0x11   : > { %539 = vmatprep.subr.bf16.mxu0 %v839_v6  ;;  %v333_v13 = vld [vmem:[%s306_s30] sm:$0xff]  ;;  %v875_v32 = vld [vmem:[%s1088_s1 + $0xf4] ss:$8 sps:$4 sm:$0xff]   ;;  %v877_v33 = vld [vmem:[%s1088_s1 + $0xf0] ss:$8 sps:$4 sm:$0xff]   ;;  %v587_v37 = vsub.s32 0, %v586_v36  ;;  %s324_s19 = scalar_lea.vmem %s1093_s6, %s989_s25 }
  0x12   : > { %v766_v14 = vcombine.high %v333_v13, %v333_v13  ;;  %v765_v34 = vcombine.low %v333_v13, %v333_v13  ;;  %v583_v38 = vld [vmem:[%s1089_s2] sm:$0x3]  ;;  %v591_v39 = vsub.s32 1, %v586_v36 }
  0x13   : > { %v597_v40 = vld [vmem:[%s319_s21] sm:$0xff]  ;;  %v588_v41 = vrot.slane %v583_v38, %v587_v37 }
  0x14   : > { %540 = vmatpush1.bf16.msra.mxu0 %v841_v7  ;;  %565 = vmatprep.mubr.bf16.mxu0 %v766_v14  ;;  %v592_v42 = vrot.slane %v583_v38, %v591_v39  ;;  %v598_v43 = vunpack.c.l.bf16 %v597_v40  ;;  %v599_v45 = vunpack.c.h.bf16 %v597_v40  ;;  %v619_v0 = vld [vmem:[%s1091_s4] sm:$0x3] }
  0x15   : > { %541 = vmatprep.subr.bf16.mxu0 %v842_v8  ;;  %v633_v1 = vld [vmem:[%s1092_s5] sm:$0x3]  ;;  %v624_v2 = vrot.slane %v619_v0, %v587_v37  ;;  %v628_v3 = vrot.slane %v619_v0, %v591_v39 }
  0x16   : > { %v638_v5 = vrot.slane %v633_v1, %v587_v37  ;;  %v642_v6 = vrot.slane %v633_v1, %v591_v39 }
  0x18   : > { %542 = vmatpush1.bf16.msra.mxu0 %v844_v9 }
  0x19   : > { %543 = vmatprep.subr.bf16.mxu0 %v845_v10 }
  0x1c   : > { %544 = vmatpush1.bf16.msra.mxu0 %v847_v11 }
  0x1d   : > { %545 = vmatprep.subr.bf16.mxu0 %v848_v12 }
  0x20   : > { %546 = vmatpush1.bf16.msra.mxu0 %v850_v15 }
  0x21   : > { %547 = vmatprep.subr.bf16.mxu0 %v851_v16 }
  0x24   : > { %548 = vmatpush1.bf16.msra.mxu0 %v853_v17 }
  0x25   : > { %549 = vmatprep.subr.bf16.mxu0 %v854_v18 }
  0x28   : > { %550 = vmatpush1.bf16.msra.mxu0 %v856_v19 }
  0x29   : > { %551 = vmatprep.subr.bf16.mxu0 %v857_v20 }
  0x2c   : > { %552 = vmatpush1.bf16.msra.mxu0 %v859_v21 }
  0x2d   : > { %553 = vmatprep.subr.bf16.mxu0 %v860_v22 }
  0x30   : > { %554 = vmatpush1.bf16.msra.mxu0 %v862_v23 }
  0x31   : > { %555 = vmatprep.subr.bf16.mxu0 %v863_v24 }
  0x34   : > { %556 = vmatpush1.bf16.msra.mxu0 %v865_v25 }
  0x35   : > { %557 = vmatprep.subr.bf16.mxu0 %v866_v26 }
  0x38   : > { %558 = vmatpush1.bf16.msra.mxu0 %v868_v27 }
  0x39   : > { %559 = vmatprep.subr.bf16.mxu0 %v869_v28 }
  0x3c   : > { %560 = vmatpush1.bf16.msra.mxu0 %v871_v29 }
  0x3d   : > { %561 = vmatprep.subr.bf16.mxu0 %v872_v30 }
  0x40   : > { %562 = vmatpush1.bf16.msra.mxu0 %v874_v31 }
  0x41   : > { %563 = vmatprep.subr.bf16.mxu0 %v875_v32 }
  0x44   : > { %564 = vmatpush1.bf16.msra.mxu0 %v877_v33 }
  0x47   : > { %566 = vmatmul.mubr.bf16.vlgmr.msra.gmra.mrb[0].mxu0 %v765_v34 }
 0x11a   : > { %v567_v44 = vpop.f32.mrb[0].mxu0 }
 0x11b   : > { %v595_v46 = vadd.f32 %v588_v41, %v567_v44  ;;  %v569_v47 = vpop.f32.mrb[1].mxu0 }
 0x11c   : > { %v596_v48 = vadd.f32 %v592_v42, %v569_v47  ;;  %v571_v49 = vpop.f32.mrb[2].mxu0 }
 0x11d   : > { %v572_v50 = vpop.f32.mrb[3].mxu0  ;;  %v600_v51 = vadd.f32 %v598_v43, %v595_v46 }
 0x11e   : > { %v601_v52 = vadd.f32 %v599_v45, %v596_v48 }
 0x120   : > { %v602_v53 = vadd.f32 %v601_v52, %v600_v51 }
 0x122   : > { %603 = vadd.xlane.f32.xlu0 %v602_v53 }
 0x1af   : > { %v604_v54 = vpop.xlane.xlu0 %603 }
 0x1b0   : > { %v606_v55 = vmul.f32 0.00390625, %v604_v54 }
 0x1b2   : > { %v607_v56 = vsub.f32 %v600_v51, %v606_v55  ;;  %v608_v57 = vsub.f32 %v601_v52, %v606_v55 }
 0x1b4   : > { %v609_v58 = vmul.f32 %v607_v56, %v607_v56  ;;  %v610_v59 = vmul.f32 %v608_v57, %v608_v57 }
 0x1b6   : > { %v611_v60 = vadd.f32 %v610_v59, %v609_v58 }
 0x1b8   : > { %612 = vadd.xlane.f32.xlu0 %v611_v60 }
 0x245   : > { %v613_v61 = vpop.xlane.xlu0 %612 }
 0x246   : > { %v614_v62 = vmul.f32 0.00390625, %v613_v61 }
 0x248   : > { %v615_v63 = vadd.f32 1e-12, %v614_v62 }
 0x24a   : > { %880 = vrsqrt.f32 %v615_v63 }
 0x254   : > { %v881_v4 = vpop.eup %880 }
 0x255   : > { %v617_v7 = vmul.f32 %v881_v4, %v607_v56  ;;  %v618_v8 = vmul.f32 %v881_v4, %v608_v57 }
 0x257   : > { %v631_v9 = vmul.f32 %v624_v2, %v617_v7  ;;  %v632_v10 = vmul.f32 %v628_v3, %v618_v8 }
 0x259   : > { %v645_v11 = vadd.f32 %v638_v5, %v631_v9  ;;  %v646_v12 = vadd.f32 %v642_v6, %v632_v10 }
 0x25b   : > { %v805_v13 = vpack.c.bf16 %v646_v12, %v645_v11 }
 0x25d   : > { %655 = vst [vmem:[%s324_s19] sm:$0xff] %v805_v13 }
 0x25e PF: > { %s16_s23 = sadd.s32 1, %s904_s23   ;;  %s1094_s21 = smov %s900_s22 }
 0x25f   : > { %p13_p5 = scmp.ge.s32.totalorder %s16_s23, 4   ;;  %s1095_s22 = smov %s1097_s24 }
 0x261   :  { %15 = sbr.rel (!%p13_p5) target bundleno = 2 (0x2), region = 88 }

// kernel: bert4classify_forward.13
= control target key start
LH: loop header
LB: loop body
LE: loop exit
PB: predicated region body
PF: predicated region fallthrough
CT: control target
= control target key end

     0   :  { %8 = vsyncpa [#allocation4], 0  ;;  %s1575_s12 = smov 0   ;;  %s1577_s13 = smov 0   ;;  %s1674_s0 = inlined_call_operand.vmem [shape: bf16[16,256], index: 0, kind: input, shape index: {}]   ;;  %s1675_s1 = inlined_call_operand.hbm [shape: bf16[256,768], index: 1, kind: input, shape index: {}]   ;;  %s1676_s2 = inlined_call_operand.vmem [shape: f32[1,768], index: 2, kind: input, shape index: {}]   ;;  %s1677_s3 = inlined_call_operand.vmem [shape: bf16[16,768], index: 3, kind: output, shape index: {}]  }
   0x1   :  { %s1579_s14 = smov 0  }
   0x2 LB: > { %s1194_s15 = sadd.s32 4294967295, %s1550_s14   ;;  %s33_s16 = sadd.s32 1, %s1546_s13  ;;  %s1550_s14 = sphi %s1579_s14, %s14_s14   ;;  %s1546_s13 = sphi %s1577_s13, %s1687_s13   ;;  %s1542_s12 = sphi %s1575_s12, %s1686_s12  }
   0x3   : > { %p35_p0 = scmp.ge.s32.totalorder %s33_s16, 2  ;;  %p1196_p1 = scmp.ge.s32.totalorder %s1550_s14, 1 }
   0x4   : > { %p148_p2 = scmp.lt.s32.totalorder %s1550_s14, 3  ;;  %p1600_p4 = scmp.eq.s32.totalorder %s1194_s15, 0 }
   0x5   : > { %s1689_s16 = smov (%p35_p0, %s33_s16), 0  ;;  %s1552_s19 = smov [#allocation3]  }
   0x6   : > { %p1596_p3 = pnand %p1196_p1, %p148_p2  ;;  %s166_s20 = sshll.u32 %s1552_s19, 4  ;;  %s167_s20 = int_to_ptr.vmem [resolvable:$true] %s166_s20 }
   0x7   : > { %s1682_s18 = scalar_select %p1600_p4, 1, 0 }
   0x8   : > { %s1681_s17 = scalar_select %p1596_p3, 1, 0 }
   0x9   : > { %p1317_p5 = pneg %p1596_p3  ;;  %s1496_s24 = scalar_lea.hbm %s1675_s1, 12288 }
   0xa   : > { %p1497_p7 = scmp.ne.s32.totalorder %s1675_s1, %s1496_s24  ;;  %p1503_p11 = scmp.lt.u32.totalorder %s1496_s24, %s1675_s1 }
   0xb   : > { %p1608_p6 = pnand %p1600_p4, %p1317_p5 }
   0xd   : > { %p1498_p8 = pneg %p1608_p6 }
   0xf   : > { %p1499_p9 = pnand %p1498_p8, %p1497_p7 }
  0x11   : > { %p1500_p10 = pneg %p1499_p9 }
  0x13   : > { %p1505_p12 = pnand %p1503_p11, %p1500_p10 }
  0x15   : > { %1508 = shalt.err (!%p1505_p12)
}
  0x16   : > { %s1509_s29 = scalar_lea.vmem %s167_s20, 12288  ;;  %p1517_p2 = scmp.lt.s32.totalorder %s167_s20, %s167_s20 }
  0x17   : > { %p1510_p13 = scmp.ne.s32.totalorder %s167_s20, %s1509_s29  ;;  %p1518_p5 = scmp.lt.s32.totalorder %s1509_s29, %s1509_s29 }
  0x19   : > { %p1512_p0 = pnand %p1510_p13, %p1498_p8  ;;  %p1519_p4 = por %p1518_p5, %p1517_p2 }
  0x1b   : > { %p1513_p1 = pneg %p1512_p0 }
  0x1d   : > { %p1520_p3 = pnand %p1519_p4, %p1513_p1 }
  0x1f   : > { %1523 = shalt.err (!%p1520_p3)
}
  0x20   : > { %s1553_s30 = smov 384   ;;  %s1554_s4 = smov 24  }
  0x21   : > { %1320 = dma.hbm_to_vmem [thread:$0]  (!%p1608_p6), %s1675_s1, 12288, %s167_s20, [#allocation4], %s1553_s30, %s1553_s30, %s1554_s4  }
  0x22   : > { %p1684_p7 = scmp.ne.s32.totalorder %s1681_s17, 0 }
  0x23   : > { %p1685_p9 = scmp.ne.s32.totalorder (!%p1684_p7), %s1682_s18, 0 }
  0x24   : > { %203 = sbr.rel (%p1684_p7) target bundleno = 391 (0x187), region = 32 }
  0x2b   : > { %1537 = dma.done.wait (%p1685_p9), [#allocation4], 12288  }
  0x2c   : > { %1539 = vsyncadd (%p1685_p9), [#allocation4], 4294955008  ;;  %v1350_v0 = vld [vmem:[#allocation3 + $0x4] ss:$24 sps:$4 sm:$0xff]   ;;  %v1352_v1 = vld [vmem:[#allocation3] ss:$24 sps:$4 sm:$0xff]  }
  0x2d   : > { %866 = vmatprep.subr.bf16.mxu0 %v1350_v0  ;;  %v1353_v2 = vld [vmem:[#allocation3 + $0x34] ss:$24 sps:$4 sm:$0xff]   ;;  %v1355_v3 = vld [vmem:[#allocation3 + $0x30] ss:$24 sps:$4 sm:$0xff]   ;;  %v1356_v4 = vld [vmem:[#allocation3 + $0x64] ss:$24 sps:$4 sm:$0xff]  }
  0x2e   : > { %867 = vmatpush1.bf16.msra.mxu0 %v1352_v1  ;;  %v1358_v5 = vld [vmem:[#allocation3 + $0x60] ss:$24 sps:$4 sm:$0xff]   ;;  %v1359_v6 = vld [vmem:[#allocation3 + $0x94] ss:$24 sps:$4 sm:$0xff]   ;;  %p240_p3 = scmp.lt.s32.totalorder %s1542_s12, 1 }
  0x2f   : > { %868 = vmatprep.subr.bf16.mxu0 %v1353_v2  ;;  %v1361_v7 = vld [vmem:[#allocation3 + $0x90] ss:$24 sps:$4 sm:$0xff]   ;;  %v1362_v8 = vld [vmem:[#allocation3 + $0xc4] ss:$24 sps:$4 sm:$0xff]   ;;  %v1364_v9 = vld [vmem:[#allocation3 + $0xc0] ss:$24 sps:$4 sm:$0xff]  }
  0x30   : > { %s1691_s12 = smov (!%p240_p3, %s1542_s12), 1  ;;  %v1365_v10 = vld [vmem:[#allocation3 + $0xf4] ss:$24 sps:$4 sm:$0xff]   ;;  %v1367_v11 = vld [vmem:[#allocation3 + $0xf0] ss:$24 sps:$4 sm:$0xff]  }
  0x31   : > { %s1308_s7 = sshll.u32 %s1691_s12, 3  ;;  %v1368_v12 = vld [vmem:[#allocation3 + $0x124] ss:$24 sps:$4 sm:$0xff]   ;;  %v1400_v14 = vld [vmem:[#allocation3 + $0x8] ss:$24 sps:$4 sm:$0xff]   ;;  %s1312_s17 = smul.u32 24, %s1691_s12 }
  0x32   : > { %869 = vmatpush1.bf16.msra.mxu0 %v1355_v3  ;;  %s247_s10 = scalar_lea.vmem %s1674_s0, %s1308_s7  ;;  %v1398_v13 = vld [vmem:[#allocation3 + $0xc] ss:$24 sps:$4 sm:$0xff]   ;;  %v1370_v16 = vld [vmem:[#allocation3 + $0x120] ss:$24 sps:$4 sm:$0xff]   ;;  %v1406_v19 = vld [vmem:[#allocation3 + $0x3c] ss:$24 sps:$4 sm:$0xff]  }
  0x33   : > { %870 = vmatprep.subr.bf16.mxu0 %v1356_v4  ;;  %v1642_v15 = vld [vmem:[%s247_s10] sm:$0xff]  ;;  %v1371_v18 = vld [vmem:[#allocation3 + $0x154] ss:$24 sps:$4 sm:$0xff]   ;;  %907 = vmatprep.subr.bf16.mxu1 %v1398_v13  ;;  %v1408_v20 = vld [vmem:[#allocation3 + $0x38] ss:$24 sps:$4 sm:$0xff]   ;;  %s264_s20 = scalar_lea.vmem %s1677_s3, %s1312_s17 }
  0x34   : > { %v1646_v17 = vcombine.high %v1642_v15, %v1642_v15  ;;  %908 = vmatpush1.bf16.msra.mxu1 %v1400_v14  ;;  %v1373_v21 = vld [vmem:[#allocation3 + $0x150] ss:$24 sps:$4 sm:$0xff]   ;;  %v1412_v22 = vld [vmem:[#allocation3 + $0x6c] ss:$24 sps:$4 sm:$0xff]   ;;  %v1418_v25 = vld [vmem:[#allocation3 + $0x9c] ss:$24 sps:$4 sm:$0xff]   ;;  %v1652_v57 = vcombine.low %v1642_v15, %v1642_v15 }
  0x35   : > { %909 = vmatprep.subr.bf16.mxu1 %v1406_v19  ;;  %v1374_v23 = vld [vmem:[#allocation3 + $0x184] ss:$24 sps:$4 sm:$0xff]   ;;  %v1414_v24 = vld [vmem:[#allocation3 + $0x68] ss:$24 sps:$4 sm:$0xff]   ;;  %v1377_v27 = vld [vmem:[#allocation3 + $0x1b4] ss:$24 sps:$4 sm:$0xff]  }
  0x36   : > { %871 = vmatpush1.bf16.msra.mxu0 %v1358_v5  ;;  %898 = vmatprep.mubr.bf16.mxu0 %v1646_v17  ;;  %v1376_v26 = vld [vmem:[#allocation3 + $0x180] ss:$24 sps:$4 sm:$0xff]   ;;  %v1424_v29 = vld [vmem:[#allocation3 + $0xcc] ss:$24 sps:$4 sm:$0xff]   ;;  %v1379_v30 = vld [vmem:[#allocation3 + $0x1b0] ss:$24 sps:$4 sm:$0xff]  }
  0x37   : > { %872 = vmatprep.subr.bf16.mxu0 %v1359_v6  ;;  %939 = vmatprep.mubr.bf16.mxu1 %v1646_v17  ;;  %v1420_v28 = vld [vmem:[#allocation3 + $0x98] ss:$24 sps:$4 sm:$0xff]   ;;  %v1380_v31 = vld [vmem:[#allocation3 + $0x1e4] ss:$24 sps:$4 sm:$0xff]   ;;  %v1426_v32 = vld [vmem:[#allocation3 + $0xc8] ss:$24 sps:$4 sm:$0xff]  }
  0x38   : > { %910 = vmatpush1.bf16.msra.mxu1 %v1408_v20  ;;  %v1430_v33 = vld [vmem:[#allocation3 + $0xfc] ss:$24 sps:$4 sm:$0xff]   ;;  %v1382_v34 = vld [vmem:[#allocation3 + $0x1e0] ss:$24 sps:$4 sm:$0xff]   ;;  %v1436_v37 = vld [vmem:[#allocation3 + $0x12c] ss:$24 sps:$4 sm:$0xff]  }
  0x39   : > { %911 = vmatprep.subr.bf16.mxu1 %v1412_v22  ;;  %v1383_v35 = vld [vmem:[#allocation3 + $0x214] ss:$24 sps:$4 sm:$0xff]   ;;  %v1432_v36 = vld [vmem:[#allocation3 + $0xf8] ss:$24 sps:$4 sm:$0xff]   ;;  %v1386_v39 = vld [vmem:[#allocation3 + $0x244] ss:$24 sps:$4 sm:$0xff]  }
  0x3a   : > { %873 = vmatpush1.bf16.msra.mxu0 %v1361_v7  ;;  %v1385_v38 = vld [vmem:[#allocation3 + $0x210] ss:$24 sps:$4 sm:$0xff]   ;;  %v1442_v41 = vld [vmem:[#allocation3 + $0x15c] ss:$24 sps:$4 sm:$0xff]   ;;  %v1388_v42 = vld [vmem:[#allocation3 + $0x240] ss:$24 sps:$4 sm:$0xff]  }
  0x3b   : > { %874 = vmatprep.subr.bf16.mxu0 %v1362_v8  ;;  %v1438_v40 = vld [vmem:[#allocation3 + $0x128] ss:$24 sps:$4 sm:$0xff]   ;;  %v1389_v43 = vld [vmem:[#allocation3 + $0x274] ss:$24 sps:$4 sm:$0xff]   ;;  %v1444_v44 = vld [vmem:[#allocation3 + $0x158] ss:$24 sps:$4 sm:$0xff]  }
  0x3c   : > { %912 = vmatpush1.bf16.msra.mxu1 %v1414_v24  ;;  %v1448_v45 = vld [vmem:[#allocation3 + $0x18c] ss:$24 sps:$4 sm:$0xff]   ;;  %v1391_v46 = vld [vmem:[#allocation3 + $0x270] ss:$24 sps:$4 sm:$0xff]   ;;  %v1454_v49 = vld [vmem:[#allocation3 + $0x1bc] ss:$24 sps:$4 sm:$0xff]  }
  0x3d   : > { %913 = vmatprep.subr.bf16.mxu1 %v1418_v25  ;;  %v1392_v47 = vld [vmem:[#allocation3 + $0x2a4] ss:$24 sps:$4 sm:$0xff]   ;;  %v1450_v48 = vld [vmem:[#allocation3 + $0x188] ss:$24 sps:$4 sm:$0xff]   ;;  %v1395_v51 = vld [vmem:[#allocation3 + $0x2d4] ss:$24 sps:$4 sm:$0xff]  }
  0x3e   : > { %875 = vmatpush1.bf16.msra.mxu0 %v1364_v9  ;;  %v1394_v50 = vld [vmem:[#allocation3 + $0x2a0] ss:$24 sps:$4 sm:$0xff]   ;;  %v1460_v53 = vld [vmem:[#allocation3 + $0x1ec] ss:$24 sps:$4 sm:$0xff]   ;;  %v1397_v54 = vld [vmem:[#allocation3 + $0x2d0] ss:$24 sps:$4 sm:$0xff]  }
  0x3f   : > { %876 = vmatprep.subr.bf16.mxu0 %v1365_v10  ;;  %v1456_v52 = vld [vmem:[#allocation3 + $0x1b8] ss:$24 sps:$4 sm:$0xff]   ;;  %v1405_v55 = vld [vmem:[#allocation3 + $0x14] ss:$24 sps:$4 sm:$0xff]   ;;  %v1462_v56 = vld [vmem:[#allocation3 + $0x1e8] ss:$24 sps:$4 sm:$0xff]  }
  0x40   : > { %914 = vmatpush1.bf16.msra.mxu1 %v1420_v28  ;;  %v1466_v58 = vld [vmem:[#allocation3 + $0x21c] ss:$24 sps:$4 sm:$0xff]   ;;  %v1403_v59 = vld [vmem:[#allocation3 + $0x10] ss:$24 sps:$4 sm:$0xff]   ;;  %v1472_v62 = vld [vmem:[#allocation3 + $0x24c] ss:$24 sps:$4 sm:$0xff]  }
  0x41   : > { %915 = vmatprep.subr.bf16.mxu1 %v1424_v29  ;;  %v1411_v60 = vld [vmem:[#allocation3 + $0x44] ss:$24 sps:$4 sm:$0xff]   ;;  %v1468_v61 = vld [vmem:[#allocation3 + $0x218] ss:$24 sps:$4 sm:$0xff]   ;;  %v1417_v0 = vld [vmem:[#allocation3 + $0x74] ss:$24 sps:$4 sm:$0xff]  }
  0x42   : > { %877 = vmatpush1.bf16.msra.mxu0 %v1367_v11  ;;  %v1409_v63 = vld [vmem:[#allocation3 + $0x40] ss:$24 sps:$4 sm:$0xff]   ;;  %v1478_v2 = vld [vmem:[#allocation3 + $0x27c] ss:$24 sps:$4 sm:$0xff]   ;;  %v1415_v3 = vld [vmem:[#allocation3 + $0x70] ss:$24 sps:$4 sm:$0xff]  }
  0x43   : > { %878 = vmatprep.subr.bf16.mxu0 %v1368_v12  ;;  %v1474_v1 = vld [vmem:[#allocation3 + $0x248] ss:$24 sps:$4 sm:$0xff]   ;;  %v1423_v4 = vld [vmem:[#allocation3 + $0xa4] ss:$24 sps:$4 sm:$0xff]   ;;  %v1480_v5 = vld [vmem:[#allocation3 + $0x278] ss:$24 sps:$4 sm:$0xff]  }
  0x44   : > { %916 = vmatpush1.bf16.msra.mxu1 %v1426_v32  ;;  %v1484_v6 = vld [vmem:[#allocation3 + $0x2ac] ss:$24 sps:$4 sm:$0xff]   ;;  %v1421_v7 = vld [vmem:[#allocation3 + $0xa0] ss:$24 sps:$4 sm:$0xff]   ;;  %v1490_v10 = vld [vmem:[#allocation3 + $0x2dc] ss:$24 sps:$4 sm:$0xff]  }
  0x45   : > { %917 = vmatprep.subr.bf16.mxu1 %v1430_v33  ;;  %v1429_v8 = vld [vmem:[#allocation3 + $0xd4] ss:$24 sps:$4 sm:$0xff]   ;;  %v1486_v9 = vld [vmem:[#allocation3 + $0x2a8] ss:$24 sps:$4 sm:$0xff]   ;;  %v1435_v12 = vld [vmem:[#allocation3 + $0x104] ss:$24 sps:$4 sm:$0xff]  }
  0x46   : > { %879 = vmatpush1.bf16.msra.mxu0 %v1370_v16  ;;  %v1427_v11 = vld [vmem:[#allocation3 + $0xd0] ss:$24 sps:$4 sm:$0xff]   ;;  %v1433_v14 = vld [vmem:[#allocation3 + $0x100] ss:$24 sps:$4 sm:$0xff]   ;;  %v1441_v15 = vld [vmem:[#allocation3 + $0x134] ss:$24 sps:$4 sm:$0xff]  }
  0x47   : > { %880 = vmatprep.subr.bf16.mxu0 %v1371_v18  ;;  %v1492_v13 = vld [vmem:[#allocation3 + $0x2d8] ss:$24 sps:$4 sm:$0xff]   ;;  %v1453_v19 = vld [vmem:[#allocation3 + $0x194] ss:$24 sps:$4 sm:$0xff]   ;;  %v1471_v25 = vld [vmem:[#allocation3 + $0x224] ss:$24 sps:$4 sm:$0xff]  }
  0x48   : > { %918 = vmatpush1.bf16.msra.mxu1 %v1432_v36  ;;  %v1439_v16 = vld [vmem:[#allocation3 + $0x130] ss:$24 sps:$4 sm:$0xff]   ;;  %v1445_v18 = vld [vmem:[#allocation3 + $0x160] ss:$24 sps:$4 sm:$0xff]   ;;  %v1483_v29 = vld [vmem:[#allocation3 + $0x284] ss:$24 sps:$4 sm:$0xff]  }
  0x49   : > { %919 = vmatprep.subr.bf16.mxu1 %v1436_v37  ;;  %v1451_v20 = vld [vmem:[#allocation3 + $0x190] ss:$24 sps:$4 sm:$0xff]   ;;  %v1457_v22 = vld [vmem:[#allocation3 + $0x1c0] ss:$24 sps:$4 sm:$0xff]   ;;  %v1495_v33 = vld [vmem:[#allocation3 + $0x2e4] ss:$24 sps:$4 sm:$0xff]  }
  0x4a   : > { %881 = vmatpush1.bf16.msra.mxu0 %v1373_v21  ;;  %v1459_v21 = vld [vmem:[#allocation3 + $0x1c4] ss:$24 sps:$4 sm:$0xff]   ;;  %v1463_v24 = vld [vmem:[#allocation3 + $0x1f0] ss:$24 sps:$4 sm:$0xff]  }
  0x4b   : > { %882 = vmatprep.subr.bf16.mxu0 %v1374_v23  ;;  %v1465_v23 = vld [vmem:[#allocation3 + $0x1f4] ss:$24 sps:$4 sm:$0xff]   ;;  %v1475_v28 = vld [vmem:[#allocation3 + $0x250] ss:$24 sps:$4 sm:$0xff]  }
  0x4c   : > { %920 = vmatpush1.bf16.msra.mxu1 %v1438_v40  ;;  %v1487_v32 = vld [vmem:[#allocation3 + $0x2b0] ss:$24 sps:$4 sm:$0xff]  }
  0x4d   : > { %921 = vmatprep.subr.bf16.mxu1 %v1442_v41 }
  0x4e   : > { %883 = vmatpush1.bf16.msra.mxu0 %v1376_v26  ;;  %v1469_v26 = vld [vmem:[#allocation3 + $0x220] ss:$24 sps:$4 sm:$0xff]  }
  0x4f   : > { %884 = vmatprep.subr.bf16.mxu0 %v1377_v27  ;;  %v1477_v27 = vld [vmem:[#allocation3 + $0x254] ss:$24 sps:$4 sm:$0xff]  }
  0x50   : > { %922 = vmatpush1.bf16.msra.mxu1 %v1444_v44 }
  0x51   : > { %923 = vmatprep.subr.bf16.mxu1 %v1448_v45 }
  0x52   : > { %885 = vmatpush1.bf16.msra.mxu0 %v1379_v30  ;;  %v1481_v30 = vld [vmem:[#allocation3 + $0x280] ss:$24 sps:$4 sm:$0xff]  }
  0x53   : > { %886 = vmatprep.subr.bf16.mxu0 %v1380_v31  ;;  %v1489_v31 = vld [vmem:[#allocation3 + $0x2b4] ss:$24 sps:$4 sm:$0xff]  }
  0x54   : > { %924 = vmatpush1.bf16.msra.mxu1 %v1450_v48 }
  0x55   : > { %925 = vmatprep.subr.bf16.mxu1 %v1454_v49 }
  0x56   : > { %887 = vmatpush1.bf16.msra.mxu0 %v1382_v34  ;;  %v1493_v34 = vld [vmem:[#allocation3 + $0x2e0] ss:$24 sps:$4 sm:$0xff]  }
  0x57   : > { %888 = vmatprep.subr.bf16.mxu0 %v1383_v35  ;;  %v1012_v35 = vlaneseq }
  0x58   : > { %926 = vmatpush1.bf16.msra.mxu1 %v1456_v52 }
  0x59   : > { %927 = vmatprep.subr.bf16.mxu1 %v1460_v53  ;;  %v1013_v36 = vshrl.u32 %v1012_v35, 7 }
  0x5a   : > { %889 = vmatpush1.bf16.msra.mxu0 %v1385_v38  ;;  %v1010_v38 = vld [vmem:[%s1676_s2] sm:$0x3f] }
  0x5b   : > { %890 = vmatprep.subr.bf16.mxu0 %v1386_v39  ;;  %v1030_v37 = vsub.s32 4, %v1013_v36  ;;  %v1034_v39 = vsub.s32 5, %v1013_v36  ;;  %v1022_v53 = vsub.s32 2, %v1013_v36 }
  0x5c   : > { %928 = vmatpush1.bf16.msra.mxu1 %v1462_v56 }
  0x5d   : > { %929 = vmatprep.subr.bf16.mxu1 %v1466_v58  ;;  %v1031_v40 = vrot.slane %v1010_v38, %v1030_v37  ;;  %v1035_v41 = vrot.slane %v1010_v38, %v1034_v39 }
  0x5e   : > { %891 = vmatpush1.bf16.msra.mxu0 %v1388_v42  ;;  %v1014_v42 = vsub.s32 0, %v1013_v36 }
  0x5f   : > { %892 = vmatprep.subr.bf16.mxu0 %v1389_v43  ;;  %v1018_v43 = vsub.s32 1, %v1013_v36 }
  0x60   : > { %930 = vmatpush1.bf16.msra.mxu1 %v1468_v61  ;;  %v1015_v44 = vrot.slane %v1010_v38, %v1014_v42 }
  0x61   : > { %931 = vmatprep.subr.bf16.mxu1 %v1472_v62  ;;  %v1019_v45 = vrot.slane %v1010_v38, %v1018_v43 }
  0x62   : > { %893 = vmatpush1.bf16.msra.mxu0 %v1391_v46 }
  0x63   : > { %894 = vmatprep.subr.bf16.mxu0 %v1392_v47 }
  0x64   : > { %932 = vmatpush1.bf16.msra.mxu1 %v1474_v1 }
  0x65   : > { %933 = vmatprep.subr.bf16.mxu1 %v1478_v2 }
  0x66   : > { %895 = vmatpush1.bf16.msra.mxu0 %v1394_v50 }
  0x67   : > { %896 = vmatprep.subr.bf16.mxu0 %v1395_v51 }
  0x68   : > { %934 = vmatpush1.bf16.msra.mxu1 %v1480_v5 }
  0x69   : > { %935 = vmatprep.subr.bf16.mxu1 %v1484_v6 }
  0x6a   : > { %897 = vmatpush1.bf16.msra.mxu0 %v1397_v54  ;;  %v1026_v54 = vsub.s32 3, %v1013_v36 }
  0x6b   : > { %948 = vmatprep.subr.bf16.mxu0 %v1405_v55  ;;  %v1023_v55 = vrot.slane %v1010_v38, %v1022_v53 }
  0x6c   : > { %936 = vmatpush1.bf16.msra.mxu1 %v1486_v9  ;;  %v1027_v56 = vrot.slane %v1010_v38, %v1026_v54 }
  0x6d   : > { %899 = vmatmul.mubr.bf16.vlgmr.msra.gmra.mrb[0].mxu0 %v1652_v57  ;;  %937 = vmatprep.subr.bf16.mxu1 %v1490_v10 }
  0x6e   : > { %949 = vmatpush1.bf16.msra.mxu0 %v1403_v59  ;;  %980 = vmatprep.mubr.bf16.mxu0 %v1646_v17  ;;  %v1447_v17 = vld [vmem:[#allocation3 + $0x164] ss:$24 sps:$4 sm:$0xff]  }
  0x6f   : > { %950 = vmatprep.subr.bf16.mxu0 %v1411_v60 }
  0x70   : > { %938 = vmatpush1.bf16.msra.mxu1 %v1492_v13 }
  0x72   : > { %951 = vmatpush1.bf16.msra.mxu0 %v1409_v63 }
  0x73   : > { %952 = vmatprep.subr.bf16.mxu0 %v1417_v0  ;;  %940 = vmatmul.mubr.bf16.vlgmr.msra.gmra.mrb[0].mxu1 %v1652_v57 }
  0x76   : > { %953 = vmatpush1.bf16.msra.mxu0 %v1415_v3 }
  0x77   : > { %954 = vmatprep.subr.bf16.mxu0 %v1423_v4 }
  0x7a   : > { %955 = vmatpush1.bf16.msra.mxu0 %v1421_v7 }
  0x7b   : > { %956 = vmatprep.subr.bf16.mxu0 %v1429_v8 }
  0x7e   : > { %957 = vmatpush1.bf16.msra.mxu0 %v1427_v11 }
  0x7f   : > { %958 = vmatprep.subr.bf16.mxu0 %v1435_v12 }
  0x82   : > { %959 = vmatpush1.bf16.msra.mxu0 %v1433_v14 }
  0x83   : > { %960 = vmatprep.subr.bf16.mxu0 %v1441_v15 }
  0x86   : > { %961 = vmatpush1.bf16.msra.mxu0 %v1439_v16 }
  0x87   : > { %962 = vmatprep.subr.bf16.mxu0 %v1447_v17 }
  0x8a   : > { %963 = vmatpush1.bf16.msra.mxu0 %v1445_v18 }
  0x8b   : > { %964 = vmatprep.subr.bf16.mxu0 %v1453_v19 }
  0x8e   : > { %965 = vmatpush1.bf16.msra.mxu0 %v1451_v20 }
  0x8f   : > { %966 = vmatprep.subr.bf16.mxu0 %v1459_v21 }
  0x92   : > { %967 = vmatpush1.bf16.msra.mxu0 %v1457_v22 }
  0x93   : > { %968 = vmatprep.subr.bf16.mxu0 %v1465_v23 }
  0x96   : > { %969 = vmatpush1.bf16.msra.mxu0 %v1463_v24 }
  0x97   : > { %970 = vmatprep.subr.bf16.mxu0 %v1471_v25 }
  0x9a   : > { %971 = vmatpush1.bf16.msra.mxu0 %v1469_v26 }
  0x9b   : > { %972 = vmatprep.subr.bf16.mxu0 %v1477_v27 }
  0x9e   : > { %973 = vmatpush1.bf16.msra.mxu0 %v1475_v28 }
  0x9f   : > { %974 = vmatprep.subr.bf16.mxu0 %v1483_v29 }
  0xa2   : > { %975 = vmatpush1.bf16.msra.mxu0 %v1481_v30 }
  0xa3   : > { %976 = vmatprep.subr.bf16.mxu0 %v1489_v31 }
  0xa6   : > { %977 = vmatpush1.bf16.msra.mxu0 %v1487_v32 }
  0xa7   : > { %978 = vmatprep.subr.bf16.mxu0 %v1495_v33 }
  0xaa   : > { %979 = vmatpush1.bf16.msra.mxu0 %v1493_v34 }
  0xad   : > { %981 = vmatmul.mubr.bf16.vlgmr.msra.gmra.mrb[4].mxu0 %v1652_v57 }
 0x140   : > { %v900_v46 = vpop.f32.mrb[0].mxu0 }
 0x141   : > { %v1042_v47 = vadd.f32 %v1015_v44, %v900_v46  ;;  %v902_v48 = vpop.f32.mrb[1].mxu0 }
 0x142   : > { %v1043_v49 = vadd.f32 %v1019_v45, %v902_v48  ;;  %v904_v50 = vpop.f32.mrb[2].mxu0 }
 0x143   : > { %v905_v51 = vpop.f32.mrb[3].mxu0 }
 0x144   : > { %v1309_v52 = vpack.c.bf16 %v1043_v49, %v1042_v47 }
 0x146   : > { %1072 = vst [vmem:[%s264_s20] sm:$0xff] %v1309_v52  ;;  %v941_v57 = vpop.f32.mrb[0].mxu1 }
 0x147   : > { %v1044_v58 = vadd.f32 %v1023_v55, %v941_v57  ;;  %v943_v59 = vpop.f32.mrb[1].mxu1 }
 0x148   : > { %v1045_v60 = vadd.f32 %v1027_v56, %v943_v59  ;;  %v945_v61 = vpop.f32.mrb[2].mxu1 }
 0x149   : > { %v946_v62 = vpop.f32.mrb[3].mxu1 }
 0x14a   : > { %v1310_v63 = vpack.c.bf16 %v1045_v60, %v1044_v58 }
 0x14c   : > { %1073 = vst [vmem:[%s264_s20 + $0x8] sm:$0xff] %v1310_v63 }
 0x180   : > { %v982_v0 = vpop.f32.mrb[4].mxu0 }
 0x181   : > { %v1046_v1 = vadd.f32 %v1031_v40, %v982_v0  ;;  %v984_v2 = vpop.f32.mrb[5].mxu0 }
 0x182   : > { %v1047_v3 = vadd.f32 %v1035_v41, %v984_v2  ;;  %v986_v4 = vpop.f32.mrb[6].mxu0 }
 0x183   : > { %v987_v5 = vpop.f32.mrb[7].mxu0 }
 0x184   : > { %v1311_v6 = vpack.c.bf16 %v1047_v3, %v1046_v1 }
 0x186   : > { %1074 = vst [vmem:[%s264_s20 + $0x10] sm:$0xff] %v1311_v6 }
 0x187 PF: > { %s14_s14 = sadd.s32 1, %s1550_s14   ;;  %s1686_s12 = smov %s1546_s13 }
 0x188   : > { %p11_p4 = scmp.ge.s32.totalorder %s14_s14, 4   ;;  %s1687_s13 = smov %s1689_s16 }
 0x18a   :  { %13 = sbr.rel (!%p11_p4) target bundleno = 2 (0x2), region = 79 }
 0x191   :  { %1105 = vsyncpa [#allocation4], 1 }
 0x192   :  { %1107 = vsyncpa [#allocation4 + $0x1], 1 }

// kernel: bert4classify_forward.16
= control target key start
LH: loop header
LB: loop body
LE: loop exit
PB: predicated region body
PF: predicated region fallthrough
CT: control target
= control target key end

     0   :  { %s1240_s12 = smov 0   ;;  %s1242_s13 = smov 0   ;;  %s1476_s0 = inlined_call_operand.vmem [shape: bf16[16,256], index: 0, kind: input, shape index: {}]   ;;  %s1477_s1 = inlined_call_operand.vmem [shape: bf16[256,512], index: 1, kind: input, shape index: {}]   ;;  %s1478_s2 = inlined_call_operand.vmem [shape: f32[1,512], index: 2, kind: input, shape index: {}]   ;;  %s1479_s3 = inlined_call_operand.vmem [shape: bf16[16,512], index: 3, kind: output, shape index: {}]  }
   0x1   :  { %s1244_s14 = smov 0  }
   0x2 LB: > { %s32_s15 = sadd.s32 1, %s1214_s13  ;;  %p987_p0 = scmp.ge.s32.totalorder %s1218_s14, 1  ;;  %s1218_s14 = sphi %s1244_s14, %s13_s14   ;;  %s1214_s13 = sphi %s1242_s13, %s1481_s13   ;;  %s1210_s12 = sphi %s1240_s12, %s1480_s12  }
   0x3   : > { %p34_p1 = scmp.ge.s32.totalorder %s32_s15, 2  ;;  %p194_p2 = scmp.lt.s32.totalorder %s1218_s14, 3 }
   0x5   : > { %s1483_s15 = smov (%p34_p1, %s32_s15), 0  ;;  %p195_p3 = pnand %p987_p0, %p194_p2 }
   0x6   : > { %v1090_v0 = vld [vmem:[%s1477_s1 + $0x4] ss:$16 sps:$4 sm:$0xff] (!%p195_p3)   ;;  %v1092_v1 = vld [vmem:[%s1477_s1 + $0xc] ss:$16 sps:$4 sm:$0xff] (!%p195_p3)   ;;  %v1094_v2 = vld [vmem:[%s1477_s1] ss:$16 sps:$4 sm:$0xff] (!%p195_p3)  }
   0x7   : > { %198 = sbr.rel (%p195_p3) target bundleno = 316 (0x13c), region = 32  ;;  %681 = vmatprep.subr.bf16.mxu0 (!%p195_p3), %v1090_v0  ;;  %v1095_v3 = vld [vmem:[%s1477_s1 + $0x8] ss:$16 sps:$4 sm:$0xff] (!%p195_p3)   ;;  %722 = vmatprep.subr.bf16.mxu1 (!%p195_p3), %v1092_v1  ;;  %v1096_v4 = vld [vmem:[%s1477_s1 + $0x24] ss:$16 sps:$4 sm:$0xff] (!%p195_p3)   ;;  %p241_p4 = scmp.lt.s32.totalorder (!%p195_p3), %s1210_s12, 1 }
   0x8   : > { %682 = vmatpush1.bf16.msra.mxu0 (!%p195_p3), %v1094_v2  ;;  %723 = vmatpush1.bf16.msra.mxu1 (!%p195_p3), %v1095_v3  ;;  %v1098_v5 = vld [vmem:[%s1477_s1 + $0x2c] ss:$16 sps:$4 sm:$0xff] (!%p195_p3)   ;;  %v1100_v6 = vld [vmem:[%s1477_s1 + $0x20] ss:$16 sps:$4 sm:$0xff] (!%p195_p3)   ;;  %v1101_v7 = vld [vmem:[%s1477_s1 + $0x28] ss:$16 sps:$4 sm:$0xff] (!%p195_p3)   ;;  %v780_v3 = vlaneseq (!%p195_p3) }
   0x9   : > { %683 = vmatprep.subr.bf16.mxu0 (!%p195_p3), %v1096_v4  ;;  %724 = vmatprep.subr.bf16.mxu1 (!%p195_p3), %v1098_v5  ;;  %v1102_v8 = vld [vmem:[%s1477_s1 + $0x44] ss:$16 sps:$4 sm:$0xff] (!%p195_p3)   ;;  %v1104_v9 = vld [vmem:[%s1477_s1 + $0x4c] ss:$16 sps:$4 sm:$0xff] (!%p195_p3)   ;;  %v1106_v10 = vld [vmem:[%s1477_s1 + $0x40] ss:$16 sps:$4 sm:$0xff] (!%p195_p3)  }
   0xa   : > { %v1107_v11 = vld [vmem:[%s1477_s1 + $0x48] ss:$16 sps:$4 sm:$0xff] (!%p195_p3)   ;;  %v1108_v12 = vld [vmem:[%s1477_s1 + $0x64] ss:$16 sps:$4 sm:$0xff] (!%p195_p3)   ;;  %v1110_v13 = vld [vmem:[%s1477_s1 + $0x6c] ss:$16 sps:$4 sm:$0xff] (!%p195_p3)  }
   0xb   : > { %v1112_v14 = vld [vmem:[%s1477_s1 + $0x60] ss:$16 sps:$4 sm:$0xff] (!%p195_p3)   ;;  %v1113_v15 = vld [vmem:[%s1477_s1 + $0x68] ss:$16 sps:$4 sm:$0xff] (!%p195_p3)   ;;  %v1114_v16 = vld [vmem:[%s1477_s1 + $0x84] ss:$16 sps:$4 sm:$0xff] (!%p195_p3)  }
   0xc   : > { %684 = vmatpush1.bf16.msra.mxu0 (!%p195_p3), %v1100_v6  ;;  %725 = vmatpush1.bf16.msra.mxu1 (!%p195_p3), %v1101_v7  ;;  %v1116_v17 = vld [vmem:[%s1477_s1 + $0x8c] ss:$16 sps:$4 sm:$0xff] (!%p195_p3)   ;;  %v1118_v18 = vld [vmem:[%s1477_s1 + $0x80] ss:$16 sps:$4 sm:$0xff] (!%p195_p3)   ;;  %v1119_v19 = vld [vmem:[%s1477_s1 + $0x88] ss:$16 sps:$4 sm:$0xff] (!%p195_p3)  }
   0xd   : > { %685 = vmatprep.subr.bf16.mxu0 (!%p195_p3), %v1102_v8  ;;  %726 = vmatprep.subr.bf16.mxu1 (!%p195_p3), %v1104_v9  ;;  %v1120_v20 = vld [vmem:[%s1477_s1 + $0xa4] ss:$16 sps:$4 sm:$0xff] (!%p195_p3)   ;;  %v1122_v21 = vld [vmem:[%s1477_s1 + $0xac] ss:$16 sps:$4 sm:$0xff] (!%p195_p3)   ;;  %v1124_v22 = vld [vmem:[%s1477_s1 + $0xa0] ss:$16 sps:$4 sm:$0xff] (!%p195_p3)  }
   0xe   : > { %v1125_v23 = vld [vmem:[%s1477_s1 + $0xa8] ss:$16 sps:$4 sm:$0xff]   ;;  %v1126_v24 = vld [vmem:[%s1477_s1 + $0xc4] ss:$16 sps:$4 sm:$0xff]   ;;  %v1128_v25 = vld [vmem:[%s1477_s1 + $0xcc] ss:$16 sps:$4 sm:$0xff]  }
   0xf   : > { %v1130_v26 = vld [vmem:[%s1477_s1 + $0xc0] ss:$16 sps:$4 sm:$0xff]   ;;  %v1131_v27 = vld [vmem:[%s1477_s1 + $0xc8] ss:$16 sps:$4 sm:$0xff]   ;;  %v1132_v28 = vld [vmem:[%s1477_s1 + $0xe4] ss:$16 sps:$4 sm:$0xff]  }
  0x10   : > { %686 = vmatpush1.bf16.msra.mxu0 %v1106_v10  ;;  %727 = vmatpush1.bf16.msra.mxu1 %v1107_v11  ;;  %v1134_v29 = vld [vmem:[%s1477_s1 + $0xec] ss:$16 sps:$4 sm:$0xff]   ;;  %v1136_v30 = vld [vmem:[%s1477_s1 + $0xe0] ss:$16 sps:$4 sm:$0xff]   ;;  %v1137_v31 = vld [vmem:[%s1477_s1 + $0xe8] ss:$16 sps:$4 sm:$0xff]  }
  0x11   : > { %687 = vmatprep.subr.bf16.mxu0 %v1108_v12  ;;  %728 = vmatprep.subr.bf16.mxu1 %v1110_v13  ;;  %v1138_v32 = vld [vmem:[%s1477_s1 + $0x104] ss:$16 sps:$4 sm:$0xff]   ;;  %v1140_v33 = vld [vmem:[%s1477_s1 + $0x10c] ss:$16 sps:$4 sm:$0xff]   ;;  %v1142_v34 = vld [vmem:[%s1477_s1 + $0x100] ss:$16 sps:$4 sm:$0xff]  }
  0x12   : > { %v1143_v35 = vld [vmem:[%s1477_s1 + $0x108] ss:$16 sps:$4 sm:$0xff]   ;;  %v1144_v36 = vld [vmem:[%s1477_s1 + $0x124] ss:$16 sps:$4 sm:$0xff]   ;;  %s1485_s12 = smov (!%p241_p4, %s1210_s12), 1  ;;  %v781_v4 = vshrl.u32 %v780_v3, 7 }
  0x13   : > { %v1146_v37 = vld [vmem:[%s1477_s1 + $0x12c] ss:$16 sps:$4 sm:$0xff]   ;;  %v1148_v38 = vld [vmem:[%s1477_s1 + $0x120] ss:$16 sps:$4 sm:$0xff]   ;;  %v1149_v39 = vld [vmem:[%s1477_s1 + $0x128] ss:$16 sps:$4 sm:$0xff]  }
  0x14   : > { %688 = vmatpush1.bf16.msra.mxu0 %v1112_v14  ;;  %729 = vmatpush1.bf16.msra.mxu1 %v1113_v15  ;;  %v1150_v40 = vld [vmem:[%s1477_s1 + $0x144] ss:$16 sps:$4 sm:$0xff]   ;;  %s1062_s29 = sshll.u32 %s1485_s12, 3  ;;  %v1152_v41 = vld [vmem:[%s1477_s1 + $0x14c] ss:$16 sps:$4 sm:$0xff]   ;;  %v782_v5 = vsub.s32 0, %v781_v4 }
  0x15   : > { %689 = vmatprep.subr.bf16.mxu0 %v1114_v16  ;;  %730 = vmatprep.subr.bf16.mxu1 %v1116_v17  ;;  %v1154_v42 = vld [vmem:[%s1477_s1 + $0x140] ss:$16 sps:$4 sm:$0xff]   ;;  %v1155_v43 = vld [vmem:[%s1477_s1 + $0x148] ss:$16 sps:$4 sm:$0xff]   ;;  %s248_s11 = scalar_lea.vmem %s1476_s0, %s1062_s29  ;;  %v1156_v44 = vld [vmem:[%s1477_s1 + $0x164] ss:$16 sps:$4 sm:$0xff]  }
  0x16   : > { %v1158_v45 = vld [vmem:[%s1477_s1 + $0x16c] ss:$16 sps:$4 sm:$0xff]   ;;  %v289_v46 = vld [vmem:[%s248_s11] sm:$0xff]  ;;  %v1161_v49 = vld [vmem:[%s1477_s1 + $0x168] ss:$16 sps:$4 sm:$0xff]   ;;  %v790_v6 = vsub.s32 2, %v781_v4 }
  0x17   : > { %v993_v47 = vcombine.high %v289_v46, %v289_v46  ;;  %v1160_v48 = vld [vmem:[%s1477_s1 + $0x160] ss:$16 sps:$4 sm:$0xff]   ;;  %v1162_v50 = vld [vmem:[%s1477_s1 + $0x184] ss:$16 sps:$4 sm:$0xff]   ;;  %v1164_v51 = vld [vmem:[%s1477_s1 + $0x18c] ss:$16 sps:$4 sm:$0xff]   ;;  %v992_v2 = vcombine.low %v289_v46, %v289_v46 }
  0x18   : > { %690 = vmatpush1.bf16.msra.mxu0 %v1118_v18  ;;  %731 = vmatpush1.bf16.msra.mxu1 %v1119_v19  ;;  %v1166_v52 = vld [vmem:[%s1477_s1 + $0x180] ss:$16 sps:$4 sm:$0xff]   ;;  %v1167_v53 = vld [vmem:[%s1477_s1 + $0x188] ss:$16 sps:$4 sm:$0xff]   ;;  %v1168_v54 = vld [vmem:[%s1477_s1 + $0x1a4] ss:$16 sps:$4 sm:$0xff]  }
  0x19   : > { %691 = vmatprep.subr.bf16.mxu0 %v1120_v20  ;;  %732 = vmatprep.subr.bf16.mxu1 %v1122_v21  ;;  %v1170_v55 = vld [vmem:[%s1477_s1 + $0x1ac] ss:$16 sps:$4 sm:$0xff]   ;;  %v1172_v56 = vld [vmem:[%s1477_s1 + $0x1a0] ss:$16 sps:$4 sm:$0xff]   ;;  %v1173_v57 = vld [vmem:[%s1477_s1 + $0x1a8] ss:$16 sps:$4 sm:$0xff]  }
  0x1a   : > { %713 = vmatprep.mubr.bf16.mxu0 %v993_v47  ;;  %754 = vmatprep.mubr.bf16.mxu1 %v993_v47  ;;  %v1174_v58 = vld [vmem:[%s1477_s1 + $0x1c4] ss:$16 sps:$4 sm:$0xff]   ;;  %v1176_v59 = vld [vmem:[%s1477_s1 + $0x1cc] ss:$16 sps:$4 sm:$0xff]   ;;  %v1178_v60 = vld [vmem:[%s1477_s1 + $0x1c0] ss:$16 sps:$4 sm:$0xff]  }
  0x1b   : > { %v1179_v61 = vld [vmem:[%s1477_s1 + $0x1c8] ss:$16 sps:$4 sm:$0xff]   ;;  %v1180_v62 = vld [vmem:[%s1477_s1 + $0x1e4] ss:$16 sps:$4 sm:$0xff]   ;;  %v1182_v63 = vld [vmem:[%s1477_s1 + $0x1ec] ss:$16 sps:$4 sm:$0xff]  }
  0x1c   : > { %692 = vmatpush1.bf16.msra.mxu0 %v1124_v22  ;;  %733 = vmatpush1.bf16.msra.mxu1 %v1125_v23  ;;  %v1184_v0 = vld [vmem:[%s1477_s1 + $0x1e0] ss:$16 sps:$4 sm:$0xff]   ;;  %v1185_v1 = vld [vmem:[%s1477_s1 + $0x1e8] ss:$16 sps:$4 sm:$0xff]   ;;  %v786_v8 = vsub.s32 1, %v781_v4  ;;  %v794_v9 = vsub.s32 3, %v781_v4 }
  0x1d   : > { %693 = vmatprep.subr.bf16.mxu0 %v1126_v24  ;;  %734 = vmatprep.subr.bf16.mxu1 %v1128_v25  ;;  %v778_v7 = vld [vmem:[%s1478_s2] sm:$0xf]  ;;  %s1063_s8 = sshll.u32 %s1485_s12, 4 }
  0x1e   : > { %v783_v10 = vrot.slane %v778_v7, %v782_v5  ;;  %v791_v11 = vrot.slane %v778_v7, %v790_v6  ;;  %v787_v12 = vrot.slane %v778_v7, %v786_v8  ;;  %v795_v13 = vrot.slane %v778_v7, %v794_v9  ;;  %s275_s11 = scalar_lea.vmem %s1479_s3, %s1063_s8 }
  0x20   : > { %694 = vmatpush1.bf16.msra.mxu0 %v1130_v26  ;;  %735 = vmatpush1.bf16.msra.mxu1 %v1131_v27 }
  0x21   : > { %695 = vmatprep.subr.bf16.mxu0 %v1132_v28  ;;  %736 = vmatprep.subr.bf16.mxu1 %v1134_v29 }
  0x24   : > { %696 = vmatpush1.bf16.msra.mxu0 %v1136_v30  ;;  %737 = vmatpush1.bf16.msra.mxu1 %v1137_v31 }
  0x25   : > { %697 = vmatprep.subr.bf16.mxu0 %v1138_v32  ;;  %738 = vmatprep.subr.bf16.mxu1 %v1140_v33 }
  0x28   : > { %698 = vmatpush1.bf16.msra.mxu0 %v1142_v34  ;;  %739 = vmatpush1.bf16.msra.mxu1 %v1143_v35 }
  0x29   : > { %699 = vmatprep.subr.bf16.mxu0 %v1144_v36  ;;  %740 = vmatprep.subr.bf16.mxu1 %v1146_v37 }
  0x2c   : > { %700 = vmatpush1.bf16.msra.mxu0 %v1148_v38  ;;  %741 = vmatpush1.bf16.msra.mxu1 %v1149_v39 }
  0x2d   : > { %701 = vmatprep.subr.bf16.mxu0 %v1150_v40  ;;  %742 = vmatprep.subr.bf16.mxu1 %v1152_v41 }
  0x30   : > { %702 = vmatpush1.bf16.msra.mxu0 %v1154_v42  ;;  %743 = vmatpush1.bf16.msra.mxu1 %v1155_v43 }
  0x31   : > { %703 = vmatprep.subr.bf16.mxu0 %v1156_v44  ;;  %744 = vmatprep.subr.bf16.mxu1 %v1158_v45 }
  0x34   : > { %704 = vmatpush1.bf16.msra.mxu0 %v1160_v48  ;;  %745 = vmatpush1.bf16.msra.mxu1 %v1161_v49 }
  0x35   : > { %705 = vmatprep.subr.bf16.mxu0 %v1162_v50  ;;  %746 = vmatprep.subr.bf16.mxu1 %v1164_v51 }
  0x38   : > { %706 = vmatpush1.bf16.msra.mxu0 %v1166_v52  ;;  %747 = vmatpush1.bf16.msra.mxu1 %v1167_v53 }
  0x39   : > { %707 = vmatprep.subr.bf16.mxu0 %v1168_v54  ;;  %748 = vmatprep.subr.bf16.mxu1 %v1170_v55 }
  0x3c   : > { %708 = vmatpush1.bf16.msra.mxu0 %v1172_v56  ;;  %749 = vmatpush1.bf16.msra.mxu1 %v1173_v57 }
  0x3d   : > { %709 = vmatprep.subr.bf16.mxu0 %v1174_v58  ;;  %750 = vmatprep.subr.bf16.mxu1 %v1176_v59 }
  0x40   : > { %710 = vmatpush1.bf16.msra.mxu0 %v1178_v60  ;;  %751 = vmatpush1.bf16.msra.mxu1 %v1179_v61 }
  0x41   : > { %711 = vmatprep.subr.bf16.mxu0 %v1180_v62  ;;  %752 = vmatprep.subr.bf16.mxu1 %v1182_v63 }
  0x44   : > { %712 = vmatpush1.bf16.msra.mxu0 %v1184_v0  ;;  %753 = vmatpush1.bf16.msra.mxu1 %v1185_v1 }
  0x47   : > { %714 = vmatmul.mubr.bf16.vlgmr.msra.gmra.mrb[0].mxu0 %v992_v2  ;;  %755 = vmatmul.mubr.bf16.vlgmr.msra.gmra.mrb[0].mxu1 %v992_v2 }
 0x11a   : > { %v715_v14 = vpop.f32.mrb[0].mxu0  ;;  %v756_v15 = vpop.f32.mrb[0].mxu1 }
 0x11b   : > { %v800_v16 = vadd.f32 %v783_v10, %v715_v14  ;;  %v802_v17 = vadd.f32 %v791_v11, %v756_v15  ;;  %v717_v18 = vpop.f32.mrb[1].mxu0  ;;  %v758_v19 = vpop.f32.mrb[1].mxu1 }
 0x11c   : > { %v801_v20 = vadd.f32 %v787_v12, %v717_v18  ;;  %v803_v21 = vadd.f32 %v795_v13, %v758_v19  ;;  %v719_v22 = vpop.f32.mrb[2].mxu0  ;;  %v760_v23 = vpop.f32.mrb[2].mxu1 }
 0x11d   : > { %v808_v24 = vmul.f32 0.044715, %v800_v16  ;;  %v810_v25 = vmul.f32 0.044715, %v802_v17  ;;  %v720_v30 = vpop.f32.mrb[3].mxu0  ;;  %v761_v31 = vpop.f32.mrb[3].mxu1 }
 0x11e   : > { %v809_v26 = vmul.f32 0.044715, %v801_v20  ;;  %v811_v27 = vmul.f32 0.044715, %v803_v21  ;;  %v804_v48 = vmul.f32 0.5, %v800_v16  ;;  %v806_v51 = vmul.f32 0.5, %v802_v17 }
 0x11f   : > { %v812_v28 = vmul.f32 %v808_v24, %v800_v16  ;;  %v814_v29 = vmul.f32 %v810_v25, %v802_v17  ;;  %v805_v55 = vmul.f32 0.5, %v801_v20  ;;  %v807_v58 = vmul.f32 0.5, %v803_v21 }
 0x120   : > { %v813_v32 = vmul.f32 %v809_v26, %v801_v20  ;;  %v815_v33 = vmul.f32 %v811_v27, %v803_v21 }
 0x121   : > { %v816_v34 = vmul.f32 %v812_v28, %v800_v16  ;;  %v818_v35 = vmul.f32 %v814_v29, %v802_v17 }
 0x122   : > { %v817_v36 = vmul.f32 %v813_v32, %v801_v20  ;;  %v819_v37 = vmul.f32 %v815_v33, %v803_v21 }
 0x123   : > { %v820_v38 = vadd.f32 %v816_v34, %v800_v16  ;;  %v822_v39 = vadd.f32 %v818_v35, %v802_v17 }
 0x124   : > { %v821_v40 = vadd.f32 %v817_v36, %v801_v20  ;;  %v823_v41 = vadd.f32 %v819_v37, %v803_v21 }
 0x125   : > { %v824_v42 = vmul.f32 0.7978846, %v820_v38  ;;  %v826_v43 = vmul.f32 0.7978846, %v822_v39 }
 0x126   : > { %v825_v44 = vmul.f32 0.7978846, %v821_v40  ;;  %v827_v45 = vmul.f32 0.7978846, %v823_v41 }
 0x127   : > { %1188 = vtanh.f32 %v824_v42 }
 0x128   : > { %1190 = vtanh.f32 %v826_v43 }
 0x129   : > { %1192 = vtanh.f32 %v825_v44 }
 0x12a   : > { %1194 = vtanh.f32 %v827_v45 }
 0x131   : > { %v1189_v46 = vpop.eup %1188 }
 0x132   : > { %v1191_v47 = vpop.eup %1190  ;;  %v832_v49 = vadd.f32 1.0, %v1189_v46 }
 0x133   : > { %v1193_v50 = vpop.eup %1192  ;;  %v834_v52 = vadd.f32 1.0, %v1191_v47 }
 0x134   : > { %v1195_v53 = vpop.eup %1194  ;;  %v836_v54 = vmul.f32 %v832_v49, %v804_v48  ;;  %v833_v56 = vadd.f32 1.0, %v1193_v50 }
 0x135   : > { %v838_v57 = vmul.f32 %v834_v52, %v806_v51  ;;  %v835_v59 = vadd.f32 1.0, %v1195_v53 }
 0x136   : > { %v837_v60 = vmul.f32 %v833_v56, %v805_v55 }
 0x137   : > { %v839_v61 = vmul.f32 %v835_v59, %v807_v58 }
 0x138   : > { %v1064_v62 = vpack.c.bf16 %v837_v60, %v836_v54 }
 0x139   : > { %v1065_v63 = vpack.c.bf16 %v839_v61, %v838_v57 }
 0x13a   : > { %856 = vst [vmem:[%s275_s11] sm:$0xff] %v1064_v62 }
 0x13b   : > { %857 = vst [vmem:[%s275_s11 + $0x8] sm:$0xff] %v1065_v63 }
 0x13c PF: > { %s13_s14 = sadd.s32 1, %s1218_s14   ;;  %s1480_s12 = smov %s1214_s13 }
 0x13d   : > { %p10_p5 = scmp.ge.s32.totalorder %s13_s14, 4   ;;  %s1481_s13 = smov %s1483_s15 }
 0x13f   :  { %12 = sbr.rel (!%p10_p5) target bundleno = 2 (0x2), region = 76 }

// kernel: bert4classify_forward.17
= control target key start
LH: loop header
LB: loop body
LE: loop exit
PB: predicated region body
PF: predicated region fallthrough
CT: control target
= control target key end

     0   :  { %s1266_s21 = smov 0   ;;  %s1268_s22 = smov 0   ;;  %s1515_s0 = inlined_call_operand.vmem [shape: bf16[16,512], index: 0, kind: input, shape index: {}]   ;;  %s1516_s1 = inlined_call_operand.vmem [shape: bf16[512,256], index: 1, kind: input, shape index: {}]   ;;  %s1517_s2 = inlined_call_operand.vmem [shape: f32[1,256], index: 2, kind: input, shape index: {}]   ;;  %s1518_s3 = inlined_call_operand.vmem [shape: bf16[16,256], index: 3, kind: input, shape index: {}]   ;;  %s1519_s4 = inlined_call_operand.vmem [shape: f32[1,256], index: 4, kind: input, shape index: {}]   ;;  %s1520_s5 = inlined_call_operand.vmem [shape: f32[1,256], index: 5, kind: input, shape index: {}]   ;;  %s1521_s6 = inlined_call_operand.vmem [shape: bf16[16,256], index: 6, kind: output, shape index: {}]  }
   0x1   :  { %s1270_s23 = smov 0  }
   0x2 LB: > { %s28_s24 = sadd.s32 1, %s1225_s22  ;;  %p999_p0 = scmp.ge.s32.totalorder %s1229_s23, 1  ;;  %s1229_s23 = sphi %s1270_s23, %s16_s23   ;;  %s1225_s22 = sphi %s1268_s22, %s1523_s22   ;;  %s1221_s21 = sphi %s1266_s21, %s1522_s21  }
   0x3   : > { %p30_p1 = scmp.ge.s32.totalorder %s28_s24, 2  ;;  %p253_p2 = scmp.lt.s32.totalorder %s1229_s23, 3 }
   0x5   : > { %s1525_s24 = smov (%p30_p1, %s28_s24), 0  ;;  %p254_p3 = pnand %p999_p0, %p253_p2 }
   0x6   : > { %v1105_v0 = vld [vmem:[%s1516_s1 + $0x4] ss:$8 sps:$4 sm:$0xff] (!%p254_p3)   ;;  %v1109_v2 = vld [vmem:[%s1516_s1] ss:$8 sps:$4 sm:$0xff] (!%p254_p3)   ;;  %v1111_v4 = vld [vmem:[%s1516_s1 + $0x14] ss:$8 sps:$4 sm:$0xff] (!%p254_p3)  }
   0x7   : > { %257 = sbr.rel (%p254_p3) target bundleno = 609 (0x261), region = 44  ;;  %v1107_v1 = vld [vmem:[%s1516_s1 + $0x104] ss:$8 sps:$4 sm:$0xff] (!%p254_p3)   ;;  %733 = vmatprep.subr.bf16.mxu0 (!%p254_p3), %v1105_v0  ;;  %v1110_v3 = vld [vmem:[%s1516_s1 + $0x100] ss:$8 sps:$4 sm:$0xff] (!%p254_p3)   ;;  %p299_p4 = scmp.lt.s32.totalorder (!%p254_p3), %s1221_s21, 1 }
   0x8   : > { %774 = vmatprep.subr.bf16.mxu1 (!%p254_p3), %v1107_v1  ;;  %734 = vmatpush1.bf16.msra.mxu0 (!%p254_p3), %v1109_v2  ;;  %v1113_v5 = vld [vmem:[%s1516_s1 + $0x114] ss:$8 sps:$4 sm:$0xff] (!%p254_p3)   ;;  %v1115_v6 = vld [vmem:[%s1516_s1 + $0x10] ss:$8 sps:$4 sm:$0xff] (!%p254_p3)   ;;  %v1117_v8 = vld [vmem:[%s1516_s1 + $0x24] ss:$8 sps:$4 sm:$0xff] (!%p254_p3)  }
   0x9   : > { %775 = vmatpush1.bf16.msra.mxu1 (!%p254_p3), %v1110_v3  ;;  %735 = vmatprep.subr.bf16.mxu0 (!%p254_p3), %v1111_v4  ;;  %v1116_v7 = vld [vmem:[%s1516_s1 + $0x110] ss:$8 sps:$4 sm:$0xff] (!%p254_p3)   ;;  %v1119_v9 = vld [vmem:[%s1516_s1 + $0x124] ss:$8 sps:$4 sm:$0xff] (!%p254_p3)   ;;  %v1121_v10 = vld [vmem:[%s1516_s1 + $0x20] ss:$8 sps:$4 sm:$0xff] (!%p254_p3)  }
   0xa   : > { %776 = vmatprep.subr.bf16.mxu1 (!%p254_p3), %v1113_v5  ;;  %v1122_v11 = vld [vmem:[%s1516_s1 + $0x120] ss:$8 sps:$4 sm:$0xff] (!%p254_p3)   ;;  %v1123_v12 = vld [vmem:[%s1516_s1 + $0x34] ss:$8 sps:$4 sm:$0xff] (!%p254_p3)   ;;  %v1127_v14 = vld [vmem:[%s1516_s1 + $0x30] ss:$8 sps:$4 sm:$0xff] (!%p254_p3)  }
   0xb   : > { %v1125_v13 = vld [vmem:[%s1516_s1 + $0x134] ss:$8 sps:$4 sm:$0xff] (!%p254_p3)   ;;  %v1128_v15 = vld [vmem:[%s1516_s1 + $0x130] ss:$8 sps:$4 sm:$0xff] (!%p254_p3)   ;;  %v1129_v16 = vld [vmem:[%s1516_s1 + $0x44] ss:$8 sps:$4 sm:$0xff] (!%p254_p3)  }
   0xc   : > { %736 = vmatpush1.bf16.msra.mxu0 (!%p254_p3), %v1115_v6  ;;  %v1131_v17 = vld [vmem:[%s1516_s1 + $0x144] ss:$8 sps:$4 sm:$0xff] (!%p254_p3)   ;;  %v1133_v18 = vld [vmem:[%s1516_s1 + $0x40] ss:$8 sps:$4 sm:$0xff] (!%p254_p3)   ;;  %v1135_v20 = vld [vmem:[%s1516_s1 + $0x54] ss:$8 sps:$4 sm:$0xff] (!%p254_p3)   ;;  %v826_v6 = vlaneseq (!%p254_p3) }
   0xd   : > { %777 = vmatpush1.bf16.msra.mxu1 (!%p254_p3), %v1116_v7  ;;  %737 = vmatprep.subr.bf16.mxu0 (!%p254_p3), %v1117_v8  ;;  %v1134_v19 = vld [vmem:[%s1516_s1 + $0x140] ss:$8 sps:$4 sm:$0xff] (!%p254_p3)   ;;  %v1137_v21 = vld [vmem:[%s1516_s1 + $0x154] ss:$8 sps:$4 sm:$0xff] (!%p254_p3)   ;;  %v1139_v22 = vld [vmem:[%s1516_s1 + $0x50] ss:$8 sps:$4 sm:$0xff] (!%p254_p3)  }
   0xe   : > { %778 = vmatprep.subr.bf16.mxu1 %v1119_v9  ;;  %v1140_v23 = vld [vmem:[%s1516_s1 + $0x150] ss:$8 sps:$4 sm:$0xff]   ;;  %v1141_v24 = vld [vmem:[%s1516_s1 + $0x64] ss:$8 sps:$4 sm:$0xff]   ;;  %v1145_v26 = vld [vmem:[%s1516_s1 + $0x60] ss:$8 sps:$4 sm:$0xff]  }
   0xf   : > { %v1143_v25 = vld [vmem:[%s1516_s1 + $0x164] ss:$8 sps:$4 sm:$0xff]   ;;  %v1146_v27 = vld [vmem:[%s1516_s1 + $0x160] ss:$8 sps:$4 sm:$0xff]   ;;  %v1147_v28 = vld [vmem:[%s1516_s1 + $0x74] ss:$8 sps:$4 sm:$0xff]  }
  0x10   : > { %738 = vmatpush1.bf16.msra.mxu0 %v1121_v10  ;;  %v1149_v29 = vld [vmem:[%s1516_s1 + $0x174] ss:$8 sps:$4 sm:$0xff]   ;;  %v1151_v30 = vld [vmem:[%s1516_s1 + $0x70] ss:$8 sps:$4 sm:$0xff]   ;;  %v1153_v32 = vld [vmem:[%s1516_s1 + $0x84] ss:$8 sps:$4 sm:$0xff]  }
  0x11   : > { %779 = vmatpush1.bf16.msra.mxu1 %v1122_v11  ;;  %739 = vmatprep.subr.bf16.mxu0 %v1123_v12  ;;  %v1152_v31 = vld [vmem:[%s1516_s1 + $0x170] ss:$8 sps:$4 sm:$0xff]   ;;  %v1155_v33 = vld [vmem:[%s1516_s1 + $0x184] ss:$8 sps:$4 sm:$0xff]   ;;  %v1157_v34 = vld [vmem:[%s1516_s1 + $0x80] ss:$8 sps:$4 sm:$0xff]  }
  0x12   : > { %780 = vmatprep.subr.bf16.mxu1 %v1125_v13  ;;  %v1158_v35 = vld [vmem:[%s1516_s1 + $0x180] ss:$8 sps:$4 sm:$0xff]   ;;  %v1159_v36 = vld [vmem:[%s1516_s1 + $0x94] ss:$8 sps:$4 sm:$0xff]   ;;  %s1527_s21 = smov (!%p299_p4, %s1221_s21), 1  ;;  %v827_v7 = vshrl.u32 %v826_v6, 7 }
  0x13   : > { %v1161_v37 = vld [vmem:[%s1516_s1 + $0x194] ss:$8 sps:$4 sm:$0xff]   ;;  %v1163_v38 = vld [vmem:[%s1516_s1 + $0x90] ss:$8 sps:$4 sm:$0xff]   ;;  %v1165_v40 = vld [vmem:[%s1516_s1 + $0xa4] ss:$8 sps:$4 sm:$0xff]  }
  0x14   : > { %740 = vmatpush1.bf16.msra.mxu0 %v1127_v14  ;;  %v1164_v39 = vld [vmem:[%s1516_s1 + $0x190] ss:$8 sps:$4 sm:$0xff]   ;;  %s1077_s27 = sshll.u32 %s1527_s21, 4  ;;  %v1167_v41 = vld [vmem:[%s1516_s1 + $0x1a4] ss:$8 sps:$4 sm:$0xff]   ;;  %s1078_s13 = sshll.u32 %s1527_s21, 3 }
  0x15   : > { %781 = vmatpush1.bf16.msra.mxu1 %v1128_v15  ;;  %741 = vmatprep.subr.bf16.mxu0 %v1129_v16  ;;  %v1169_v42 = vld [vmem:[%s1516_s1 + $0xa0] ss:$8 sps:$4 sm:$0xff]   ;;  %s306_s12 = scalar_lea.vmem %s1515_s0, %s1077_s27  ;;  %v1171_v44 = vld [vmem:[%s1516_s1 + $0xb4] ss:$8 sps:$4 sm:$0xff]   ;;  %v1175_v49 = vld [vmem:[%s1516_s1 + $0xb0] ss:$8 sps:$4 sm:$0xff]   ;;  %s319_s16 = scalar_lea.vmem %s1518_s3, %s1078_s13 }
  0x16   : > { %782 = vmatprep.subr.bf16.mxu1 %v1131_v17  ;;  %v1170_v43 = vld [vmem:[%s1516_s1 + $0x1a0] ss:$8 sps:$4 sm:$0xff]   ;;  %v1173_v45 = vld [vmem:[%s1516_s1 + $0x1b4] ss:$8 sps:$4 sm:$0xff]   ;;  %v1176_v50 = vld [vmem:[%s1516_s1 + $0x1b0] ss:$8 sps:$4 sm:$0xff]   ;;  %s324_s29 = scalar_lea.vmem %s1521_s6, %s1078_s13 }
  0x17   : > { %v333_v46 = vld [vmem:[%s306_s12] sm:$0xff]  ;;  %v334_v48 = vld [vmem:[%s306_s12 + $0x8] sm:$0xff]  ;;  %v1183_v56 = vld [vmem:[%s1516_s1 + $0xd4] ss:$8 sps:$4 sm:$0xff]   ;;  %v828_v8 = vsub.s32 0, %v827_v7  ;;  %v832_v10 = vsub.s32 1, %v827_v7 }
  0x18   : > { %742 = vmatpush1.bf16.msra.mxu0 %v1133_v18  ;;  %v1007_v47 = vcombine.high %v333_v46, %v333_v46  ;;  %v1009_v51 = vcombine.high %v334_v48, %v334_v48  ;;  %v1177_v52 = vld [vmem:[%s1516_s1 + $0xc4] ss:$8 sps:$4 sm:$0xff]   ;;  %v1181_v54 = vld [vmem:[%s1516_s1 + $0xc0] ss:$8 sps:$4 sm:$0xff]   ;;  %v1185_v57 = vld [vmem:[%s1516_s1 + $0x1d4] ss:$8 sps:$4 sm:$0xff]   ;;  %v1006_v4 = vcombine.low %v333_v46, %v333_v46  ;;  %v1008_v5 = vcombine.low %v334_v48, %v334_v48 }
  0x19   : > { %783 = vmatpush1.bf16.msra.mxu1 %v1134_v19  ;;  %743 = vmatprep.subr.bf16.mxu0 %v1135_v20  ;;  %v1179_v53 = vld [vmem:[%s1516_s1 + $0x1c4] ss:$8 sps:$4 sm:$0xff]   ;;  %v1182_v55 = vld [vmem:[%s1516_s1 + $0x1c0] ss:$8 sps:$4 sm:$0xff]   ;;  %v1187_v58 = vld [vmem:[%s1516_s1 + $0xd0] ss:$8 sps:$4 sm:$0xff]  }
  0x1a   : > { %784 = vmatprep.subr.bf16.mxu1 %v1137_v21  ;;  %765 = vmatprep.mubr.bf16.mxu0 %v1007_v47  ;;  %v1188_v59 = vld [vmem:[%s1516_s1 + $0x1d0] ss:$8 sps:$4 sm:$0xff]   ;;  %v1189_v60 = vld [vmem:[%s1516_s1 + $0xe4] ss:$8 sps:$4 sm:$0xff]   ;;  %v1193_v62 = vld [vmem:[%s1516_s1 + $0xe0] ss:$8 sps:$4 sm:$0xff]  }
  0x1b   : > { %806 = vmatprep.mubr.bf16.mxu1 %v1009_v51  ;;  %v1191_v61 = vld [vmem:[%s1516_s1 + $0x1e4] ss:$8 sps:$4 sm:$0xff]   ;;  %v1194_v63 = vld [vmem:[%s1516_s1 + $0x1e0] ss:$8 sps:$4 sm:$0xff]   ;;  %v1195_v0 = vld [vmem:[%s1516_s1 + $0xf4] ss:$8 sps:$4 sm:$0xff]  }
  0x1c   : > { %744 = vmatpush1.bf16.msra.mxu0 %v1139_v22  ;;  %v1197_v1 = vld [vmem:[%s1516_s1 + $0x1f4] ss:$8 sps:$4 sm:$0xff]   ;;  %v1199_v2 = vld [vmem:[%s1516_s1 + $0xf0] ss:$8 sps:$4 sm:$0xff]   ;;  %v824_v9 = vld [vmem:[%s1517_s2] sm:$0x3] }
  0x1d   : > { %785 = vmatpush1.bf16.msra.mxu1 %v1140_v23  ;;  %745 = vmatprep.subr.bf16.mxu0 %v1141_v24  ;;  %v1200_v3 = vld [vmem:[%s1516_s1 + $0x1f0] ss:$8 sps:$4 sm:$0xff]   ;;  %v838_v11 = vld [vmem:[%s319_s16] sm:$0xff]  ;;  %v829_v12 = vrot.slane %v824_v9, %v828_v8  ;;  %v833_v15 = vrot.slane %v824_v9, %v832_v10 }
  0x1e   : > { %786 = vmatprep.subr.bf16.mxu1 %v1143_v25  ;;  %v839_v19 = vunpack.c.l.bf16 %v838_v11  ;;  %v840_v23 = vunpack.c.h.bf16 %v838_v11 }
  0x20   : > { %746 = vmatpush1.bf16.msra.mxu0 %v1145_v26 }
  0x21   : > { %787 = vmatpush1.bf16.msra.mxu1 %v1146_v27  ;;  %747 = vmatprep.subr.bf16.mxu0 %v1147_v28 }
  0x22   : > { %788 = vmatprep.subr.bf16.mxu1 %v1149_v29 }
  0x24   : > { %748 = vmatpush1.bf16.msra.mxu0 %v1151_v30 }
  0x25   : > { %789 = vmatpush1.bf16.msra.mxu1 %v1152_v31  ;;  %749 = vmatprep.subr.bf16.mxu0 %v1153_v32 }
  0x26   : > { %790 = vmatprep.subr.bf16.mxu1 %v1155_v33 }
  0x28   : > { %750 = vmatpush1.bf16.msra.mxu0 %v1157_v34 }
  0x29   : > { %791 = vmatpush1.bf16.msra.mxu1 %v1158_v35  ;;  %751 = vmatprep.subr.bf16.mxu0 %v1159_v36 }
  0x2a   : > { %792 = vmatprep.subr.bf16.mxu1 %v1161_v37 }
  0x2c   : > { %752 = vmatpush1.bf16.msra.mxu0 %v1163_v38 }
  0x2d   : > { %793 = vmatpush1.bf16.msra.mxu1 %v1164_v39  ;;  %753 = vmatprep.subr.bf16.mxu0 %v1165_v40 }
  0x2e   : > { %794 = vmatprep.subr.bf16.mxu1 %v1167_v41  ;;  %v860_v41 = vld [vmem:[%s1519_s4] sm:$0x3] }
  0x30   : > { %754 = vmatpush1.bf16.msra.mxu0 %v1169_v42  ;;  %v874_v42 = vld [vmem:[%s1520_s5] sm:$0x3] }
  0x31   : > { %795 = vmatpush1.bf16.msra.mxu1 %v1170_v43  ;;  %755 = vmatprep.subr.bf16.mxu0 %v1171_v44  ;;  %v865_v43 = vrot.slane %v860_v41, %v828_v8  ;;  %v869_v44 = vrot.slane %v860_v41, %v832_v10  ;;  %v879_v46 = vrot.slane %v874_v42, %v828_v8 }
  0x32   : > { %796 = vmatprep.subr.bf16.mxu1 %v1173_v45  ;;  %v883_v47 = vrot.slane %v874_v42, %v832_v10 }
  0x34   : > { %756 = vmatpush1.bf16.msra.mxu0 %v1175_v49 }
  0x35   : > { %797 = vmatpush1.bf16.msra.mxu1 %v1176_v50  ;;  %757 = vmatprep.subr.bf16.mxu0 %v1177_v52 }
  0x36   : > { %798 = vmatprep.subr.bf16.mxu1 %v1179_v53 }
  0x38   : > { %758 = vmatpush1.bf16.msra.mxu0 %v1181_v54 }
  0x39   : > { %799 = vmatpush1.bf16.msra.mxu1 %v1182_v55  ;;  %759 = vmatprep.subr.bf16.mxu0 %v1183_v56 }
  0x3a   : > { %800 = vmatprep.subr.bf16.mxu1 %v1185_v57 }
  0x3c   : > { %760 = vmatpush1.bf16.msra.mxu0 %v1187_v58 }
  0x3d   : > { %801 = vmatpush1.bf16.msra.mxu1 %v1188_v59  ;;  %761 = vmatprep.subr.bf16.mxu0 %v1189_v60 }
  0x3e   : > { %802 = vmatprep.subr.bf16.mxu1 %v1191_v61 }
  0x40   : > { %762 = vmatpush1.bf16.msra.mxu0 %v1193_v62 }
  0x41   : > { %803 = vmatpush1.bf16.msra.mxu1 %v1194_v63  ;;  %763 = vmatprep.subr.bf16.mxu0 %v1195_v0 }
  0x42   : > { %804 = vmatprep.subr.bf16.mxu1 %v1197_v1 }
  0x44   : > { %764 = vmatpush1.bf16.msra.mxu0 %v1199_v2 }
  0x45   : > { %805 = vmatpush1.bf16.msra.mxu1 %v1200_v3 }
  0x47   : > { %766 = vmatmul.mubr.bf16.vlgmr.msra.gmra.mrb[0].mxu0 %v1006_v4 }
  0x48   : > { %807 = vmatmul.mubr.bf16.vlgmr.msra.gmra.mrb[0].mxu1 %v1008_v5 }
 0x11a   : > { %v767_v13 = vpop.f32.mrb[0].mxu0 }
 0x11b   : > { %v808_v14 = vpop.f32.mrb[0].mxu1  ;;  %v769_v17 = vpop.f32.mrb[1].mxu0 }
 0x11c   : > { %v809_v16 = vadd.f32 %v808_v14, %v767_v13  ;;  %v810_v18 = vpop.f32.mrb[1].mxu1  ;;  %v771_v21 = vpop.f32.mrb[2].mxu0 }
 0x11d   : > { %v811_v20 = vadd.f32 %v810_v18, %v769_v17  ;;  %v812_v22 = vpop.f32.mrb[2].mxu1  ;;  %v772_v25 = vpop.f32.mrb[3].mxu0 }
 0x11e   : > { %v836_v24 = vadd.f32 %v829_v12, %v809_v16  ;;  %v813_v26 = vpop.f32.mrb[3].mxu1 }
 0x11f   : > { %v837_v27 = vadd.f32 %v833_v15, %v811_v20 }
 0x120   : > { %v841_v28 = vadd.f32 %v839_v19, %v836_v24 }
 0x121   : > { %v842_v29 = vadd.f32 %v840_v23, %v837_v27 }
 0x123   : > { %v843_v30 = vadd.f32 %v842_v29, %v841_v28 }
 0x125   : > { %844 = vadd.xlane.f32.xlu0 %v843_v30 }
 0x1b2   : > { %v845_v31 = vpop.xlane.xlu0 %844 }
 0x1b3   : > { %v847_v32 = vmul.f32 0.00390625, %v845_v31 }
 0x1b5   : > { %v848_v33 = vsub.f32 %v841_v28, %v847_v32  ;;  %v849_v34 = vsub.f32 %v842_v29, %v847_v32 }
 0x1b7   : > { %v850_v35 = vmul.f32 %v848_v33, %v848_v33  ;;  %v851_v36 = vmul.f32 %v849_v34, %v849_v34 }
 0x1b9   : > { %v852_v37 = vadd.f32 %v851_v36, %v850_v35 }
 0x1bb   : > { %853 = vadd.xlane.f32.xlu0 %v852_v37 }
 0x248   : > { %v854_v38 = vpop.xlane.xlu0 %853 }
 0x249   : > { %v855_v39 = vmul.f32 0.00390625, %v854_v38 }
 0x24b   : > { %v856_v40 = vadd.f32 1e-12, %v855_v39 }
 0x24d   : > { %1205 = vrsqrt.f32 %v856_v40 }
 0x257   : > { %v1206_v45 = vpop.eup %1205 }
 0x258   : > { %v858_v48 = vmul.f32 %v1206_v45, %v848_v33  ;;  %v859_v49 = vmul.f32 %v1206_v45, %v849_v34 }
 0x25a   : > { %v872_v50 = vmul.f32 %v865_v43, %v858_v48  ;;  %v873_v51 = vmul.f32 %v869_v44, %v859_v49 }
 0x25c   : > { %v886_v52 = vadd.f32 %v879_v46, %v872_v50  ;;  %v887_v53 = vadd.f32 %v883_v47, %v873_v51 }
 0x25e   : > { %v1080_v54 = vpack.c.bf16 %v887_v53, %v886_v52 }
 0x260   : > { %896 = vst [vmem:[%s324_s29] sm:$0xff] %v1080_v54 }
 0x261 PF: > { %s16_s23 = sadd.s32 1, %s1229_s23   ;;  %s1522_s21 = smov %s1225_s22 }
 0x262   : > { %p13_p5 = scmp.ge.s32.totalorder %s16_s23, 4   ;;  %s1523_s22 = smov %s1525_s24 }
 0x264   :  { %15 = sbr.rel (!%p13_p5) target bundleno = 2 (0x2), region = 88 }

// kernel: bert4classify_forward.18
= control target key start
LH: loop header
LB: loop body
LE: loop exit
PB: predicated region body
PF: predicated region fallthrough
CT: control target
= control target key end

     0   :  { %s1541_s12 = smov 0   ;;  %s1543_s13 = smov 0   ;;  %s1885_s0 = inlined_call_operand.vmem [shape: bf16[16,256], index: 0, kind: input, shape index: {}]   ;;  %s1886_s1 = inlined_call_operand.vmem [shape: bf16[256,768], index: 1, kind: input, shape index: {}]   ;;  %s1887_s2 = inlined_call_operand.vmem [shape: f32[1,768], index: 2, kind: input, shape index: {}]   ;;  %s1888_s3 = inlined_call_operand.vmem [shape: bf16[16,768], index: 3, kind: output, shape index: {}]  }
   0x1   :  { %s1545_s14 = smov 0  }
   0x2 LB: > { %s32_s15 = sadd.s32 1, %s1515_s13  ;;  %p1215_p0 = scmp.ge.s32.totalorder %s1519_s14, 1  ;;  %s1519_s14 = sphi %s1545_s14, %s13_s14   ;;  %s1515_s13 = sphi %s1543_s13, %s1890_s13   ;;  %s1511_s12 = sphi %s1541_s12, %s1889_s12  }
   0x3   : > { %p34_p1 = scmp.ge.s32.totalorder %s32_s15, 2  ;;  %p194_p2 = scmp.lt.s32.totalorder %s1519_s14, 3 }
   0x5   : > { %s1892_s15 = smov (%p34_p1, %s32_s15), 0  ;;  %p195_p3 = pnand %p1215_p0, %p194_p2 }
   0x6   : > { %v1351_v0 = vld [vmem:[%s1886_s1 + $0x4] ss:$24 sps:$4 sm:$0xff] (!%p195_p3)   ;;  %v1353_v1 = vld [vmem:[%s1886_s1] ss:$24 sps:$4 sm:$0xff] (!%p195_p3)   ;;  %v1354_v2 = vld [vmem:[%s1886_s1 + $0x34] ss:$24 sps:$4 sm:$0xff] (!%p195_p3)  }
   0x7   : > { %198 = sbr.rel (%p195_p3) target bundleno = 353 (0x161), region = 32  ;;  %877 = vmatprep.subr.bf16.mxu0 (!%p195_p3), %v1351_v0  ;;  %v1356_v3 = vld [vmem:[%s1886_s1 + $0x30] ss:$24 sps:$4 sm:$0xff] (!%p195_p3)   ;;  %v1357_v4 = vld [vmem:[%s1886_s1 + $0x64] ss:$24 sps:$4 sm:$0xff] (!%p195_p3)   ;;  %p241_p4 = scmp.lt.s32.totalorder (!%p195_p3), %s1511_s12, 1 }
   0x8   : > { %878 = vmatpush1.bf16.msra.mxu0 (!%p195_p3), %v1353_v1  ;;  %v1359_v5 = vld [vmem:[%s1886_s1 + $0x60] ss:$24 sps:$4 sm:$0xff] (!%p195_p3)   ;;  %v1360_v6 = vld [vmem:[%s1886_s1 + $0x94] ss:$24 sps:$4 sm:$0xff] (!%p195_p3)   ;;  %v1362_v7 = vld [vmem:[%s1886_s1 + $0x90] ss:$24 sps:$4 sm:$0xff] (!%p195_p3)  }
   0x9   : > { %879 = vmatprep.subr.bf16.mxu0 (!%p195_p3), %v1354_v2  ;;  %v1363_v8 = vld [vmem:[%s1886_s1 + $0xc4] ss:$24 sps:$4 sm:$0xff] (!%p195_p3)   ;;  %v1365_v9 = vld [vmem:[%s1886_s1 + $0xc0] ss:$24 sps:$4 sm:$0xff] (!%p195_p3)   ;;  %v1366_v10 = vld [vmem:[%s1886_s1 + $0xf4] ss:$24 sps:$4 sm:$0xff] (!%p195_p3)  }
   0xa   : > { %v1368_v11 = vld [vmem:[%s1886_s1 + $0xf0] ss:$24 sps:$4 sm:$0xff] (!%p195_p3)   ;;  %v1369_v12 = vld [vmem:[%s1886_s1 + $0x124] ss:$24 sps:$4 sm:$0xff] (!%p195_p3)   ;;  %v1371_v16 = vld [vmem:[%s1886_s1 + $0x120] ss:$24 sps:$4 sm:$0xff] (!%p195_p3)  }
   0xb   : > { %v1399_v13 = vld [vmem:[%s1886_s1 + $0xc] ss:$24 sps:$4 sm:$0xff] (!%p195_p3)   ;;  %v1401_v14 = vld [vmem:[%s1886_s1 + $0x8] ss:$24 sps:$4 sm:$0xff] (!%p195_p3)   ;;  %v1407_v19 = vld [vmem:[%s1886_s1 + $0x3c] ss:$24 sps:$4 sm:$0xff] (!%p195_p3)  }
   0xc   : > { %880 = vmatpush1.bf16.msra.mxu0 (!%p195_p3), %v1356_v3  ;;  %v1372_v18 = vld [vmem:[%s1886_s1 + $0x154] ss:$24 sps:$4 sm:$0xff] (!%p195_p3)   ;;  %918 = vmatprep.subr.bf16.mxu1 (!%p195_p3), %v1399_v13  ;;  %v1409_v20 = vld [vmem:[%s1886_s1 + $0x38] ss:$24 sps:$4 sm:$0xff] (!%p195_p3)   ;;  %v1375_v23 = vld [vmem:[%s1886_s1 + $0x184] ss:$24 sps:$4 sm:$0xff] (!%p195_p3)  }
   0xd   : > { %881 = vmatprep.subr.bf16.mxu0 (!%p195_p3), %v1357_v4  ;;  %919 = vmatpush1.bf16.msra.mxu1 (!%p195_p3), %v1401_v14  ;;  %v1374_v21 = vld [vmem:[%s1886_s1 + $0x150] ss:$24 sps:$4 sm:$0xff] (!%p195_p3)   ;;  %v1413_v22 = vld [vmem:[%s1886_s1 + $0x6c] ss:$24 sps:$4 sm:$0xff] (!%p195_p3)   ;;  %v1419_v25 = vld [vmem:[%s1886_s1 + $0x9c] ss:$24 sps:$4 sm:$0xff] (!%p195_p3)  }
   0xe   : > { %s1894_s12 = smov (!%p241_p4, %s1511_s12), 1  ;;  %920 = vmatprep.subr.bf16.mxu1 %v1407_v19  ;;  %v1415_v24 = vld [vmem:[%s1886_s1 + $0x68] ss:$24 sps:$4 sm:$0xff]   ;;  %v1378_v27 = vld [vmem:[%s1886_s1 + $0x1b4] ss:$24 sps:$4 sm:$0xff]  }
   0xf   : > { %s1322_s11 = sshll.u32 %s1894_s12, 3  ;;  %v1377_v26 = vld [vmem:[%s1886_s1 + $0x180] ss:$24 sps:$4 sm:$0xff]   ;;  %v1425_v29 = vld [vmem:[%s1886_s1 + $0xcc] ss:$24 sps:$4 sm:$0xff]   ;;  %s1326_s30 = smul.u32 24, %s1894_s12 }
  0x10   : > { %882 = vmatpush1.bf16.msra.mxu0 %v1359_v5  ;;  %s248_s20 = scalar_lea.vmem %s1885_s0, %s1322_s11  ;;  %v1421_v28 = vld [vmem:[%s1886_s1 + $0x98] ss:$24 sps:$4 sm:$0xff]   ;;  %v1381_v31 = vld [vmem:[%s1886_s1 + $0x1e4] ss:$24 sps:$4 sm:$0xff]   ;;  %v1427_v32 = vld [vmem:[%s1886_s1 + $0xc8] ss:$24 sps:$4 sm:$0xff]  }
  0x11   : > { %883 = vmatprep.subr.bf16.mxu0 %v1360_v6  ;;  %v1610_v15 = vld [vmem:[%s248_s20] sm:$0xff]  ;;  %921 = vmatpush1.bf16.msra.mxu1 %v1409_v20  ;;  %v1380_v30 = vld [vmem:[%s1886_s1 + $0x1b0] ss:$24 sps:$4 sm:$0xff]   ;;  %v1431_v33 = vld [vmem:[%s1886_s1 + $0xfc] ss:$24 sps:$4 sm:$0xff]   ;;  %s275_s6 = scalar_lea.vmem %s1888_s3, %s1326_s30 }
  0x12   : > { %v1617_v17 = vcombine.high %v1610_v15, %v1610_v15  ;;  %922 = vmatprep.subr.bf16.mxu1 %v1413_v22  ;;  %v1383_v34 = vld [vmem:[%s1886_s1 + $0x1e0] ss:$24 sps:$4 sm:$0xff]   ;;  %v1384_v35 = vld [vmem:[%s1886_s1 + $0x214] ss:$24 sps:$4 sm:$0xff]   ;;  %v1386_v38 = vld [vmem:[%s1886_s1 + $0x210] ss:$24 sps:$4 sm:$0xff]   ;;  %v1740_v57 = vcombine.low %v1610_v15, %v1610_v15 }
  0x13   : > { %v1433_v36 = vld [vmem:[%s1886_s1 + $0xf8] ss:$24 sps:$4 sm:$0xff]   ;;  %v1437_v37 = vld [vmem:[%s1886_s1 + $0x12c] ss:$24 sps:$4 sm:$0xff]   ;;  %v1439_v40 = vld [vmem:[%s1886_s1 + $0x128] ss:$24 sps:$4 sm:$0xff]  }
  0x14   : > { %884 = vmatpush1.bf16.msra.mxu0 %v1362_v7  ;;  %909 = vmatprep.mubr.bf16.mxu0 %v1617_v17  ;;  %v1387_v39 = vld [vmem:[%s1886_s1 + $0x244] ss:$24 sps:$4 sm:$0xff]   ;;  %v1389_v42 = vld [vmem:[%s1886_s1 + $0x240] ss:$24 sps:$4 sm:$0xff]   ;;  %v1390_v43 = vld [vmem:[%s1886_s1 + $0x274] ss:$24 sps:$4 sm:$0xff]  }
  0x15   : > { %885 = vmatprep.subr.bf16.mxu0 %v1363_v8  ;;  %950 = vmatprep.mubr.bf16.mxu1 %v1617_v17  ;;  %v1443_v41 = vld [vmem:[%s1886_s1 + $0x15c] ss:$24 sps:$4 sm:$0xff]   ;;  %v1445_v44 = vld [vmem:[%s1886_s1 + $0x158] ss:$24 sps:$4 sm:$0xff]   ;;  %v1449_v45 = vld [vmem:[%s1886_s1 + $0x18c] ss:$24 sps:$4 sm:$0xff]  }
  0x16   : > { %923 = vmatpush1.bf16.msra.mxu1 %v1415_v24  ;;  %v1392_v46 = vld [vmem:[%s1886_s1 + $0x270] ss:$24 sps:$4 sm:$0xff]   ;;  %v1393_v47 = vld [vmem:[%s1886_s1 + $0x2a4] ss:$24 sps:$4 sm:$0xff]   ;;  %v1395_v50 = vld [vmem:[%s1886_s1 + $0x2a0] ss:$24 sps:$4 sm:$0xff]  }
  0x17   : > { %924 = vmatprep.subr.bf16.mxu1 %v1419_v25  ;;  %v1451_v48 = vld [vmem:[%s1886_s1 + $0x188] ss:$24 sps:$4 sm:$0xff]   ;;  %v1455_v49 = vld [vmem:[%s1886_s1 + $0x1bc] ss:$24 sps:$4 sm:$0xff]   ;;  %v1457_v52 = vld [vmem:[%s1886_s1 + $0x1b8] ss:$24 sps:$4 sm:$0xff]  }
  0x18   : > { %886 = vmatpush1.bf16.msra.mxu0 %v1365_v9  ;;  %v1396_v51 = vld [vmem:[%s1886_s1 + $0x2d4] ss:$24 sps:$4 sm:$0xff]   ;;  %v1398_v54 = vld [vmem:[%s1886_s1 + $0x2d0] ss:$24 sps:$4 sm:$0xff]   ;;  %v1412_v60 = vld [vmem:[%s1886_s1 + $0x44] ss:$24 sps:$4 sm:$0xff]  }
  0x19   : > { %887 = vmatprep.subr.bf16.mxu0 %v1366_v10  ;;  %v1461_v53 = vld [vmem:[%s1886_s1 + $0x1ec] ss:$24 sps:$4 sm:$0xff]   ;;  %v1463_v56 = vld [vmem:[%s1886_s1 + $0x1e8] ss:$24 sps:$4 sm:$0xff]   ;;  %v1467_v58 = vld [vmem:[%s1886_s1 + $0x21c] ss:$24 sps:$4 sm:$0xff]  }
  0x1a   : > { %925 = vmatpush1.bf16.msra.mxu1 %v1421_v28  ;;  %v1406_v55 = vld [vmem:[%s1886_s1 + $0x14] ss:$24 sps:$4 sm:$0xff]   ;;  %v1404_v59 = vld [vmem:[%s1886_s1 + $0x10] ss:$24 sps:$4 sm:$0xff]   ;;  %v1410_v63 = vld [vmem:[%s1886_s1 + $0x40] ss:$24 sps:$4 sm:$0xff]  }
  0x1b   : > { %926 = vmatprep.subr.bf16.mxu1 %v1425_v29  ;;  %v1469_v61 = vld [vmem:[%s1886_s1 + $0x218] ss:$24 sps:$4 sm:$0xff]   ;;  %v1473_v62 = vld [vmem:[%s1886_s1 + $0x24c] ss:$24 sps:$4 sm:$0xff]   ;;  %v1475_v1 = vld [vmem:[%s1886_s1 + $0x248] ss:$24 sps:$4 sm:$0xff]  }
  0x1c   : > { %888 = vmatpush1.bf16.msra.mxu0 %v1368_v11  ;;  %v1418_v0 = vld [vmem:[%s1886_s1 + $0x74] ss:$24 sps:$4 sm:$0xff]   ;;  %v1416_v3 = vld [vmem:[%s1886_s1 + $0x70] ss:$24 sps:$4 sm:$0xff]   ;;  %v1424_v4 = vld [vmem:[%s1886_s1 + $0xa4] ss:$24 sps:$4 sm:$0xff]  }
  0x1d   : > { %889 = vmatprep.subr.bf16.mxu0 %v1369_v12  ;;  %v1479_v2 = vld [vmem:[%s1886_s1 + $0x27c] ss:$24 sps:$4 sm:$0xff]   ;;  %v1481_v5 = vld [vmem:[%s1886_s1 + $0x278] ss:$24 sps:$4 sm:$0xff]   ;;  %v1485_v6 = vld [vmem:[%s1886_s1 + $0x2ac] ss:$24 sps:$4 sm:$0xff]  }
  0x1e   : > { %927 = vmatpush1.bf16.msra.mxu1 %v1427_v32  ;;  %v1422_v7 = vld [vmem:[%s1886_s1 + $0xa0] ss:$24 sps:$4 sm:$0xff]   ;;  %v1430_v8 = vld [vmem:[%s1886_s1 + $0xd4] ss:$24 sps:$4 sm:$0xff]   ;;  %v1428_v11 = vld [vmem:[%s1886_s1 + $0xd0] ss:$24 sps:$4 sm:$0xff]  }
  0x1f   : > { %928 = vmatprep.subr.bf16.mxu1 %v1431_v33  ;;  %v1487_v9 = vld [vmem:[%s1886_s1 + $0x2a8] ss:$24 sps:$4 sm:$0xff]   ;;  %v1491_v10 = vld [vmem:[%s1886_s1 + $0x2dc] ss:$24 sps:$4 sm:$0xff]   ;;  %v1493_v13 = vld [vmem:[%s1886_s1 + $0x2d8] ss:$24 sps:$4 sm:$0xff]  }
  0x20   : > { %890 = vmatpush1.bf16.msra.mxu0 %v1371_v16  ;;  %v1436_v12 = vld [vmem:[%s1886_s1 + $0x104] ss:$24 sps:$4 sm:$0xff]   ;;  %v1434_v14 = vld [vmem:[%s1886_s1 + $0x100] ss:$24 sps:$4 sm:$0xff]   ;;  %v1442_v15 = vld [vmem:[%s1886_s1 + $0x134] ss:$24 sps:$4 sm:$0xff]  }
  0x21   : > { %891 = vmatprep.subr.bf16.mxu0 %v1372_v18  ;;  %v1440_v16 = vld [vmem:[%s1886_s1 + $0x130] ss:$24 sps:$4 sm:$0xff]   ;;  %v1446_v18 = vld [vmem:[%s1886_s1 + $0x160] ss:$24 sps:$4 sm:$0xff]   ;;  %v1454_v19 = vld [vmem:[%s1886_s1 + $0x194] ss:$24 sps:$4 sm:$0xff]  }
  0x22   : > { %929 = vmatpush1.bf16.msra.mxu1 %v1433_v36  ;;  %v1452_v20 = vld [vmem:[%s1886_s1 + $0x190] ss:$24 sps:$4 sm:$0xff]   ;;  %v1458_v22 = vld [vmem:[%s1886_s1 + $0x1c0] ss:$24 sps:$4 sm:$0xff]   ;;  %v1472_v25 = vld [vmem:[%s1886_s1 + $0x224] ss:$24 sps:$4 sm:$0xff]  }
  0x23   : > { %930 = vmatprep.subr.bf16.mxu1 %v1437_v37  ;;  %v1464_v24 = vld [vmem:[%s1886_s1 + $0x1f0] ss:$24 sps:$4 sm:$0xff]   ;;  %v1484_v29 = vld [vmem:[%s1886_s1 + $0x284] ss:$24 sps:$4 sm:$0xff]  }
  0x24   : > { %892 = vmatpush1.bf16.msra.mxu0 %v1374_v21  ;;  %v1460_v21 = vld [vmem:[%s1886_s1 + $0x1c4] ss:$24 sps:$4 sm:$0xff]   ;;  %v1476_v28 = vld [vmem:[%s1886_s1 + $0x250] ss:$24 sps:$4 sm:$0xff]  }
  0x25   : > { %893 = vmatprep.subr.bf16.mxu0 %v1375_v23  ;;  %v1466_v23 = vld [vmem:[%s1886_s1 + $0x1f4] ss:$24 sps:$4 sm:$0xff]   ;;  %v1488_v32 = vld [vmem:[%s1886_s1 + $0x2b0] ss:$24 sps:$4 sm:$0xff]   ;;  %v1496_v33 = vld [vmem:[%s1886_s1 + $0x2e4] ss:$24 sps:$4 sm:$0xff]  }
  0x26   : > { %931 = vmatpush1.bf16.msra.mxu1 %v1439_v40 }
  0x27   : > { %932 = vmatprep.subr.bf16.mxu1 %v1443_v41 }
  0x28   : > { %894 = vmatpush1.bf16.msra.mxu0 %v1377_v26  ;;  %v1470_v26 = vld [vmem:[%s1886_s1 + $0x220] ss:$24 sps:$4 sm:$0xff]  }
  0x29   : > { %895 = vmatprep.subr.bf16.mxu0 %v1378_v27  ;;  %v1478_v27 = vld [vmem:[%s1886_s1 + $0x254] ss:$24 sps:$4 sm:$0xff]  }
  0x2a   : > { %933 = vmatpush1.bf16.msra.mxu1 %v1445_v44 }
  0x2b   : > { %934 = vmatprep.subr.bf16.mxu1 %v1449_v45 }
  0x2c   : > { %896 = vmatpush1.bf16.msra.mxu0 %v1380_v30  ;;  %v1482_v30 = vld [vmem:[%s1886_s1 + $0x280] ss:$24 sps:$4 sm:$0xff]  }
  0x2d   : > { %897 = vmatprep.subr.bf16.mxu0 %v1381_v31  ;;  %v1490_v31 = vld [vmem:[%s1886_s1 + $0x2b4] ss:$24 sps:$4 sm:$0xff]  }
  0x2e   : > { %935 = vmatpush1.bf16.msra.mxu1 %v1451_v48 }
  0x2f   : > { %936 = vmatprep.subr.bf16.mxu1 %v1455_v49 }
  0x30   : > { %898 = vmatpush1.bf16.msra.mxu0 %v1383_v34  ;;  %v1494_v34 = vld [vmem:[%s1886_s1 + $0x2e0] ss:$24 sps:$4 sm:$0xff]  }
  0x31   : > { %899 = vmatprep.subr.bf16.mxu0 %v1384_v35  ;;  %v1023_v35 = vlaneseq }
  0x32   : > { %937 = vmatpush1.bf16.msra.mxu1 %v1457_v52 }
  0x33   : > { %938 = vmatprep.subr.bf16.mxu1 %v1461_v53  ;;  %v1024_v36 = vshrl.u32 %v1023_v35, 7 }
  0x34   : > { %900 = vmatpush1.bf16.msra.mxu0 %v1386_v38  ;;  %v1021_v38 = vld [vmem:[%s1887_s2] sm:$0x3f] }
  0x35   : > { %901 = vmatprep.subr.bf16.mxu0 %v1387_v39  ;;  %v1041_v37 = vsub.s32 4, %v1024_v36  ;;  %v1045_v39 = vsub.s32 5, %v1024_v36  ;;  %v1033_v53 = vsub.s32 2, %v1024_v36 }
  0x36   : > { %939 = vmatpush1.bf16.msra.mxu1 %v1463_v56 }
  0x37   : > { %940 = vmatprep.subr.bf16.mxu1 %v1467_v58  ;;  %v1042_v40 = vrot.slane %v1021_v38, %v1041_v37  ;;  %v1046_v41 = vrot.slane %v1021_v38, %v1045_v39 }
  0x38   : > { %902 = vmatpush1.bf16.msra.mxu0 %v1389_v42  ;;  %v1025_v42 = vsub.s32 0, %v1024_v36 }
  0x39   : > { %903 = vmatprep.subr.bf16.mxu0 %v1390_v43  ;;  %v1029_v43 = vsub.s32 1, %v1024_v36 }
  0x3a   : > { %941 = vmatpush1.bf16.msra.mxu1 %v1469_v61  ;;  %v1026_v44 = vrot.slane %v1021_v38, %v1025_v42 }
  0x3b   : > { %942 = vmatprep.subr.bf16.mxu1 %v1473_v62  ;;  %v1030_v45 = vrot.slane %v1021_v38, %v1029_v43 }
  0x3c   : > { %904 = vmatpush1.bf16.msra.mxu0 %v1392_v46 }
  0x3d   : > { %905 = vmatprep.subr.bf16.mxu0 %v1393_v47 }
  0x3e   : > { %943 = vmatpush1.bf16.msra.mxu1 %v1475_v1 }
  0x3f   : > { %944 = vmatprep.subr.bf16.mxu1 %v1479_v2 }
  0x40   : > { %906 = vmatpush1.bf16.msra.mxu0 %v1395_v50 }
  0x41   : > { %907 = vmatprep.subr.bf16.mxu0 %v1396_v51 }
  0x42   : > { %945 = vmatpush1.bf16.msra.mxu1 %v1481_v5 }
  0x43   : > { %946 = vmatprep.subr.bf16.mxu1 %v1485_v6 }
  0x44   : > { %908 = vmatpush1.bf16.msra.mxu0 %v1398_v54  ;;  %v1037_v54 = vsub.s32 3, %v1024_v36 }
  0x45   : > { %959 = vmatprep.subr.bf16.mxu0 %v1406_v55  ;;  %v1034_v55 = vrot.slane %v1021_v38, %v1033_v53 }
  0x46   : > { %947 = vmatpush1.bf16.msra.mxu1 %v1487_v9  ;;  %v1038_v56 = vrot.slane %v1021_v38, %v1037_v54 }
  0x47   : > { %910 = vmatmul.mubr.bf16.vlgmr.msra.gmra.mrb[0].mxu0 %v1740_v57  ;;  %948 = vmatprep.subr.bf16.mxu1 %v1491_v10 }
  0x48   : > { %960 = vmatpush1.bf16.msra.mxu0 %v1404_v59  ;;  %991 = vmatprep.mubr.bf16.mxu0 %v1617_v17  ;;  %v1448_v17 = vld [vmem:[%s1886_s1 + $0x164] ss:$24 sps:$4 sm:$0xff]  }
  0x49   : > { %961 = vmatprep.subr.bf16.mxu0 %v1412_v60 }
  0x4a   : > { %949 = vmatpush1.bf16.msra.mxu1 %v1493_v13 }
  0x4c   : > { %962 = vmatpush1.bf16.msra.mxu0 %v1410_v63 }
  0x4d   : > { %963 = vmatprep.subr.bf16.mxu0 %v1418_v0  ;;  %951 = vmatmul.mubr.bf16.vlgmr.msra.gmra.mrb[0].mxu1 %v1740_v57 }
  0x50   : > { %964 = vmatpush1.bf16.msra.mxu0 %v1416_v3 }
  0x51   : > { %965 = vmatprep.subr.bf16.mxu0 %v1424_v4 }
  0x54   : > { %966 = vmatpush1.bf16.msra.mxu0 %v1422_v7 }
  0x55   : > { %967 = vmatprep.subr.bf16.mxu0 %v1430_v8 }
  0x58   : > { %968 = vmatpush1.bf16.msra.mxu0 %v1428_v11 }
  0x59   : > { %969 = vmatprep.subr.bf16.mxu0 %v1436_v12 }
  0x5c   : > { %970 = vmatpush1.bf16.msra.mxu0 %v1434_v14 }
  0x5d   : > { %971 = vmatprep.subr.bf16.mxu0 %v1442_v15 }
  0x60   : > { %972 = vmatpush1.bf16.msra.mxu0 %v1440_v16 }
  0x61   : > { %973 = vmatprep.subr.bf16.mxu0 %v1448_v17 }
  0x64   : > { %974 = vmatpush1.bf16.msra.mxu0 %v1446_v18 }
  0x65   : > { %975 = vmatprep.subr.bf16.mxu0 %v1454_v19 }
  0x68   : > { %976 = vmatpush1.bf16.msra.mxu0 %v1452_v20 }
  0x69   : > { %977 = vmatprep.subr.bf16.mxu0 %v1460_v21 }
  0x6c   : > { %978 = vmatpush1.bf16.msra.mxu0 %v1458_v22 }
  0x6d   : > { %979 = vmatprep.subr.bf16.mxu0 %v1466_v23 }
  0x70   : > { %980 = vmatpush1.bf16.msra.mxu0 %v1464_v24 }
  0x71   : > { %981 = vmatprep.subr.bf16.mxu0 %v1472_v25 }
  0x74   : > { %982 = vmatpush1.bf16.msra.mxu0 %v1470_v26 }
  0x75   : > { %983 = vmatprep.subr.bf16.mxu0 %v1478_v27 }
  0x78   : > { %984 = vmatpush1.bf16.msra.mxu0 %v1476_v28 }
  0x79   : > { %985 = vmatprep.subr.bf16.mxu0 %v1484_v29 }
  0x7c   : > { %986 = vmatpush1.bf16.msra.mxu0 %v1482_v30 }
  0x7d   : > { %987 = vmatprep.subr.bf16.mxu0 %v1490_v31 }
  0x80   : > { %988 = vmatpush1.bf16.msra.mxu0 %v1488_v32 }
  0x81   : > { %989 = vmatprep.subr.bf16.mxu0 %v1496_v33 }
  0x84   : > { %990 = vmatpush1.bf16.msra.mxu0 %v1494_v34 }
  0x87   : > { %992 = vmatmul.mubr.bf16.vlgmr.msra.gmra.mrb[4].mxu0 %v1740_v57 }
 0x11a   : > { %v911_v46 = vpop.f32.mrb[0].mxu0 }
 0x11b   : > { %v1053_v47 = vadd.f32 %v1026_v44, %v911_v46  ;;  %v913_v48 = vpop.f32.mrb[1].mxu0 }
 0x11c   : > { %v1054_v49 = vadd.f32 %v1030_v45, %v913_v48  ;;  %v915_v50 = vpop.f32.mrb[2].mxu0 }
 0x11d   : > { %v916_v51 = vpop.f32.mrb[3].mxu0 }
 0x11e   : > { %v1323_v52 = vpack.c.bf16 %v1054_v49, %v1053_v47 }
 0x120   : > { %1083 = vst [vmem:[%s275_s6] sm:$0xff] %v1323_v52  ;;  %v952_v57 = vpop.f32.mrb[0].mxu1 }
 0x121   : > { %v1055_v58 = vadd.f32 %v1034_v55, %v952_v57  ;;  %v954_v59 = vpop.f32.mrb[1].mxu1 }
 0x122   : > { %v1056_v60 = vadd.f32 %v1038_v56, %v954_v59  ;;  %v956_v61 = vpop.f32.mrb[2].mxu1 }
 0x123   : > { %v957_v62 = vpop.f32.mrb[3].mxu1 }
 0x124   : > { %v1324_v63 = vpack.c.bf16 %v1056_v60, %v1055_v58 }
 0x126   : > { %1084 = vst [vmem:[%s275_s6 + $0x8] sm:$0xff] %v1324_v63 }
 0x15a   : > { %v993_v0 = vpop.f32.mrb[4].mxu0 }
 0x15b   : > { %v1057_v1 = vadd.f32 %v1042_v40, %v993_v0  ;;  %v995_v2 = vpop.f32.mrb[5].mxu0 }
 0x15c   : > { %v1058_v3 = vadd.f32 %v1046_v41, %v995_v2  ;;  %v997_v4 = vpop.f32.mrb[6].mxu0 }
 0x15d   : > { %v998_v5 = vpop.f32.mrb[7].mxu0 }
 0x15e   : > { %v1325_v6 = vpack.c.bf16 %v1058_v3, %v1057_v1 }
 0x160   : > { %1085 = vst [vmem:[%s275_s6 + $0x10] sm:$0xff] %v1325_v6 }
 0x161 PF: > { %s13_s14 = sadd.s32 1, %s1519_s14   ;;  %s1889_s12 = smov %s1515_s13 }
 0x162   : > { %p10_p5 = scmp.ge.s32.totalorder %s13_s14, 4   ;;  %s1890_s13 = smov %s1892_s15 }
 0x164   :  { %12 = sbr.rel (!%p10_p5) target bundleno = 2 (0x2), region = 76 }

// kernel: bert4classify_forward.23
= control target key start
LH: loop header
LB: loop body
LE: loop exit
PB: predicated region body
PF: predicated region fallthrough
CT: control target
= control target key end

     0   :  { %v57_v9 = vlaneseq  ;;  %v654_v10 = vmov 1966171168   ;;  %s860_s0 = inlined_call_operand.vmem [shape: bf16[2,256], index: 0, kind: input, shape index: {}]   ;;  %s861_s1 = inlined_call_operand.vmem [shape: bf16[256,256], index: 1, kind: input, shape index: {}]   ;;  %s862_s2 = inlined_call_operand.vmem [shape: f32[1,256], index: 2, kind: input, shape index: {}]   ;;  %s863_s3 = inlined_call_operand.vmem [shape: bf16[256,4], index: 3, kind: input, shape index: {}]   ;;  %s864_s4 = inlined_call_operand.vmem [shape: f32[1,4], index: 4, kind: input, shape index: {}]   ;;  %s865_s5 = inlined_call_operand.hbm [shape: f32[2,4], index: 5, kind: output, shape index: {}]  }
   0x1   :  { %v562_v0 = vld [vmem:[%s861_s1 + $0x4] ss:$8 sps:$4 sm:$0xff]   ;;  %v564_v1 = vld [vmem:[%s861_s1] ss:$8 sps:$4 sm:$0xff]   ;;  %v565_v2 = vld [vmem:[%s861_s1 + $0x14] ss:$8 sps:$4 sm:$0xff]   ;;  %v77_v11 = vunpack.c.l.s4 %v654_v10 }
   0x2   :  { %252 = vmatprep.subr.bf16.mxu0 %v562_v0  ;;  %v567_v3 = vld [vmem:[%s861_s1 + $0x10] ss:$8 sps:$4 sm:$0xff]   ;;  %v568_v4 = vld [vmem:[%s861_s1 + $0x24] ss:$8 sps:$4 sm:$0xff]   ;;  %v570_v5 = vld [vmem:[%s861_s1 + $0x20] ss:$8 sps:$4 sm:$0xff]  }
   0x3   :  { %253 = vmatpush1.bf16.msra.mxu0 %v564_v1  ;;  %v571_v6 = vld [vmem:[%s861_s1 + $0x34] ss:$8 sps:$4 sm:$0xff]   ;;  %v573_v7 = vld [vmem:[%s861_s1 + $0x30] ss:$8 sps:$4 sm:$0xff]   ;;  %v574_v8 = vld [vmem:[%s861_s1 + $0x44] ss:$8 sps:$4 sm:$0xff]   ;;  %v78_v15 = vunpack.c.0.s8 %v77_v11 }
   0x4   :  { %254 = vmatprep.subr.bf16.mxu0 %v565_v2  ;;  %v576_v12 = vld [vmem:[%s861_s1 + $0x40] ss:$8 sps:$4 sm:$0xff]   ;;  %v577_v13 = vld [vmem:[%s861_s1 + $0x54] ss:$8 sps:$4 sm:$0xff]   ;;  %v719_v14 = vshrl.u32 %v57_v9, 7 }
   0x5   :  { %v579_v16 = vld [vmem:[%s861_s1 + $0x50] ss:$8 sps:$4 sm:$0xff]   ;;  %v580_v17 = vld [vmem:[%s861_s1 + $0x64] ss:$8 sps:$4 sm:$0xff]   ;;  %v582_v19 = vld [vmem:[%s861_s1 + $0x60] ss:$8 sps:$4 sm:$0xff]  }
   0x6   :  { %v728_v18 = vsub.s32 %v78_v15, %v719_v14  ;;  %v488_v20 = vld.sshfl [vmem:[%s860_s0] sm:$0x11 pattern:$0x75316420]  ;;  %v583_v21 = vld [vmem:[%s861_s1 + $0x74] ss:$8 sps:$4 sm:$0xff]  }
   0x7   :  { %255 = vmatpush1.bf16.msra.mxu0 %v567_v3  ;;  %v75_v22 = vcombine.high %v488_v20, %v488_v20  ;;  %v610_v23 = vld [vmem:[%s863_s3 + $0x40] sm:$0xff]   ;;  %v612_v26 = vld [vmem:[%s863_s3 + $0x48] sm:$0xff]   ;;  %v614_v28 = vld [vmem:[%s863_s3 + $0x50] sm:$0xff]  }
   0x8   :  { %256 = vmatprep.subr.bf16.mxu0 %v568_v4  ;;  %v611_v24 = vld [vmem:[%s863_s3] sm:$0xff]   ;;  %538 = vmatprep.subr.bf16.mxu1 %v610_v23  ;;  %v613_v27 = vld [vmem:[%s863_s3 + $0x8] sm:$0xff]   ;;  %v585_v29 = vld [vmem:[%s861_s1 + $0x70] ss:$8 sps:$4 sm:$0xff]  }
   0x9   :  { %v89_v25 = vrot.slane %v75_v22, %v728_v18  ;;  %539 = vmatpush3.bf16.msra.mxu1 %v611_v24  ;;  %v586_v30 = vld [vmem:[%s861_s1 + $0x84] ss:$8 sps:$4 sm:$0xff]   ;;  %v588_v31 = vld [vmem:[%s861_s1 + $0x80] ss:$8 sps:$4 sm:$0xff]   ;;  %v615_v32 = vld [vmem:[%s863_s3 + $0x10] sm:$0xff]  }
   0xa   :  { %540 = vmatprep.subr.bf16.mxu1 %v612_v26  ;;  %v589_v33 = vld [vmem:[%s861_s1 + $0x94] ss:$8 sps:$4 sm:$0xff]   ;;  %v591_v36 = vld [vmem:[%s861_s1 + $0x90] ss:$8 sps:$4 sm:$0xff]  }
   0xb   :  { %257 = vmatpush1.bf16.msra.mxu0 %v570_v5  ;;  %284 = vmatprep.mubr.bf16.mxu0 %v89_v25  ;;  %v616_v34 = vld [vmem:[%s863_s3 + $0x58] sm:$0xff]  }
   0xc   :  { %258 = vmatprep.subr.bf16.mxu0 %v571_v6  ;;  %v617_v35 = vld [vmem:[%s863_s3 + $0x18] sm:$0xff]  }
   0xd   :  { %541 = vmatpush3.bf16.msra.mxu1 %v613_v27 }
   0xe   :  { %542 = vmatprep.subr.bf16.mxu1 %v614_v28 }
   0xf   :  { %259 = vmatpush1.bf16.msra.mxu0 %v573_v7 }
  0x10   :  { %260 = vmatprep.subr.bf16.mxu0 %v574_v8 }
  0x11   :  { %543 = vmatpush3.bf16.msra.mxu1 %v615_v32 }
  0x12   :  { %544 = vmatprep.subr.bf16.mxu1 %v616_v34 }
  0x13   :  { %261 = vmatpush1.bf16.msra.mxu0 %v576_v12 }
  0x14   :  { %262 = vmatprep.subr.bf16.mxu0 %v577_v13 }
  0x17   :  { %263 = vmatpush1.bf16.msra.mxu0 %v579_v16 }
  0x18   :  { %264 = vmatprep.subr.bf16.mxu0 %v580_v17 }
  0x1b   :  { %265 = vmatpush1.bf16.msra.mxu0 %v582_v19 }
  0x1c   :  { %266 = vmatprep.subr.bf16.mxu0 %v583_v21 }
  0x1f   :  { %267 = vmatpush1.bf16.msra.mxu0 %v585_v29 }
  0x20   :  { %268 = vmatprep.subr.bf16.mxu0 %v586_v30 }
  0x23   :  { %269 = vmatpush1.bf16.msra.mxu0 %v588_v31 }
  0x24   :  { %10 = vsyncpa [#allocation3], 0  ;;  %270 = vmatprep.subr.bf16.mxu0 %v589_v33  ;;  %v592_v37 = vld [vmem:[%s861_s1 + $0xa4] ss:$8 sps:$4 sm:$0xff]   ;;  %545 = vmatpush3.bf16.msra.mxu1 %v617_v35  ;;  %v594_v38 = vld [vmem:[%s861_s1 + $0xa0] ss:$8 sps:$4 sm:$0xff]   ;;  %v82_v49 = vrot.slane %v488_v20, %v728_v18 }
  0x25   :  { %v595_v39 = vld [vmem:[%s861_s1 + $0xb4] ss:$8 sps:$4 sm:$0xff]   ;;  %v597_v40 = vld [vmem:[%s861_s1 + $0xb0] ss:$8 sps:$4 sm:$0xff]   ;;  %v598_v41 = vld [vmem:[%s861_s1 + $0xc4] ss:$8 sps:$4 sm:$0xff]  }
  0x26   :  { %v600_v42 = vld [vmem:[%s861_s1 + $0xc0] ss:$8 sps:$4 sm:$0xff]   ;;  %v601_v43 = vld [vmem:[%s861_s1 + $0xd4] ss:$8 sps:$4 sm:$0xff]   ;;  %v603_v44 = vld [vmem:[%s861_s1 + $0xd0] ss:$8 sps:$4 sm:$0xff]  }
  0x27   :  { %271 = vmatpush1.bf16.msra.mxu0 %v591_v36  ;;  %v604_v45 = vld [vmem:[%s861_s1 + $0xe4] ss:$8 sps:$4 sm:$0xff]   ;;  %v606_v46 = vld [vmem:[%s861_s1 + $0xe0] ss:$8 sps:$4 sm:$0xff]   ;;  %v607_v47 = vld [vmem:[%s861_s1 + $0xf4] ss:$8 sps:$4 sm:$0xff]  }
  0x28   :  { %272 = vmatprep.subr.bf16.mxu0 %v592_v37  ;;  %v609_v48 = vld [vmem:[%s861_s1 + $0xf0] ss:$8 sps:$4 sm:$0xff]   ;;  %v618_v50 = vld [vmem:[%s863_s3 + $0x60] sm:$0xff]   ;;  %v620_v52 = vld [vmem:[%s863_s3 + $0x68] sm:$0xff]   ;;  %v59_v58 = vsub.s32 0, %v719_v14  ;;  %v63_v60 = vsub.s32 1, %v719_v14 }
  0x29   :  { %v619_v51 = vld [vmem:[%s863_s3 + $0x20] sm:$0xff]   ;;  %546 = vmatprep.subr.bf16.mxu1 %v618_v50  ;;  %v621_v53 = vld [vmem:[%s863_s3 + $0x28] sm:$0xff]   ;;  %v622_v54 = vld [vmem:[%s863_s3 + $0x70] sm:$0xff]   ;;  %s655_s14 = smov [#allocation2]   ;;  %vm472_vm0 = vcmask 25600  }
  0x2a   :  { %547 = vmatpush3.bf16.msra.mxu1 %v619_v51  ;;  %v623_v55 = vld [vmem:[%s863_s3 + $0x30] sm:$0xff]   ;;  %v624_v56 = vld [vmem:[%s863_s3 + $0x78] sm:$0xff]   ;;  %v55_v59 = vld [vmem:[%s862_s2] sm:$0x3]  ;;  %s480_s15 = sshll.u32 %s655_s14, 4  ;;  %s481_s15 = int_to_ptr.vmem [resolvable:$true] %s480_s15 }
  0x2b   :  { %273 = vmatpush1.bf16.msra.mxu0 %v594_v38  ;;  %548 = vmatprep.subr.bf16.mxu1 %v620_v52  ;;  %v625_v57 = vld [vmem:[%s863_s3 + $0x38] sm:$0xff]   ;;  %v60_v61 = vrot.slane %v55_v59, %v59_v58  ;;  %v64_v62 = vrot.slane %v55_v59, %v63_v60  ;;  %v521_v10 = vld [vmem:[%s864_s4] ss:$0 sm:$0xff]  ;;  %s630_s16 = scalar_lea.vmem %s481_s15, 32  ;;  %p635_p1 = scmp.lt.s32.totalorder %s481_s15, %s481_s15 }
  0x2c   :  { %274 = vmatprep.subr.bf16.mxu0 %v595_v39  ;;  %p631_p0 = scmp.ne.s32.totalorder %s481_s15, %s630_s16  ;;  %p636_p2 = scmp.lt.s32.totalorder %s630_s16, %s630_s16 }
  0x2e   :  { %549 = vmatpush3.bf16.msra.mxu1 %v621_v53  ;;  %p637_p3 = por %p636_p2, %p635_p1 }
  0x2f   :  { %275 = vmatpush1.bf16.msra.mxu0 %v597_v40  ;;  %550 = vmatprep.subr.bf16.mxu1 %v622_v54 }
  0x30   :  { %276 = vmatprep.subr.bf16.mxu0 %v598_v41  ;;  %p638_p4 = pnand %p637_p3, %p631_p0 }
  0x32   :  { %551 = vmatpush3.bf16.msra.mxu1 %v623_v55 }
  0x33   :  { %277 = vmatpush1.bf16.msra.mxu0 %v600_v42  ;;  %552 = vmatprep.subr.bf16.mxu1 %v624_v56 }
  0x34   :  { %278 = vmatprep.subr.bf16.mxu0 %v601_v43 }
  0x36   :  { %553 = vmatpush3.bf16.msra.mxu1 %v625_v57 }
  0x37   :  { %279 = vmatpush1.bf16.msra.mxu0 %v603_v44 }
  0x38   :  { %280 = vmatprep.subr.bf16.mxu0 %v604_v45 }
  0x3b   :  { %281 = vmatpush1.bf16.msra.mxu0 %v606_v46 }
  0x3c   :  { %282 = vmatprep.subr.bf16.mxu0 %v607_v47 }
  0x3f   :  { %283 = vmatpush1.bf16.msra.mxu0 %v609_v48 }
  0x42   :  { %285 = vmatmul.mubr.bf16.vlgmr.msra.gmra.mrb[0].mxu0 %v82_v49 }
 0x115   :  { %v286_v63 = vpop.f32.mrb[0].mxu0 }
 0x116   :  { %v287_v0 = vadd.f32 %v286_v63, %v60_v61  ;;  %v288_v1 = vpop.f32.mrb[1].mxu0 }
 0x117   :  { %v289_v2 = vadd.f32 %v288_v1, %v64_v62  ;;  %v290_v3 = vpop.f32.mrb[2].mxu0 }
 0x118   :  { %626 = vtanh.f32 %v287_v0  ;;  %v291_v4 = vpop.f32.mrb[3].mxu0 }
 0x119   :  { %628 = vtanh.f32 %v289_v2 }
 0x122   :  { %v627_v5 = vpop.eup %626 }
 0x123   :  { %v629_v6 = vpop.eup %628  ;;  %v295_v8 = vpack.c.bf16 %v627_v5, %v627_v5 }
 0x124   :  { %v296_v7 = vpack.c.bf16 %v629_v6, %v629_v6 }
 0x126   :  { %464 = vmatprep.mubr.bf16.mxu1 %v296_v7 }
 0x127   :  { %465 = vmatmul.mubr.bf16.vlgmr.msra.gmra.mrb[0].mxu1 %v295_v8 }
 0x1fa   :  { %v554_v9 = vpop.f32.mrb[0].mxu1 }
 0x1fb   :  { %v555_v11 = vpop.f32.mrb[1].mxu1 }
 0x1fc   :  { %v556_v12 = vadd.f32 %v555_v11, %v554_v9  ;;  %v557_v13 = vpop.f32.mrb[2].mxu1 }
 0x1fd   :  { %v558_v14 = vpop.f32.mrb[3].mxu1 }
 0x1fe   :  { %v467_v15 = vadd.f32 %v556_v12, %v521_v10 }
 0x200   :  { %473 = vst.msk [vmem:[#allocation2] sm:$0x3] %vm472_vm0, %v467_v15 }
 0x201   :  { %641 = shalt.err (!%p638_p4)
}
 0x202   :  { %s642_s4 = scalar_lea.hbm %s865_s5, 32 }
 0x203   :  { %p643_p5 = scmp.ne.s32.totalorder %s865_s5, %s642_s4  ;;  %p646_p6 = scmp.lt.u32.totalorder %s642_s4, %s865_s5 }
 0x205   :  { %p648_p7 = pnand %p646_p6, %p643_p5 }
 0x207   :  { %651 = shalt.err (!%p648_p7)
}
 0x208   :  { %483 = dma.vmem_to_hbm [thread:$0]  %s481_s15, 32, %s865_s5, [#allocation3]  }
 0x209   :  { %652 = dma.done.wait [#allocation3], 32  }
 0x20a   :  { %653 = vsyncadd [#allocation3], 4294967264 }
 0x20b   :  { %487 = vsyncpa [#allocation3], 1 }

</bundles_post_ra>
